<compile_context>
chip_gen: v7x
topology: tpu7x:2x2x1
jax: 0.10.0
libtpu: 0.0.40
codegen_flags: <defaults>
</compile_context>

<pallas_src>
import functools

import jax
import jax.numpy as jnp
import numpy as np
from jax import lax
from jax.experimental import pallas as pl
from jax.experimental.pallas import tpu as pltpu


# (dt, dh, dw) offsets for the 27 taps of a 3x3x3 conv; tap = kt*9 + kh*3 + kw.
_TAPS = tuple((kt - 1, kh - 1, kw - 1)
              for kt in range(3) for kh in range(3) for kw in range(3))

_LN_EPS = 1e-6   # PhysFormer uses nn.LayerNorm(dim, eps=1e-6)
_BN_EPS = 1e-5


# ----------------------------- shared math helpers ---------------------------

def _elu(x):
    # ELU(alpha=1).  exp argument clamped at 0 so the untaken branch never
    # overflows for large positive activations.
    return jnp.where(x > 0, x, jnp.exp(jnp.minimum(x, 0.0)) - 1.0)


def _layernorm(x, g, b, eps=_LN_EPS):
    mean = jnp.mean(x, axis=-1, keepdims=True)
    xc = x - mean
    var = jnp.mean(xc * xc, axis=-1, keepdims=True)
    return xc * lax.rsqrt(var + eps) * g + b


def _token_coords(shape):
    # full-shape (P, W) integer coords of each token's (t, h, w)
    pidx = lax.broadcasted_iota(jnp.int32, shape, 0)
    return pidx >> 4, (pidx >> 2) & 3, pidx & 3


def _tap_shift_mask(x, dt, dh, dw, tt, hh, ww, T):
    """out[p] = x[p + dt*16 + dh*4 + dw] when the source voxel is in bounds, else 0."""
    P = x.shape[0]
    off = dt * 16 + dh * 4 + dw
    if off == 0:                       # centre tap: no shift, always valid
        return x
    shifted = pltpu.roll(x, shift=(-off) % P, axis=0)
    st, sh, sw = tt + dt, hh + dh, ww + dw
    valid = (st >= 0) & (st < T) & (sh >= 0) & (sh < 4) & (sw >= 0) & (sw < 4)
    return jnp.where(valid, shifted, 0.0)


# ----------------------------- Pallas kernels --------------------------------

def _attn_block_kernel(x_ref, g1_ref, b1_ref, wqk_ref, bqk_ref, wv_ref,
                       wp_ref, bp_ref, xmid_ref, score_ref, o_scr,
                       *, T, H, Wd, inv_gra):
    P, C = x_ref.shape
    x = x_ref[...]

    # --- LayerNorm1 (fused; per-token) ---
    xn = _layernorm(x, g1_ref[...], b1_ref[...])

    # --- fused q/k CDC 3x3x3 conv: 27 taps accumulated in VMEM/vregs ---
    tt, hh, ww = _token_coords((P, C))
    acc = jnp.zeros((P, 2 * C), jnp.float32)
    for tap, (dt, dh, dw) in enumerate(_TAPS):
        xt = _tap_shift_mask(xn, dt, dh, dw, tt, hh, ww, T).astype(jnp.bfloat16)
        acc = acc + jnp.dot(xt, wqk_ref[tap],
                            preferred_element_type=jnp.float32)
    qk = acc + bqk_ref[...]
    q = qk[:, :C] * inv_gra            # 1/gra_sharp folded into q (not P x P divide)
    k = qk[:, C:]

    # --- v: 1x1x1 conv (no bias, no BN) ---
    v = jnp.dot(xn.astype(jnp.bfloat16), wv_ref[...],
                preferred_element_type=jnp.float32)

    # --- per-head attention, all heads of this batch element in one step ---
    for h in range(H):
        qh = q[:, h * Wd:(h + 1) * Wd].astype(jnp.bfloat16)
        kh = k[:, h * Wd:(h + 1) * Wd].astype(jnp.bfloat16)
        vh = v[:, h * Wd:(h + 1) * Wd].astype(jnp.bfloat16)
        s = lax.dot_general(qh, kh, (((1,), (1,)), ((), ())),
                            preferred_element_type=jnp.float32)
        m = jnp.max(s, axis=-1, keepdims=True)
        e = jnp.exp(s - m)
        prob = e * pl.reciprocal(jnp.sum(e, axis=-1, keepdims=True), approx=True)
        score_ref[h] = prob
        o_scr[:, h * Wd:(h + 1) * Wd] = jnp.dot(
            prob.astype(jnp.bfloat16), vh, preferred_element_type=jnp.float32)

    # --- output projection + residual (fused) ---
    # TODO(synk): Dropout layers are identity here (inference semantics).
    o = o_scr[...]
    proj = jnp.dot(o.astype(jnp.bfloat16), wp_ref[...],
                   preferred_element_type=jnp.float32) + bp_ref[...]
    xmid_ref[...] = x + proj


def _ffn_block_kernel(x_ref, g2_ref, b2_ref, w1_ref, bf1_ref, wdw_ref, bdw_ref,
                      w2_ref, bf2_ref, out_ref, *, T):
    P, C = x_ref.shape
    Fd = w1_ref.shape[1]
    x = x_ref[...]

    # --- LayerNorm2 + fc1 (1x1 conv + BN + ELU), fused ---
    xn = _layernorm(x, g2_ref[...], b2_ref[...])
    y = jnp.dot(xn.astype(jnp.bfloat16), w1_ref[...],
                preferred_element_type=jnp.float32) + bf1_ref[...]
    y = _elu(y)

    # --- depthwise 3x3x3 STConv (+BN+ELU): taps via roll + mask, no HBM stack ---
    tt, hh, ww = _token_coords((P, Fd))
    wdw = wdw_ref[...]                                     # (27, Fd), loaded once
    acc = jnp.zeros((P, Fd), jnp.float32)
    for tap, (dt, dh, dw) in enumerate(_TAPS):
        yt = _tap_shift_mask(y, dt, dh, dw, tt, hh, ww, T)
        acc = acc + yt * wdw[tap:tap + 1, :]
    acc = _elu(acc + bdw_ref[...])

    # --- fc2 (1x1 conv + BN) + residual, fused ---
    out = jnp.dot(acc.astype(jnp.bfloat16), w2_ref[...],
                  preferred_element_type=jnp.float32) + bf2_ref[...]
    out_ref[...] = x + out


# ----------------------------- wrappers ---------------------------------------

def attention_block(x, p, num_heads, gra_sharp):
    B, P, C = x.shape
    T = P // 16
    H = num_heads
    Wd = C // H
    kern = functools.partial(_attn_block_kernel, T=T, H=H, Wd=Wd,
                             inv_gra=float(1.0 / gra_sharp))
    return pl.pallas_call(
        kern,
        out_shape=(jax.ShapeDtypeStruct((B, P, C), jnp.float32),
                   jax.ShapeDtypeStruct((B, H, P, P), jnp.float32)),
        grid=(B,),
        in_specs=[pl.BlockSpec((None, P, C), lambda b: (b, 0, 0)),
                  pl.BlockSpec((1, C), lambda b: (0, 0)),
                  pl.BlockSpec((1, C), lambda b: (0, 0)),
                  pl.BlockSpec((27, C, 2 * C), lambda b: (0, 0, 0)),
                  pl.BlockSpec((1, 2 * C), lambda b: (0, 0)),
                  pl.BlockSpec((C, C), lambda b: (0, 0)),
                  pl.BlockSpec((C, C), lambda b: (0, 0)),
                  pl.BlockSpec((1, C), lambda b: (0, 0))],
        out_specs=(pl.BlockSpec((None, P, C), lambda b: (b, 0, 0)),
                   pl.BlockSpec((None, H, P, P), lambda b: (b, 0, 0, 0))),
        scratch_shapes=[pltpu.VMEM((P, C), jnp.float32)],
        compiler_params=pltpu.CompilerParams(dimension_semantics=("parallel",)),
    )(x,
      p["ln1_g"].reshape(1, C), p["ln1_b"].reshape(1, C),
      p["wqk"].astype(jnp.bfloat16), p["bqk"].reshape(1, 2 * C),
      p["wv_mat"].astype(jnp.bfloat16),
      p["wproj"].astype(jnp.bfloat16), p["bproj"].reshape(1, C))


def ffn_block(x, p):
    B, P, C = x.shape
    T = P // 16
    Fd = p["wfc1"].shape[1]
    kern = functools.partial(_ffn_block_kernel, T=T)
    return pl.pallas_call(
        kern,
        out_shape=jax.ShapeDtypeStruct((B, P, C), jnp.float32),
        grid=(B,),
        in_specs=[pl.BlockSpec((None, P, C), lambda b: (b, 0, 0)),
                  pl.BlockSpec((1, C), lambda b: (0, 0)),
                  pl.BlockSpec((1, C), lambda b: (0, 0)),
                  pl.BlockSpec((C, Fd), lambda b: (0, 0)),
                  pl.BlockSpec((1, Fd), lambda b: (0, 0)),
                  pl.BlockSpec((27, Fd), lambda b: (0, 0)),
                  pl.BlockSpec((1, Fd), lambda b: (0, 0)),
                  pl.BlockSpec((Fd, C), lambda b: (0, 0)),
                  pl.BlockSpec((1, C), lambda b: (0, 0))],
        out_specs=pl.BlockSpec((None, P, C), lambda b: (b, 0, 0)),
        compiler_params=pltpu.CompilerParams(dimension_semantics=("parallel",)),
    )(x,
      p["ln2_g"].reshape(1, C), p["ln2_b"].reshape(1, C),
      p["wfc1"].astype(jnp.bfloat16), p["bfc1"].reshape(1, Fd),
      p["w_dw"], p["b_dw"].reshape(1, Fd),
      p["wfc2"].astype(jnp.bfloat16), p["bfc2"].reshape(1, C))


def block_forward(x, gra_sharp, p, num_heads):
    x_mid, scores = attention_block(x, p, num_heads, gra_sharp)
    x_out = ffn_block(x_mid, p)
    return x_out, scores


# ---------------------- parameter init & BN/CDC folding -----------------------

def fold_cdc_bn(Wconv, gamma, beta, rm, rv, theta, eps=_BN_EPS):
    # Wconv: (Co, Ci, 3, 3, 3). CDC_T: out = conv(x, W) - theta * conv1x1(x, kdiff);
    # kdiff acts at the same voxel => fold into the centre tap of the 3^3 kernel.
    Co, Ci = Wconv.shape[0], Wconv.shape[1]
    kernel_diff = Wconv[:, :, 0].sum(axis=(-1, -2)) + Wconv[:, :, 2].sum(axis=(-1, -2))
    Weff = Wconv.at[:, :, 1, 1, 1].add(-theta * kernel_diff)
    s = gamma / jnp.sqrt(rv + eps)
    w_taps = jnp.transpose(Weff, (2, 3, 4, 1, 0)).reshape(27, Ci, Co) * s[None, None, :]
    bias = beta - rm * s
    return w_taps, bias


def fold_1x1_bn(W, gamma, beta, rm, rv, eps=_BN_EPS):
    # W: (Co, Ci) from a 1x1x1 conv (no bias)
    s = gamma / jnp.sqrt(rv + eps)
    return W.T * s[None, :], beta - rm * s


def init_params(key, dim, ff_dim, theta):
    keys = iter(jax.random.split(key, 64))

    def nrm(shape, s=0.05):
        return s * jax.random.normal(next(keys), shape, jnp.float32)

    def bn_params(c):
        gamma = 1.0 + 0.1 * jax.random.normal(next(keys), (c,), jnp.float32)
        beta = 0.1 * jax.random.normal(next(keys), (c,), jnp.float32)
        rm = 0.1 * jax.random.normal(next(keys), (c,), jnp.float32)
        rv = 1.0 + 0.1 * jnp.abs(jax.random.normal(next(keys), (c,), jnp.float32))
        return gamma, beta, rm, rv

    p = {}
    p["ln1_g"] = 1.0 + 0.1 * jax.random.normal(next(keys), (dim,), jnp.float32)
    p["ln1_b"] = 0.1 * jax.random.normal(next(keys), (dim,), jnp.float32)
    p["ln2_g"] = 1.0 + 0.1 * jax.random.normal(next(keys), (dim,), jnp.float32)
    p["ln2_b"] = 0.1 * jax.random.normal(next(keys), (dim,), jnp.float32)

    # proj_q / proj_k: CDC_T(dim,dim,3) + BatchNorm3d -> fused q/k weight (27,C,2C)
    wq_taps, bq = fold_cdc_bn(nrm((dim, dim, 3, 3, 3)), *bn_params(dim), theta)
    wk_taps, bk = fold_cdc_bn(nrm((dim, dim, 3, 3, 3)), *bn_params(dim), theta)
    p["wqk"] = jnp.concatenate([wq_taps, wk_taps], axis=-1)
    p["bqk"] = jnp.concatenate([bq, bk], axis=0)

    # proj_v: 1x1x1 conv, no bias, no BN
    p["wv_mat"] = nrm((dim, dim)).T
    # output projection (nn.Linear(dim, dim))
    p["wproj"] = nrm((dim, dim)).T
    p["bproj"] = nrm((dim,))

    # pwff fc1: 1x1 conv dim->ff_dim + BN (+ ELU)
    p["wfc1"], p["bfc1"] = fold_1x1_bn(nrm((ff_dim, dim)), *bn_params(ff_dim))
    # pwff STConv: depthwise 3x3x3 (groups=ff_dim) + BN (+ ELU)
    wst = nrm((ff_dim, 1, 3, 3, 3))
    gst, bst, rmst, rvst = bn_params(ff_dim)
    s_st = gst / jnp.sqrt(rvst + _BN_EPS)
    p["w_dw"] = (wst[:, 0].reshape(ff_dim, 27).T) * s_st[None, :]   # (27, F)
    p["b_dw"] = bst - rmst * s_st
    # pwff fc2: 1x1 conv ff_dim->dim + BN
    p["wfc2"], p["bfc2"] = fold_1x1_bn(nrm((dim, ff_dim)), *bn_params(dim))
    return p


# ----------------------------- pure-JAX reference ------------------------------

def _conv3x3x3_ref(vol, w_taps, bias):
    # vol: (B, T, 4, 4, Ci), w_taps: (27, Ci, Co)  -- padded tap-sum formulation
    B, T, Hs, Ws, _ = vol.shape
    vp = jnp.pad(vol, ((0, 0), (1, 1), (1, 1), (1, 1), (0, 0)))
    out = jnp.zeros(vol.shape[:-1] + (w_taps.shape[-1],), jnp.float32)
    tap = 0
    for kt in range(3):
        for kh in range(3):
            for kw in range(3):
                xt = vp[:, kt:kt + T, kh:kh + Hs, kw:kw + Ws, :].astype(jnp.bfloat16)
                out = out + jnp.einsum("bthwc,cd->bthwd", xt,
                                       w_taps[tap].astype(jnp.bfloat16),
                                       preferred_element_type=jnp.float32)
                tap += 1
    return out + bias


def _dwconv3x3x3_ref(vol, w_taps, bias):
    # vol: (B, T, 4, 4, F), w_taps: (27, F)
    B, T, Hs, Ws, _ = vol.shape
    vp = jnp.pad(vol, ((0, 0), (1, 1), (1, 1), (1, 1), (0, 0)))
    out = jnp.zeros_like(vol)
    tap = 0
    for kt in range(3):
        for kh in range(3):
            for kw in range(3):
                out = out + vp[:, kt:kt + T, kh:kh + Hs, kw:kw + Ws, :] * w_taps[tap]
                tap += 1
    return out + bias


def block_forward_ref(x, gra_sharp, p, num_heads):
    B, P, C = x.shape
    T = P // 16
    H = num_heads
    Wd = C // H
    # attention branch
    xn = _layernorm(x, p["ln1_g"], p["ln1_b"])
    qk = _conv3x3x3_ref(xn.reshape(B, T, 4, 4, C), p["wqk"], p["bqk"]).reshape(B, P, 2 * C)
    q = qk[..., :C] / gra_sharp
    k = qk[..., C:]
    v = jnp.einsum("bpc,cd->bpd", xn.astype(jnp.bfloat16),
                   p["wv_mat"].astype(jnp.bfloat16),
                   preferred_element_type=jnp.float32)
    qh = q.reshape(B, P, H, Wd).transpose(0, 2, 1, 3)
    kh = k.reshape(B, P, H, Wd).transpose(0, 2, 1, 3)
    vh = v.reshape(B, P, H, Wd).transpose(0, 2, 1, 3)
    s = jnp.einsum("bhqd,bhkd->bhqk", qh.astype(jnp.bfloat16), kh.astype(jnp.bfloat16),
                   preferred_element_type=jnp.float32)
    prob = jax.nn.softmax(s, axis=-1)
    o = jnp.einsum("bhqk,bhkd->bhqd", prob.astype(jnp.bfloat16), vh,
                   preferred_element_type=jnp.float32)
    o = o.transpose(0, 2, 1, 3).reshape(B, P, C)
    proj = jnp.einsum("bpc,cd->bpd", o.astype(jnp.bfloat16),
                      p["wproj"].astype(jnp.bfloat16),
                      preferred_element_type=jnp.float32) + p["bproj"]
    x1 = x + proj
    # feed-forward branch
    xn2 = _layernorm(x1, p["ln2_g"], p["ln2_b"])
    y = jnp.einsum("bpc,cf->bpf", xn2.astype(jnp.bfloat16),
                   p["wfc1"].astype(jnp.bfloat16),
                   preferred_element_type=jnp.float32) + p["bfc1"]
    y = _elu(y)
    y = _elu(_dwconv3x3x3_ref(y.reshape(B, T, 4, 4, -1), p["w_dw"], p["b_dw"]))
    y = y.reshape(B, P, -1)
    y2 = jnp.einsum("bpf,fc->bpc", y.astype(jnp.bfloat16),
                    p["wfc2"].astype(jnp.bfloat16),
                    preferred_element_type=jnp.float32) + p["bfc2"]
    return x1 + y2, prob


# ----------------------------------- main --------------------------------------

if __name__ == "__main__":
    B, P, C = 2, 32, 32          # P must be divisible by 16 (T = P // 16 = 2)
    num_heads, ff_dim, theta = 4, 64, 0.7
    gra_sharp = 2.0

    key = jax.random.PRNGKey(0)
    kx, kp = jax.random.split(key)
    x = jax.random.normal(kx, (B, P, C), jnp.float32)
    params = init_params(kp, C, ff_dim, theta)

    out, score = block_forward(x, gra_sharp, params, num_heads)
    out = jax.block_until_ready(out)
    score = jax.block_until_ready(score)

    ref_out, ref_score = block_forward_ref(x, gra_sharp, params, num_heads)
    np.testing.assert_allclose(np.asarray(out), np.asarray(ref_out), rtol=2e-2, atol=2e-2)
    np.testing.assert_allclose(np.asarray(score), np.asarray(ref_score), rtol=2e-2, atol=2e-2)
    assert out.shape == (B, P, C) and score.shape == (B, num_heads, P, P)

    print("KERNEL_OK")
</pallas_src>

<mosaic_0001>
module attributes {stable_mosaic.version = 11 : i64} {
  func.func @_attn_block_kernel(%arg0: i32, %arg1: memref<1x32x32xf32, #tpu.memory_space<vmem>>, %arg2: memref<1x32xf32, #tpu.memory_space<vmem>>, %arg3: memref<1x32xf32, #tpu.memory_space<vmem>>, %arg4: memref<27x32x64xbf16, #tpu.memory_space<vmem>>, %arg5: memref<1x64xf32, #tpu.memory_space<vmem>>, %arg6: memref<32x32xbf16, #tpu.memory_space<vmem>>, %arg7: memref<32x32xbf16, #tpu.memory_space<vmem>>, %arg8: memref<1x32xf32, #tpu.memory_space<vmem>>, %arg9: memref<1x32x32xf32, #tpu.memory_space<vmem>>, %arg10: memref<1x4x32x32xf32, #tpu.memory_space<vmem>>, %arg11: memref<32x32xf32, #tpu.memory_space<vmem>>) attributes {dimension_semantics = [#tpu.dimension_semantics<parallel>], iteration_bounds = array<i64: 2>, scalar_prefetch = 0 : i64, scratch_operands = 1 : i64, tpu.core_type = #tpu.core_type<tc>, window_params = [{transform_indices = @transform_0, window_bounds = array<i64: 1, 32, 32>}, {pipeline_mode = #tpu.pipeline_mode<synchronous>, transform_indices = @transform_1, window_bounds = array<i64: 1, 32>}, {pipeline_mode = #tpu.pipeline_mode<synchronous>, transform_indices = @transform_2, window_bounds = array<i64: 1, 32>}, {pipeline_mode = #tpu.pipeline_mode<synchronous>, transform_indices = @transform_3, window_bounds = array<i64: 27, 32, 64>}, {pipeline_mode = #tpu.pipeline_mode<synchronous>, transform_indices = @transform_4, window_bounds = array<i64: 1, 64>}, {pipeline_mode = #tpu.pipeline_mode<synchronous>, transform_indices = @transform_5, window_bounds = array<i64: 32, 32>}, {pipeline_mode = #tpu.pipeline_mode<synchronous>, transform_indices = @transform_6, window_bounds = array<i64: 32, 32>}, {pipeline_mode = #tpu.pipeline_mode<synchronous>, transform_indices = @transform_7, window_bounds = array<i64: 1, 32>}, {transform_indices = @transform_8, window_bounds = array<i64: 1, 32, 32>}, {transform_indices = @transform_9, window_bounds = array<i64: 1, 4, 32, 32>}]} {
    %c0 = arith.constant 0 : index
    %c0_0 = arith.constant 0 : index
    %c0_1 = arith.constant 0 : index
    %0 = vector.load %arg1[%c0, %c0_0, %c0_1] : memref<1x32x32xf32, #tpu.memory_space<vmem>>, vector<1x32x32xf32>
    %1 = vector.shape_cast %0 : vector<1x32x32xf32> to vector<32x32xf32>
    %c0_2 = arith.constant 0 : index
    %c0_3 = arith.constant 0 : index
    %2 = vector.load %arg2[%c0_2, %c0_3] : memref<1x32xf32, #tpu.memory_space<vmem>>, vector<1x32xf32>
    %c0_4 = arith.constant 0 : index
    %c0_5 = arith.constant 0 : index
    %3 = vector.load %arg3[%c0_4, %c0_5] : memref<1x32xf32, #tpu.memory_space<vmem>>, vector<1x32xf32>
    %cst = arith.constant dense<0.000000e+00> : vector<32xf32>
    %4 = vector.multi_reduction <add>, %1, %cst [1] : vector<32x32xf32> to vector<32xf32>
    %5 = vector.shape_cast %4 : vector<32xf32> to vector<32x1xf32>
    %cst_6 = arith.constant 3.200000e+01 : f32
    %6 = vector.broadcast %cst_6 : f32 to vector<32x1xf32>
    %7 = arith.divf %5, %6 : vector<32x1xf32>
    %8 = vector.broadcast %7 : vector<32x1xf32> to vector<32x32xf32>
    %9 = arith.subf %1, %8 : vector<32x32xf32>
    %10 = arith.mulf %9, %9 : vector<32x32xf32>
    %cst_7 = arith.constant dense<0.000000e+00> : vector<32xf32>
    %11 = vector.multi_reduction <add>, %10, %cst_7 [1] : vector<32x32xf32> to vector<32xf32>
    %12 = vector.shape_cast %11 : vector<32xf32> to vector<32x1xf32>
    %cst_8 = arith.constant 3.200000e+01 : f32
    %13 = vector.broadcast %cst_8 : f32 to vector<32x1xf32>
    %14 = arith.divf %12, %13 : vector<32x1xf32>
    %cst_9 = arith.constant 9.99999997E-7 : f32
    %15 = vector.broadcast %cst_9 : f32 to vector<32x1xf32>
    %16 = arith.addf %14, %15 : vector<32x1xf32>
    %17 = math.rsqrt %16 : vector<32x1xf32>
    %18 = vector.broadcast %17 : vector<32x1xf32> to vector<32x32xf32>
    %19 = arith.mulf %9, %18 : vector<32x32xf32>
    %20 = vector.broadcast %2 : vector<1x32xf32> to vector<32x32xf32>
    %21 = arith.mulf %19, %20 : vector<32x32xf32>
    %22 = vector.broadcast %3 : vector<1x32xf32> to vector<32x32xf32>
    %23 = arith.addf %21, %22 : vector<32x32xf32>
    %24 = tpu.iota {dimensions = array<i32: 0>} : vector<32x32xi32>
    %c4_i32 = arith.constant 4 : i32
    %25 = vector.broadcast %c4_i32 : i32 to vector<32x32xi32>
    %26 = arith.shrsi %24, %25 : vector<32x32xi32>
    %c2_i32 = arith.constant 2 : i32
    %27 = vector.broadcast %c2_i32 : i32 to vector<32x32xi32>
    %28 = arith.shrsi %24, %27 : vector<32x32xi32>
    %c3_i32 = arith.constant 3 : i32
    %29 = vector.broadcast %c3_i32 : i32 to vector<32x32xi32>
    %30 = arith.andi %28, %29 : vector<32x32xi32>
    %c3_i32_10 = arith.constant 3 : i32
    %31 = vector.broadcast %c3_i32_10 : i32 to vector<32x32xi32>
    %32 = arith.andi %24, %31 : vector<32x32xi32>
    %cst_11 = arith.constant 0.000000e+00 : f32
    %33 = vector.broadcast %cst_11 : f32 to vector<32x64xf32>
    %c21_i32 = arith.constant 21 : i32
    %34 = tpu.dynamic_rotate %23 by %c21_i32 dim 0 : vector<32x32xf32>, i32 -> vector<32x32xf32>
    %c-1_i32 = arith.constant -1 : i32
    %35 = vector.broadcast %c-1_i32 : i32 to vector<32x32xi32>
    %36 = arith.addi %26, %35 : vector<32x32xi32>
    %c-1_i32_12 = arith.constant -1 : i32
    %37 = vector.broadcast %c-1_i32_12 : i32 to vector<32x32xi32>
    %38 = arith.addi %30, %37 : vector<32x32xi32>
    %c-1_i32_13 = arith.constant -1 : i32
    %39 = vector.broadcast %c-1_i32_13 : i32 to vector<32x32xi32>
    %40 = arith.addi %32, %39 : vector<32x32xi32>
    %c0_i32 = arith.constant 0 : i32
    %41 = vector.broadcast %c0_i32 : i32 to vector<32x32xi32>
    %42 = arith.cmpi sge, %36, %41 : vector<32x32xi32>
    %c2_i32_14 = arith.constant 2 : i32
    %43 = vector.broadcast %c2_i32_14 : i32 to vector<32x32xi32>
    %44 = arith.cmpi slt, %36, %43 : vector<32x32xi32>
    %45 = arith.andi %42, %44 : vector<32x32xi1>
    %c0_i32_15 = arith.constant 0 : i32
    %46 = vector.broadcast %c0_i32_15 : i32 to vector<32x32xi32>
    %47 = arith.cmpi sge, %38, %46 : vector<32x32xi32>
    %48 = arith.andi %45, %47 : vector<32x32xi1>
    %c4_i32_16 = arith.constant 4 : i32
    %49 = vector.broadcast %c4_i32_16 : i32 to vector<32x32xi32>
    %50 = arith.cmpi slt, %38, %49 : vector<32x32xi32>
    %51 = arith.andi %48, %50 : vector<32x32xi1>
    %c0_i32_17 = arith.constant 0 : i32
    %52 = vector.broadcast %c0_i32_17 : i32 to vector<32x32xi32>
    %53 = arith.cmpi sge, %40, %52 : vector<32x32xi32>
    %54 = arith.andi %51, %53 : vector<32x32xi1>
    %c4_i32_18 = arith.constant 4 : i32
    %55 = vector.broadcast %c4_i32_18 : i32 to vector<32x32xi32>
    %56 = arith.cmpi slt, %40, %55 : vector<32x32xi32>
    %57 = arith.andi %54, %56 : vector<32x32xi1>
    %cst_19 = arith.constant 0.000000e+00 : f32
    %58 = vector.broadcast %cst_19 : f32 to vector<32x32xf32>
    %59 = arith.select %57, %34, %58 : vector<32x32xi1>, vector<32x32xf32>
    %60 = arith.truncf %59 : vector<32x32xf32> to vector<32x32xbf16>
    %c0_20 = arith.constant 0 : index
    %c0_21 = arith.constant 0 : index
    %c0_22 = arith.constant 0 : index
    %61 = vector.load %arg4[%c0_20, %c0_21, %c0_22] : memref<27x32x64xbf16, #tpu.memory_space<vmem>>, vector<1x32x64xbf16>
    %62 = vector.shape_cast %61 : vector<1x32x64xbf16> to vector<32x64xbf16>
    %cst_23 = arith.constant dense<0.000000e+00> : vector<32x64xf32>
    %63 = tpu.matmul %60, %62, %cst_23 {dimension_numbers = #tpu.dot_dimension_numbers<[1], [0], [0], [1], [0, 0, 1, 1], [], []>} : vector<32x32xbf16>, vector<32x64xbf16>, vector<32x64xf32> -> vector<32x64xf32>
    %64 = arith.addf %33, %63 : vector<32x64xf32>
    %c20_i32 = arith.constant 20 : i32
    %65 = tpu.dynamic_rotate %23 by %c20_i32 dim 0 : vector<32x32xf32>, i32 -> vector<32x32xf32>
    %c-1_i32_24 = arith.constant -1 : i32
    %66 = vector.broadcast %c-1_i32_24 : i32 to vector<32x32xi32>
    %67 = arith.addi %26, %66 : vector<32x32xi32>
    %c-1_i32_25 = arith.constant -1 : i32
    %68 = vector.broadcast %c-1_i32_25 : i32 to vector<32x32xi32>
    %69 = arith.addi %30, %68 : vector<32x32xi32>
    %c0_i32_26 = arith.constant 0 : i32
    %70 = vector.broadcast %c0_i32_26 : i32 to vector<32x32xi32>
    %71 = arith.addi %32, %70 : vector<32x32xi32>
    %c0_i32_27 = arith.constant 0 : i32
    %72 = vector.broadcast %c0_i32_27 : i32 to vector<32x32xi32>
    %73 = arith.cmpi sge, %67, %72 : vector<32x32xi32>
    %c2_i32_28 = arith.constant 2 : i32
    %74 = vector.broadcast %c2_i32_28 : i32 to vector<32x32xi32>
    %75 = arith.cmpi slt, %67, %74 : vector<32x32xi32>
    %76 = arith.andi %73, %75 : vector<32x32xi1>
    %c0_i32_29 = arith.constant 0 : i32
    %77 = vector.broadcast %c0_i32_29 : i32 to vector<32x32xi32>
    %78 = arith.cmpi sge, %69, %77 : vector<32x32xi32>
    %79 = arith.andi %76, %78 : vector<32x32xi1>
    %c4_i32_30 = arith.constant 4 : i32
    %80 = vector.broadcast %c4_i32_30 : i32 to vector<32x32xi32>
    %81 = arith.cmpi slt, %69, %80 : vector<32x32xi32>
    %82 = arith.andi %79, %81 : vector<32x32xi1>
    %c0_i32_31 = arith.constant 0 : i32
    %83 = vector.broadcast %c0_i32_31 : i32 to vector<32x32xi32>
    %84 = arith.cmpi sge, %71, %83 : vector<32x32xi32>
    %85 = arith.andi %82, %84 : vector<32x32xi1>
    %c4_i32_32 = arith.constant 4 : i32
    %86 = vector.broadcast %c4_i32_32 : i32 to vector<32x32xi32>
    %87 = arith.cmpi slt, %71, %86 : vector<32x32xi32>
    %88 = arith.andi %85, %87 : vector<32x32xi1>
    %cst_33 = arith.constant 0.000000e+00 : f32
    %89 = vector.broadcast %cst_33 : f32 to vector<32x32xf32>
    %90 = arith.select %88, %65, %89 : vector<32x32xi1>, vector<32x32xf32>
    %91 = arith.truncf %90 : vector<32x32xf32> to vector<32x32xbf16>
    %c1 = arith.constant 1 : index
    %c0_34 = arith.constant 0 : index
    %c0_35 = arith.constant 0 : index
    %92 = vector.load %arg4[%c1, %c0_34, %c0_35] : memref<27x32x64xbf16, #tpu.memory_space<vmem>>, vector<1x32x64xbf16>
    %93 = vector.shape_cast %92 : vector<1x32x64xbf16> to vector<32x64xbf16>
    %cst_36 = arith.constant dense<0.000000e+00> : vector<32x64xf32>
    %94 = tpu.matmul %91, %93, %cst_36 {dimension_numbers = #tpu.dot_dimension_numbers<[1], [0], [0], [1], [0, 0, 1, 1], [], []>} : vector<32x32xbf16>, vector<32x64xbf16>, vector<32x64xf32> -> vector<32x64xf32>
    %95 = arith.addf %64, %94 : vector<32x64xf32>
    %c19_i32 = arith.constant 19 : i32
    %96 = tpu.dynamic_rotate %23 by %c19_i32 dim 0 : vector<32x32xf32>, i32 -> vector<32x32xf32>
    %c-1_i32_37 = arith.constant -1 : i32
    %97 = vector.broadcast %c-1_i32_37 : i32 to vector<32x32xi32>
    %98 = arith.addi %26, %97 : vector<32x32xi32>
    %c-1_i32_38 = arith.constant -1 : i32
    %99 = vector.broadcast %c-1_i32_38 : i32 to vector<32x32xi32>
    %100 = arith.addi %30, %99 : vector<32x32xi32>
    %c1_i32 = arith.constant 1 : i32
    %101 = vector.broadcast %c1_i32 : i32 to vector<32x32xi32>
    %102 = arith.addi %32, %101 : vector<32x32xi32>
    %c0_i32_39 = arith.constant 0 : i32
    %103 = vector.broadcast %c0_i32_39 : i32 to vector<32x32xi32>
    %104 = arith.cmpi sge, %98, %103 : vector<32x32xi32>
    %c2_i32_40 = arith.constant 2 : i32
    %105 = vector.broadcast %c2_i32_40 : i32 to vector<32x32xi32>
    %106 = arith.cmpi slt, %98, %105 : vector<32x32xi32>
    %107 = arith.andi %104, %106 : vector<32x32xi1>
    %c0_i32_41 = arith.constant 0 : i32
    %108 = vector.broadcast %c0_i32_41 : i32 to vector<32x32xi32>
    %109 = arith.cmpi sge, %100, %108 : vector<32x32xi32>
    %110 = arith.andi %107, %109 : vector<32x32xi1>
    %c4_i32_42 = arith.constant 4 : i32
    %111 = vector.broadcast %c4_i32_42 : i32 to vector<32x32xi32>
    %112 = arith.cmpi slt, %100, %111 : vector<32x32xi32>
    %113 = arith.andi %110, %112 : vector<32x32xi1>
    %c0_i32_43 = arith.constant 0 : i32
    %114 = vector.broadcast %c0_i32_43 : i32 to vector<32x32xi32>
    %115 = arith.cmpi sge, %102, %114 : vector<32x32xi32>
    %116 = arith.andi %113, %115 : vector<32x32xi1>
    %c4_i32_44 = arith.constant 4 : i32
    %117 = vector.broadcast %c4_i32_44 : i32 to vector<32x32xi32>
    %118 = arith.cmpi slt, %102, %117 : vector<32x32xi32>
    %119 = arith.andi %116, %118 : vector<32x32xi1>
    %cst_45 = arith.constant 0.000000e+00 : f32
    %120 = vector.broadcast %cst_45 : f32 to vector<32x32xf32>
    %121 = arith.select %119, %96, %120 : vector<32x32xi1>, vector<32x32xf32>
    %122 = arith.truncf %121 : vector<32x32xf32> to vector<32x32xbf16>
    %c2 = arith.constant 2 : index
    %c0_46 = arith.constant 0 : index
    %c0_47 = arith.constant 0 : index
    %123 = vector.load %arg4[%c2, %c0_46, %c0_47] : memref<27x32x64xbf16, #tpu.memory_space<vmem>>, vector<1x32x64xbf16>
    %124 = vector.shape_cast %123 : vector<1x32x64xbf16> to vector<32x64xbf16>
    %cst_48 = arith.constant dense<0.000000e+00> : vector<32x64xf32>
    %125 = tpu.matmul %122, %124, %cst_48 {dimension_numbers = #tpu.dot_dimension_numbers<[1], [0], [0], [1], [0, 0, 1, 1], [], []>} : vector<32x32xbf16>, vector<32x64xbf16>, vector<32x64xf32> -> vector<32x64xf32>
    %126 = arith.addf %95, %125 : vector<32x64xf32>
    %c17_i32 = arith.constant 17 : i32
    %127 = tpu.dynamic_rotate %23 by %c17_i32 dim 0 : vector<32x32xf32>, i32 -> vector<32x32xf32>
    %c-1_i32_49 = arith.constant -1 : i32
    %128 = vector.broadcast %c-1_i32_49 : i32 to vector<32x32xi32>
    %129 = arith.addi %26, %128 : vector<32x32xi32>
    %c0_i32_50 = arith.constant 0 : i32
    %130 = vector.broadcast %c0_i32_50 : i32 to vector<32x32xi32>
    %131 = arith.addi %30, %130 : vector<32x32xi32>
    %c-1_i32_51 = arith.constant -1 : i32
    %132 = vector.broadcast %c-1_i32_51 : i32 to vector<32x32xi32>
    %133 = arith.addi %32, %132 : vector<32x32xi32>
    %c0_i32_52 = arith.constant 0 : i32
    %134 = vector.broadcast %c0_i32_52 : i32 to vector<32x32xi32>
    %135 = arith.cmpi sge, %129, %134 : vector<32x32xi32>
    %c2_i32_53 = arith.constant 2 : i32
    %136 = vector.broadcast %c2_i32_53 : i32 to vector<32x32xi32>
    %137 = arith.cmpi slt, %129, %136 : vector<32x32xi32>
    %138 = arith.andi %135, %137 : vector<32x32xi1>
    %c0_i32_54 = arith.constant 0 : i32
    %139 = vector.broadcast %c0_i32_54 : i32 to vector<32x32xi32>
    %140 = arith.cmpi sge, %131, %139 : vector<32x32xi32>
    %141 = arith.andi %138, %140 : vector<32x32xi1>
    %c4_i32_55 = arith.constant 4 : i32
    %142 = vector.broadcast %c4_i32_55 : i32 to vector<32x32xi32>
    %143 = arith.cmpi slt, %131, %142 : vector<32x32xi32>
    %144 = arith.andi %141, %143 : vector<32x32xi1>
    %c0_i32_56 = arith.constant 0 : i32
    %145 = vector.broadcast %c0_i32_56 : i32 to vector<32x32xi32>
    %146 = arith.cmpi sge, %133, %145 : vector<32x32xi32>
    %147 = arith.andi %144, %146 : vector<32x32xi1>
    %c4_i32_57 = arith.constant 4 : i32
    %148 = vector.broadcast %c4_i32_57 : i32 to vector<32x32xi32>
    %149 = arith.cmpi slt, %133, %148 : vector<32x32xi32>
    %150 = arith.andi %147, %149 : vector<32x32xi1>
    %cst_58 = arith.constant 0.000000e+00 : f32
    %151 = vector.broadcast %cst_58 : f32 to vector<32x32xf32>
    %152 = arith.select %150, %127, %151 : vector<32x32xi1>, vector<32x32xf32>
    %153 = arith.truncf %152 : vector<32x32xf32> to vector<32x32xbf16>
    %c3 = arith.constant 3 : index
    %c0_59 = arith.constant 0 : index
    %c0_60 = arith.constant 0 : index
    %154 = vector.load %arg4[%c3, %c0_59, %c0_60] : memref<27x32x64xbf16, #tpu.memory_space<vmem>>, vector<1x32x64xbf16>
    %155 = vector.shape_cast %154 : vector<1x32x64xbf16> to vector<32x64xbf16>
    %cst_61 = arith.constant dense<0.000000e+00> : vector<32x64xf32>
    %156 = tpu.matmul %153, %155, %cst_61 {dimension_numbers = #tpu.dot_dimension_numbers<[1], [0], [0], [1], [0, 0, 1, 1], [], []>} : vector<32x32xbf16>, vector<32x64xbf16>, vector<32x64xf32> -> vector<32x64xf32>
    %157 = arith.addf %126, %156 : vector<32x64xf32>
    %c16_i32 = arith.constant 16 : i32
    %158 = tpu.dynamic_rotate %23 by %c16_i32 dim 0 : vector<32x32xf32>, i32 -> vector<32x32xf32>
    %c-1_i32_62 = arith.constant -1 : i32
    %159 = vector.broadcast %c-1_i32_62 : i32 to vector<32x32xi32>
    %160 = arith.addi %26, %159 : vector<32x32xi32>
    %c0_i32_63 = arith.constant 0 : i32
    %161 = vector.broadcast %c0_i32_63 : i32 to vector<32x32xi32>
    %162 = arith.addi %30, %161 : vector<32x32xi32>
    %c0_i32_64 = arith.constant 0 : i32
    %163 = vector.broadcast %c0_i32_64 : i32 to vector<32x32xi32>
    %164 = arith.addi %32, %163 : vector<32x32xi32>
    %c0_i32_65 = arith.constant 0 : i32
    %165 = vector.broadcast %c0_i32_65 : i32 to vector<32x32xi32>
    %166 = arith.cmpi sge, %160, %165 : vector<32x32xi32>
    %c2_i32_66 = arith.constant 2 : i32
    %167 = vector.broadcast %c2_i32_66 : i32 to vector<32x32xi32>
    %168 = arith.cmpi slt, %160, %167 : vector<32x32xi32>
    %169 = arith.andi %166, %168 : vector<32x32xi1>
    %c0_i32_67 = arith.constant 0 : i32
    %170 = vector.broadcast %c0_i32_67 : i32 to vector<32x32xi32>
    %171 = arith.cmpi sge, %162, %170 : vector<32x32xi32>
    %172 = arith.andi %169, %171 : vector<32x32xi1>
    %c4_i32_68 = arith.constant 4 : i32
    %173 = vector.broadcast %c4_i32_68 : i32 to vector<32x32xi32>
    %174 = arith.cmpi slt, %162, %173 : vector<32x32xi32>
    %175 = arith.andi %172, %174 : vector<32x32xi1>
    %c0_i32_69 = arith.constant 0 : i32
    %176 = vector.broadcast %c0_i32_69 : i32 to vector<32x32xi32>
    %177 = arith.cmpi sge, %164, %176 : vector<32x32xi32>
    %178 = arith.andi %175, %177 : vector<32x32xi1>
    %c4_i32_70 = arith.constant 4 : i32
    %179 = vector.broadcast %c4_i32_70 : i32 to vector<32x32xi32>
    %180 = arith.cmpi slt, %164, %179 : vector<32x32xi32>
    %181 = arith.andi %178, %180 : vector<32x32xi1>
    %cst_71 = arith.constant 0.000000e+00 : f32
    %182 = vector.broadcast %cst_71 : f32 to vector<32x32xf32>
    %183 = arith.select %181, %158, %182 : vector<32x32xi1>, vector<32x32xf32>
    %184 = arith.truncf %183 : vector<32x32xf32> to vector<32x32xbf16>
    %c4 = arith.constant 4 : index
    %c0_72 = arith.constant 0 : index
    %c0_73 = arith.constant 0 : index
    %185 = vector.load %arg4[%c4, %c0_72, %c0_73] : memref<27x32x64xbf16, #tpu.memory_space<vmem>>, vector<1x32x64xbf16>
    %186 = vector.shape_cast %185 : vector<1x32x64xbf16> to vector<32x64xbf16>
    %cst_74 = arith.constant dense<0.000000e+00> : vector<32x64xf32>
    %187 = tpu.matmul %184, %186, %cst_74 {dimension_numbers = #tpu.dot_dimension_numbers<[1], [0], [0], [1], [0, 0, 1, 1], [], []>} : vector<32x32xbf16>, vector<32x64xbf16>, vector<32x64xf32> -> vector<32x64xf32>
    %188 = arith.addf %157, %187 : vector<32x64xf32>
    %c15_i32 = arith.constant 15 : i32
    %189 = tpu.dynamic_rotate %23 by %c15_i32 dim 0 : vector<32x32xf32>, i32 -> vector<32x32xf32>
    %c-1_i32_75 = arith.constant -1 : i32
    %190 = vector.broadcast %c-1_i32_75 : i32 to vector<32x32xi32>
    %191 = arith.addi %26, %190 : vector<32x32xi32>
    %c0_i32_76 = arith.constant 0 : i32
    %192 = vector.broadcast %c0_i32_76 : i32 to vector<32x32xi32>
    %193 = arith.addi %30, %192 : vector<32x32xi32>
    %c1_i32_77 = arith.constant 1 : i32
    %194 = vector.broadcast %c1_i32_77 : i32 to vector<32x32xi32>
    %195 = arith.addi %32, %194 : vector<32x32xi32>
    %c0_i32_78 = arith.constant 0 : i32
    %196 = vector.broadcast %c0_i32_78 : i32 to vector<32x32xi32>
    %197 = arith.cmpi sge, %191, %196 : vector<32x32xi32>
    %c2_i32_79 = arith.constant 2 : i32
    %198 = vector.broadcast %c2_i32_79 : i32 to vector<32x32xi32>
    %199 = arith.cmpi slt, %191, %198 : vector<32x32xi32>
    %200 = arith.andi %197, %199 : vector<32x32xi1>
    %c0_i32_80 = arith.constant 0 : i32
    %201 = vector.broadcast %c0_i32_80 : i32 to vector<32x32xi32>
    %202 = arith.cmpi sge, %193, %201 : vector<32x32xi32>
    %203 = arith.andi %200, %202 : vector<32x32xi1>
    %c4_i32_81 = arith.constant 4 : i32
    %204 = vector.broadcast %c4_i32_81 : i32 to vector<32x32xi32>
    %205 = arith.cmpi slt, %193, %204 : vector<32x32xi32>
    %206 = arith.andi %203, %205 : vector<32x32xi1>
    %c0_i32_82 = arith.constant 0 : i32
    %207 = vector.broadcast %c0_i32_82 : i32 to vector<32x32xi32>
    %208 = arith.cmpi sge, %195, %207 : vector<32x32xi32>
    %209 = arith.andi %206, %208 : vector<32x32xi1>
    %c4_i32_83 = arith.constant 4 : i32
    %210 = vector.broadcast %c4_i32_83 : i32 to vector<32x32xi32>
    %211 = arith.cmpi slt, %195, %210 : vector<32x32xi32>
    %212 = arith.andi %209, %211 : vector<32x32xi1>
    %cst_84 = arith.constant 0.000000e+00 : f32
    %213 = vector.broadcast %cst_84 : f32 to vector<32x32xf32>
    %214 = arith.select %212, %189, %213 : vector<32x32xi1>, vector<32x32xf32>
    %215 = arith.truncf %214 : vector<32x32xf32> to vector<32x32xbf16>
    %c5 = arith.constant 5 : index
    %c0_85 = arith.constant 0 : index
    %c0_86 = arith.constant 0 : index
    %216 = vector.load %arg4[%c5, %c0_85, %c0_86] : memref<27x32x64xbf16, #tpu.memory_space<vmem>>, vector<1x32x64xbf16>
    %217 = vector.shape_cast %216 : vector<1x32x64xbf16> to vector<32x64xbf16>
    %cst_87 = arith.constant dense<0.000000e+00> : vector<32x64xf32>
    %218 = tpu.matmul %215, %217, %cst_87 {dimension_numbers = #tpu.dot_dimension_numbers<[1], [0], [0], [1], [0, 0, 1, 1], [], []>} : vector<32x32xbf16>, vector<32x64xbf16>, vector<32x64xf32> -> vector<32x64xf32>
    %219 = arith.addf %188, %218 : vector<32x64xf32>
    %c13_i32 = arith.constant 13 : i32
    %220 = tpu.dynamic_rotate %23 by %c13_i32 dim 0 : vector<32x32xf32>, i32 -> vector<32x32xf32>
    %c-1_i32_88 = arith.constant -1 : i32
    %221 = vector.broadcast %c-1_i32_88 : i32 to vector<32x32xi32>
    %222 = arith.addi %26, %221 : vector<32x32xi32>
    %c1_i32_89 = arith.constant 1 : i32
    %223 = vector.broadcast %c1_i32_89 : i32 to vector<32x32xi32>
    %224 = arith.addi %30, %223 : vector<32x32xi32>
    %c-1_i32_90 = arith.constant -1 : i32
    %225 = vector.broadcast %c-1_i32_90 : i32 to vector<32x32xi32>
    %226 = arith.addi %32, %225 : vector<32x32xi32>
    %c0_i32_91 = arith.constant 0 : i32
    %227 = vector.broadcast %c0_i32_91 : i32 to vector<32x32xi32>
    %228 = arith.cmpi sge, %222, %227 : vector<32x32xi32>
    %c2_i32_92 = arith.constant 2 : i32
    %229 = vector.broadcast %c2_i32_92 : i32 to vector<32x32xi32>
    %230 = arith.cmpi slt, %222, %229 : vector<32x32xi32>
    %231 = arith.andi %228, %230 : vector<32x32xi1>
    %c0_i32_93 = arith.constant 0 : i32
    %232 = vector.broadcast %c0_i32_93 : i32 to vector<32x32xi32>
    %233 = arith.cmpi sge, %224, %232 : vector<32x32xi32>
    %234 = arith.andi %231, %233 : vector<32x32xi1>
    %c4_i32_94 = arith.constant 4 : i32
    %235 = vector.broadcast %c4_i32_94 : i32 to vector<32x32xi32>
    %236 = arith.cmpi slt, %224, %235 : vector<32x32xi32>
    %237 = arith.andi %234, %236 : vector<32x32xi1>
    %c0_i32_95 = arith.constant 0 : i32
    %238 = vector.broadcast %c0_i32_95 : i32 to vector<32x32xi32>
    %239 = arith.cmpi sge, %226, %238 : vector<32x32xi32>
    %240 = arith.andi %237, %239 : vector<32x32xi1>
    %c4_i32_96 = arith.constant 4 : i32
    %241 = vector.broadcast %c4_i32_96 : i32 to vector<32x32xi32>
    %242 = arith.cmpi slt, %226, %241 : vector<32x32xi32>
    %243 = arith.andi %240, %242 : vector<32x32xi1>
    %cst_97 = arith.constant 0.000000e+00 : f32
    %244 = vector.broadcast %cst_97 : f32 to vector<32x32xf32>
    %245 = arith.select %243, %220, %244 : vector<32x32xi1>, vector<32x32xf32>
    %246 = arith.truncf %245 : vector<32x32xf32> to vector<32x32xbf16>
    %c6 = arith.constant 6 : index
    %c0_98 = arith.constant 0 : index
    %c0_99 = arith.constant 0 : index
    %247 = vector.load %arg4[%c6, %c0_98, %c0_99] : memref<27x32x64xbf16, #tpu.memory_space<vmem>>, vector<1x32x64xbf16>
    %248 = vector.shape_cast %247 : vector<1x32x64xbf16> to vector<32x64xbf16>
    %cst_100 = arith.constant dense<0.000000e+00> : vector<32x64xf32>
    %249 = tpu.matmul %246, %248, %cst_100 {dimension_numbers = #tpu.dot_dimension_numbers<[1], [0], [0], [1], [0, 0, 1, 1], [], []>} : vector<32x32xbf16>, vector<32x64xbf16>, vector<32x64xf32> -> vector<32x64xf32>
    %250 = arith.addf %219, %249 : vector<32x64xf32>
    %c12_i32 = arith.constant 12 : i32
    %251 = tpu.dynamic_rotate %23 by %c12_i32 dim 0 : vector<32x32xf32>, i32 -> vector<32x32xf32>
    %c-1_i32_101 = arith.constant -1 : i32
    %252 = vector.broadcast %c-1_i32_101 : i32 to vector<32x32xi32>
    %253 = arith.addi %26, %252 : vector<32x32xi32>
    %c1_i32_102 = arith.constant 1 : i32
    %254 = vector.broadcast %c1_i32_102 : i32 to vector<32x32xi32>
    %255 = arith.addi %30, %254 : vector<32x32xi32>
    %c0_i32_103 = arith.constant 0 : i32
    %256 = vector.broadcast %c0_i32_103 : i32 to vector<32x32xi32>
    %257 = arith.addi %32, %256 : vector<32x32xi32>
    %c0_i32_104 = arith.constant 0 : i32
    %258 = vector.broadcast %c0_i32_104 : i32 to vector<32x32xi32>
    %259 = arith.cmpi sge, %253, %258 : vector<32x32xi32>
    %c2_i32_105 = arith.constant 2 : i32
    %260 = vector.broadcast %c2_i32_105 : i32 to vector<32x32xi32>
    %261 = arith.cmpi slt, %253, %260 : vector<32x32xi32>
    %262 = arith.andi %259, %261 : vector<32x32xi1>
    %c0_i32_106 = arith.constant 0 : i32
    %263 = vector.broadcast %c0_i32_106 : i32 to vector<32x32xi32>
    %264 = arith.cmpi sge, %255, %263 : vector<32x32xi32>
    %265 = arith.andi %262, %264 : vector<32x32xi1>
    %c4_i32_107 = arith.constant 4 : i32
    %266 = vector.broadcast %c4_i32_107 : i32 to vector<32x32xi32>
    %267 = arith.cmpi slt, %255, %266 : vector<32x32xi32>
    %268 = arith.andi %265, %267 : vector<32x32xi1>
    %c0_i32_108 = arith.constant 0 : i32
    %269 = vector.broadcast %c0_i32_108 : i32 to vector<32x32xi32>
    %270 = arith.cmpi sge, %257, %269 : vector<32x32xi32>
    %271 = arith.andi %268, %270 : vector<32x32xi1>
    %c4_i32_109 = arith.constant 4 : i32
    %272 = vector.broadcast %c4_i32_109 : i32 to vector<32x32xi32>
    %273 = arith.cmpi slt, %257, %272 : vector<32x32xi32>
    %274 = arith.andi %271, %273 : vector<32x32xi1>
    %cst_110 = arith.constant 0.000000e+00 : f32
    %275 = vector.broadcast %cst_110 : f32 to vector<32x32xf32>
    %276 = arith.select %274, %251, %275 : vector<32x32xi1>, vector<32x32xf32>
    %277 = arith.truncf %276 : vector<32x32xf32> to vector<32x32xbf16>
    %c7 = arith.constant 7 : index
    %c0_111 = arith.constant 0 : index
    %c0_112 = arith.constant 0 : index
    %278 = vector.load %arg4[%c7, %c0_111, %c0_112] : memref<27x32x64xbf16, #tpu.memory_space<vmem>>, vector<1x32x64xbf16>
    %279 = vector.shape_cast %278 : vector<1x32x64xbf16> to vector<32x64xbf16>
    %cst_113 = arith.constant dense<0.000000e+00> : vector<32x64xf32>
    %280 = tpu.matmul %277, %279, %cst_113 {dimension_numbers = #tpu.dot_dimension_numbers<[1], [0], [0], [1], [0, 0, 1, 1], [], []>} : vector<32x32xbf16>, vector<32x64xbf16>, vector<32x64xf32> -> vector<32x64xf32>
    %281 = arith.addf %250, %280 : vector<32x64xf32>
    %c11_i32 = arith.constant 11 : i32
    %282 = tpu.dynamic_rotate %23 by %c11_i32 dim 0 : vector<32x32xf32>, i32 -> vector<32x32xf32>
    %c-1_i32_114 = arith.constant -1 : i32
    %283 = vector.broadcast %c-1_i32_114 : i32 to vector<32x32xi32>
    %284 = arith.addi %26, %283 : vector<32x32xi32>
    %c1_i32_115 = arith.constant 1 : i32
    %285 = vector.broadcast %c1_i32_115 : i32 to vector<32x32xi32>
    %286 = arith.addi %30, %285 : vector<32x32xi32>
    %c1_i32_116 = arith.constant 1 : i32
    %287 = vector.broadcast %c1_i32_116 : i32 to vector<32x32xi32>
    %288 = arith.addi %32, %287 : vector<32x32xi32>
    %c0_i32_117 = arith.constant 0 : i32
    %289 = vector.broadcast %c0_i32_117 : i32 to vector<32x32xi32>
    %290 = arith.cmpi sge, %284, %289 : vector<32x32xi32>
    %c2_i32_118 = arith.constant 2 : i32
    %291 = vector.broadcast %c2_i32_118 : i32 to vector<32x32xi32>
    %292 = arith.cmpi slt, %284, %291 : vector<32x32xi32>
    %293 = arith.andi %290, %292 : vector<32x32xi1>
    %c0_i32_119 = arith.constant 0 : i32
    %294 = vector.broadcast %c0_i32_119 : i32 to vector<32x32xi32>
    %295 = arith.cmpi sge, %286, %294 : vector<32x32xi32>
    %296 = arith.andi %293, %295 : vector<32x32xi1>
    %c4_i32_120 = arith.constant 4 : i32
    %297 = vector.broadcast %c4_i32_120 : i32 to vector<32x32xi32>
    %298 = arith.cmpi slt, %286, %297 : vector<32x32xi32>
    %299 = arith.andi %296, %298 : vector<32x32xi1>
    %c0_i32_121 = arith.constant 0 : i32
    %300 = vector.broadcast %c0_i32_121 : i32 to vector<32x32xi32>
    %301 = arith.cmpi sge, %288, %300 : vector<32x32xi32>
    %302 = arith.andi %299, %301 : vector<32x32xi1>
    %c4_i32_122 = arith.constant 4 : i32
    %303 = vector.broadcast %c4_i32_122 : i32 to vector<32x32xi32>
    %304 = arith.cmpi slt, %288, %303 : vector<32x32xi32>
    %305 = arith.andi %302, %304 : vector<32x32xi1>
    %cst_123 = arith.constant 0.000000e+00 : f32
    %306 = vector.broadcast %cst_123 : f32 to vector<32x32xf32>
    %307 = arith.select %305, %282, %306 : vector<32x32xi1>, vector<32x32xf32>
    %308 = arith.truncf %307 : vector<32x32xf32> to vector<32x32xbf16>
    %c8 = arith.constant 8 : index
    %c0_124 = arith.constant 0 : index
    %c0_125 = arith.constant 0 : index
    %309 = vector.load %arg4[%c8, %c0_124, %c0_125] : memref<27x32x64xbf16, #tpu.memory_space<vmem>>, vector<1x32x64xbf16>
    %310 = vector.shape_cast %309 : vector<1x32x64xbf16> to vector<32x64xbf16>
    %cst_126 = arith.constant dense<0.000000e+00> : vector<32x64xf32>
    %311 = tpu.matmul %308, %310, %cst_126 {dimension_numbers = #tpu.dot_dimension_numbers<[1], [0], [0], [1], [0, 0, 1, 1], [], []>} : vector<32x32xbf16>, vector<32x64xbf16>, vector<32x64xf32> -> vector<32x64xf32>
    %312 = arith.addf %281, %311 : vector<32x64xf32>
    %c5_i32 = arith.constant 5 : i32
    %313 = tpu.dynamic_rotate %23 by %c5_i32 dim 0 : vector<32x32xf32>, i32 -> vector<32x32xf32>
    %c0_i32_127 = arith.constant 0 : i32
    %314 = vector.broadcast %c0_i32_127 : i32 to vector<32x32xi32>
    %315 = arith.addi %26, %314 : vector<32x32xi32>
    %c-1_i32_128 = arith.constant -1 : i32
    %316 = vector.broadcast %c-1_i32_128 : i32 to vector<32x32xi32>
    %317 = arith.addi %30, %316 : vector<32x32xi32>
    %c-1_i32_129 = arith.constant -1 : i32
    %318 = vector.broadcast %c-1_i32_129 : i32 to vector<32x32xi32>
    %319 = arith.addi %32, %318 : vector<32x32xi32>
    %c0_i32_130 = arith.constant 0 : i32
    %320 = vector.broadcast %c0_i32_130 : i32 to vector<32x32xi32>
    %321 = arith.cmpi sge, %315, %320 : vector<32x32xi32>
    %c2_i32_131 = arith.constant 2 : i32
    %322 = vector.broadcast %c2_i32_131 : i32 to vector<32x32xi32>
    %323 = arith.cmpi slt, %315, %322 : vector<32x32xi32>
    %324 = arith.andi %321, %323 : vector<32x32xi1>
    %c0_i32_132 = arith.constant 0 : i32
    %325 = vector.broadcast %c0_i32_132 : i32 to vector<32x32xi32>
    %326 = arith.cmpi sge, %317, %325 : vector<32x32xi32>
    %327 = arith.andi %324, %326 : vector<32x32xi1>
    %c4_i32_133 = arith.constant 4 : i32
    %328 = vector.broadcast %c4_i32_133 : i32 to vector<32x32xi32>
    %329 = arith.cmpi slt, %317, %328 : vector<32x32xi32>
    %330 = arith.andi %327, %329 : vector<32x32xi1>
    %c0_i32_134 = arith.constant 0 : i32
    %331 = vector.broadcast %c0_i32_134 : i32 to vector<32x32xi32>
    %332 = arith.cmpi sge, %319, %331 : vector<32x32xi32>
    %333 = arith.andi %330, %332 : vector<32x32xi1>
    %c4_i32_135 = arith.constant 4 : i32
    %334 = vector.broadcast %c4_i32_135 : i32 to vector<32x32xi32>
    %335 = arith.cmpi slt, %319, %334 : vector<32x32xi32>
    %336 = arith.andi %333, %335 : vector<32x32xi1>
    %cst_136 = arith.constant 0.000000e+00 : f32
    %337 = vector.broadcast %cst_136 : f32 to vector<32x32xf32>
    %338 = arith.select %336, %313, %337 : vector<32x32xi1>, vector<32x32xf32>
    %339 = arith.truncf %338 : vector<32x32xf32> to vector<32x32xbf16>
    %c9 = arith.constant 9 : index
    %c0_137 = arith.constant 0 : index
    %c0_138 = arith.constant 0 : index
    %340 = vector.load %arg4[%c9, %c0_137, %c0_138] : memref<27x32x64xbf16, #tpu.memory_space<vmem>>, vector<1x32x64xbf16>
    %341 = vector.shape_cast %340 : vector<1x32x64xbf16> to vector<32x64xbf16>
    %cst_139 = arith.constant dense<0.000000e+00> : vector<32x64xf32>
    %342 = tpu.matmul %339, %341, %cst_139 {dimension_numbers = #tpu.dot_dimension_numbers<[1], [0], [0], [1], [0, 0, 1, 1], [], []>} : vector<32x32xbf16>, vector<32x64xbf16>, vector<32x64xf32> -> vector<32x64xf32>
    %343 = arith.addf %312, %342 : vector<32x64xf32>
    %c4_i32_140 = arith.constant 4 : i32
    %344 = tpu.dynamic_rotate %23 by %c4_i32_140 dim 0 : vector<32x32xf32>, i32 -> vector<32x32xf32>
    %c0_i32_141 = arith.constant 0 : i32
    %345 = vector.broadcast %c0_i32_141 : i32 to vector<32x32xi32>
    %346 = arith.addi %26, %345 : vector<32x32xi32>
    %c-1_i32_142 = arith.constant -1 : i32
    %347 = vector.broadcast %c-1_i32_142 : i32 to vector<32x32xi32>
    %348 = arith.addi %30, %347 : vector<32x32xi32>
    %c0_i32_143 = arith.constant 0 : i32
    %349 = vector.broadcast %c0_i32_143 : i32 to vector<32x32xi32>
    %350 = arith.addi %32, %349 : vector<32x32xi32>
    %c0_i32_144 = arith.constant 0 : i32
    %351 = vector.broadcast %c0_i32_144 : i32 to vector<32x32xi32>
    %352 = arith.cmpi sge, %346, %351 : vector<32x32xi32>
    %c2_i32_145 = arith.constant 2 : i32
    %353 = vector.broadcast %c2_i32_145 : i32 to vector<32x32xi32>
    %354 = arith.cmpi slt, %346, %353 : vector<32x32xi32>
    %355 = arith.andi %352, %354 : vector<32x32xi1>
    %c0_i32_146 = arith.constant 0 : i32
    %356 = vector.broadcast %c0_i32_146 : i32 to vector<32x32xi32>
    %357 = arith.cmpi sge, %348, %356 : vector<32x32xi32>
    %358 = arith.andi %355, %357 : vector<32x32xi1>
    %c4_i32_147 = arith.constant 4 : i32
    %359 = vector.broadcast %c4_i32_147 : i32 to vector<32x32xi32>
    %360 = arith.cmpi slt, %348, %359 : vector<32x32xi32>
    %361 = arith.andi %358, %360 : vector<32x32xi1>
    %c0_i32_148 = arith.constant 0 : i32
    %362 = vector.broadcast %c0_i32_148 : i32 to vector<32x32xi32>
    %363 = arith.cmpi sge, %350, %362 : vector<32x32xi32>
    %364 = arith.andi %361, %363 : vector<32x32xi1>
    %c4_i32_149 = arith.constant 4 : i32
    %365 = vector.broadcast %c4_i32_149 : i32 to vector<32x32xi32>
    %366 = arith.cmpi slt, %350, %365 : vector<32x32xi32>
    %367 = arith.andi %364, %366 : vector<32x32xi1>
    %cst_150 = arith.constant 0.000000e+00 : f32
    %368 = vector.broadcast %cst_150 : f32 to vector<32x32xf32>
    %369 = arith.select %367, %344, %368 : vector<32x32xi1>, vector<32x32xf32>
    %370 = arith.truncf %369 : vector<32x32xf32> to vector<32x32xbf16>
    %c10 = arith.constant 10 : index
    %c0_151 = arith.constant 0 : index
    %c0_152 = arith.constant 0 : index
    %371 = vector.load %arg4[%c10, %c0_151, %c0_152] : memref<27x32x64xbf16, #tpu.memory_space<vmem>>, vector<1x32x64xbf16>
    %372 = vector.shape_cast %371 : vector<1x32x64xbf16> to vector<32x64xbf16>
    %cst_153 = arith.constant dense<0.000000e+00> : vector<32x64xf32>
    %373 = tpu.matmul %370, %372, %cst_153 {dimension_numbers = #tpu.dot_dimension_numbers<[1], [0], [0], [1], [0, 0, 1, 1], [], []>} : vector<32x32xbf16>, vector<32x64xbf16>, vector<32x64xf32> -> vector<32x64xf32>
    %374 = arith.addf %343, %373 : vector<32x64xf32>
    %c3_i32_154 = arith.constant 3 : i32
    %375 = tpu.dynamic_rotate %23 by %c3_i32_154 dim 0 : vector<32x32xf32>, i32 -> vector<32x32xf32>
    %c0_i32_155 = arith.constant 0 : i32
    %376 = vector.broadcast %c0_i32_155 : i32 to vector<32x32xi32>
    %377 = arith.addi %26, %376 : vector<32x32xi32>
    %c-1_i32_156 = arith.constant -1 : i32
    %378 = vector.broadcast %c-1_i32_156 : i32 to vector<32x32xi32>
    %379 = arith.addi %30, %378 : vector<32x32xi32>
    %c1_i32_157 = arith.constant 1 : i32
    %380 = vector.broadcast %c1_i32_157 : i32 to vector<32x32xi32>
    %381 = arith.addi %32, %380 : vector<32x32xi32>
    %c0_i32_158 = arith.constant 0 : i32
    %382 = vector.broadcast %c0_i32_158 : i32 to vector<32x32xi32>
    %383 = arith.cmpi sge, %377, %382 : vector<32x32xi32>
    %c2_i32_159 = arith.constant 2 : i32
    %384 = vector.broadcast %c2_i32_159 : i32 to vector<32x32xi32>
    %385 = arith.cmpi slt, %377, %384 : vector<32x32xi32>
    %386 = arith.andi %383, %385 : vector<32x32xi1>
    %c0_i32_160 = arith.constant 0 : i32
    %387 = vector.broadcast %c0_i32_160 : i32 to vector<32x32xi32>
    %388 = arith.cmpi sge, %379, %387 : vector<32x32xi32>
    %389 = arith.andi %386, %388 : vector<32x32xi1>
    %c4_i32_161 = arith.constant 4 : i32
    %390 = vector.broadcast %c4_i32_161 : i32 to vector<32x32xi32>
    %391 = arith.cmpi slt, %379, %390 : vector<32x32xi32>
    %392 = arith.andi %389, %391 : vector<32x32xi1>
    %c0_i32_162 = arith.constant 0 : i32
    %393 = vector.broadcast %c0_i32_162 : i32 to vector<32x32xi32>
    %394 = arith.cmpi sge, %381, %393 : vector<32x32xi32>
    %395 = arith.andi %392, %394 : vector<32x32xi1>
    %c4_i32_163 = arith.constant 4 : i32
    %396 = vector.broadcast %c4_i32_163 : i32 to vector<32x32xi32>
    %397 = arith.cmpi slt, %381, %396 : vector<32x32xi32>
    %398 = arith.andi %395, %397 : vector<32x32xi1>
    %cst_164 = arith.constant 0.000000e+00 : f32
    %399 = vector.broadcast %cst_164 : f32 to vector<32x32xf32>
    %400 = arith.select %398, %375, %399 : vector<32x32xi1>, vector<32x32xf32>
    %401 = arith.truncf %400 : vector<32x32xf32> to vector<32x32xbf16>
    %c11 = arith.constant 11 : index
    %c0_165 = arith.constant 0 : index
    %c0_166 = arith.constant 0 : index
    %402 = vector.load %arg4[%c11, %c0_165, %c0_166] : memref<27x32x64xbf16, #tpu.memory_space<vmem>>, vector<1x32x64xbf16>
    %403 = vector.shape_cast %402 : vector<1x32x64xbf16> to vector<32x64xbf16>
    %cst_167 = arith.constant dense<0.000000e+00> : vector<32x64xf32>
    %404 = tpu.matmul %401, %403, %cst_167 {dimension_numbers = #tpu.dot_dimension_numbers<[1], [0], [0], [1], [0, 0, 1, 1], [], []>} : vector<32x32xbf16>, vector<32x64xbf16>, vector<32x64xf32> -> vector<32x64xf32>
    %405 = arith.addf %374, %404 : vector<32x64xf32>
    %c1_i32_168 = arith.constant 1 : i32
    %406 = tpu.dynamic_rotate %23 by %c1_i32_168 dim 0 : vector<32x32xf32>, i32 -> vector<32x32xf32>
    %c0_i32_169 = arith.constant 0 : i32
    %407 = vector.broadcast %c0_i32_169 : i32 to vector<32x32xi32>
    %408 = arith.addi %26, %407 : vector<32x32xi32>
    %c0_i32_170 = arith.constant 0 : i32
    %409 = vector.broadcast %c0_i32_170 : i32 to vector<32x32xi32>
    %410 = arith.addi %30, %409 : vector<32x32xi32>
    %c-1_i32_171 = arith.constant -1 : i32
    %411 = vector.broadcast %c-1_i32_171 : i32 to vector<32x32xi32>
    %412 = arith.addi %32, %411 : vector<32x32xi32>
    %c0_i32_172 = arith.constant 0 : i32
    %413 = vector.broadcast %c0_i32_172 : i32 to vector<32x32xi32>
    %414 = arith.cmpi sge, %408, %413 : vector<32x32xi32>
    %c2_i32_173 = arith.constant 2 : i32
    %415 = vector.broadcast %c2_i32_173 : i32 to vector<32x32xi32>
    %416 = arith.cmpi slt, %408, %415 : vector<32x32xi32>
    %417 = arith.andi %414, %416 : vector<32x32xi1>
    %c0_i32_174 = arith.constant 0 : i32
    %418 = vector.broadcast %c0_i32_174 : i32 to vector<32x32xi32>
    %419 = arith.cmpi sge, %410, %418 : vector<32x32xi32>
    %420 = arith.andi %417, %419 : vector<32x32xi1>
    %c4_i32_175 = arith.constant 4 : i32
    %421 = vector.broadcast %c4_i32_175 : i32 to vector<32x32xi32>
    %422 = arith.cmpi slt, %410, %421 : vector<32x32xi32>
    %423 = arith.andi %420, %422 : vector<32x32xi1>
    %c0_i32_176 = arith.constant 0 : i32
    %424 = vector.broadcast %c0_i32_176 : i32 to vector<32x32xi32>
    %425 = arith.cmpi sge, %412, %424 : vector<32x32xi32>
    %426 = arith.andi %423, %425 : vector<32x32xi1>
    %c4_i32_177 = arith.constant 4 : i32
    %427 = vector.broadcast %c4_i32_177 : i32 to vector<32x32xi32>
    %428 = arith.cmpi slt, %412, %427 : vector<32x32xi32>
    %429 = arith.andi %426, %428 : vector<32x32xi1>
    %cst_178 = arith.constant 0.000000e+00 : f32
    %430 = vector.broadcast %cst_178 : f32 to vector<32x32xf32>
    %431 = arith.select %429, %406, %430 : vector<32x32xi1>, vector<32x32xf32>
    %432 = arith.truncf %431 : vector<32x32xf32> to vector<32x32xbf16>
    %c12 = arith.constant 12 : index
    %c0_179 = arith.constant 0 : index
    %c0_180 = arith.constant 0 : index
    %433 = vector.load %arg4[%c12, %c0_179, %c0_180] : memref<27x32x64xbf16, #tpu.memory_space<vmem>>, vector<1x32x64xbf16>
    %434 = vector.shape_cast %433 : vector<1x32x64xbf16> to vector<32x64xbf16>
    %cst_181 = arith.constant dense<0.000000e+00> : vector<32x64xf32>
    %435 = tpu.matmul %432, %434, %cst_181 {dimension_numbers = #tpu.dot_dimension_numbers<[1], [0], [0], [1], [0, 0, 1, 1], [], []>} : vector<32x32xbf16>, vector<32x64xbf16>, vector<32x64xf32> -> vector<32x64xf32>
    %436 = arith.addf %405, %435 : vector<32x64xf32>
    %437 = arith.truncf %23 : vector<32x32xf32> to vector<32x32xbf16>
    %c13 = arith.constant 13 : index
    %c0_182 = arith.constant 0 : index
    %c0_183 = arith.constant 0 : index
    %438 = vector.load %arg4[%c13, %c0_182, %c0_183] : memref<27x32x64xbf16, #tpu.memory_space<vmem>>, vector<1x32x64xbf16>
    %439 = vector.shape_cast %438 : vector<1x32x64xbf16> to vector<32x64xbf16>
    %cst_184 = arith.constant dense<0.000000e+00> : vector<32x64xf32>
    %440 = tpu.matmul %437, %439, %cst_184 {dimension_numbers = #tpu.dot_dimension_numbers<[1], [0], [0], [1], [0, 0, 1, 1], [], []>} : vector<32x32xbf16>, vector<32x64xbf16>, vector<32x64xf32> -> vector<32x64xf32>
    %441 = arith.addf %436, %440 : vector<32x64xf32>
    %c31_i32 = arith.constant 31 : i32
    %442 = tpu.dynamic_rotate %23 by %c31_i32 dim 0 : vector<32x32xf32>, i32 -> vector<32x32xf32>
    %c0_i32_185 = arith.constant 0 : i32
    %443 = vector.broadcast %c0_i32_185 : i32 to vector<32x32xi32>
    %444 = arith.addi %26, %443 : vector<32x32xi32>
    %c0_i32_186 = arith.constant 0 : i32
    %445 = vector.broadcast %c0_i32_186 : i32 to vector<32x32xi32>
    %446 = arith.addi %30, %445 : vector<32x32xi32>
    %c1_i32_187 = arith.constant 1 : i32
    %447 = vector.broadcast %c1_i32_187 : i32 to vector<32x32xi32>
    %448 = arith.addi %32, %447 : vector<32x32xi32>
    %c0_i32_188 = arith.constant 0 : i32
    %449 = vector.broadcast %c0_i32_188 : i32 to vector<32x32xi32>
    %450 = arith.cmpi sge, %444, %449 : vector<32x32xi32>
    %c2_i32_189 = arith.constant 2 : i32
    %451 = vector.broadcast %c2_i32_189 : i32 to vector<32x32xi32>
    %452 = arith.cmpi slt, %444, %451 : vector<32x32xi32>
    %453 = arith.andi %450, %452 : vector<32x32xi1>
    %c0_i32_190 = arith.constant 0 : i32
    %454 = vector.broadcast %c0_i32_190 : i32 to vector<32x32xi32>
    %455 = arith.cmpi sge, %446, %454 : vector<32x32xi32>
    %456 = arith.andi %453, %455 : vector<32x32xi1>
    %c4_i32_191 = arith.constant 4 : i32
    %457 = vector.broadcast %c4_i32_191 : i32 to vector<32x32xi32>
    %458 = arith.cmpi slt, %446, %457 : vector<32x32xi32>
    %459 = arith.andi %456, %458 : vector<32x32xi1>
    %c0_i32_192 = arith.constant 0 : i32
    %460 = vector.broadcast %c0_i32_192 : i32 to vector<32x32xi32>
    %461 = arith.cmpi sge, %448, %460 : vector<32x32xi32>
    %462 = arith.andi %459, %461 : vector<32x32xi1>
    %c4_i32_193 = arith.constant 4 : i32
    %463 = vector.broadcast %c4_i32_193 : i32 to vector<32x32xi32>
    %464 = arith.cmpi slt, %448, %463 : vector<32x32xi32>
    %465 = arith.andi %462, %464 : vector<32x32xi1>
    %cst_194 = arith.constant 0.000000e+00 : f32
    %466 = vector.broadcast %cst_194 : f32 to vector<32x32xf32>
    %467 = arith.select %465, %442, %466 : vector<32x32xi1>, vector<32x32xf32>
    %468 = arith.truncf %467 : vector<32x32xf32> to vector<32x32xbf16>
    %c14 = arith.constant 14 : index
    %c0_195 = arith.constant 0 : index
    %c0_196 = arith.constant 0 : index
    %469 = vector.load %arg4[%c14, %c0_195, %c0_196] : memref<27x32x64xbf16, #tpu.memory_space<vmem>>, vector<1x32x64xbf16>
    %470 = vector.shape_cast %469 : vector<1x32x64xbf16> to vector<32x64xbf16>
    %cst_197 = arith.constant dense<0.000000e+00> : vector<32x64xf32>
    %471 = tpu.matmul %468, %470, %cst_197 {dimension_numbers = #tpu.dot_dimension_numbers<[1], [0], [0], [1], [0, 0, 1, 1], [], []>} : vector<32x32xbf16>, vector<32x64xbf16>, vector<32x64xf32> -> vector<32x64xf32>
    %472 = arith.addf %441, %471 : vector<32x64xf32>
    %c29_i32 = arith.constant 29 : i32
    %473 = tpu.dynamic_rotate %23 by %c29_i32 dim 0 : vector<32x32xf32>, i32 -> vector<32x32xf32>
    %c0_i32_198 = arith.constant 0 : i32
    %474 = vector.broadcast %c0_i32_198 : i32 to vector<32x32xi32>
    %475 = arith.addi %26, %474 : vector<32x32xi32>
    %c1_i32_199 = arith.constant 1 : i32
    %476 = vector.broadcast %c1_i32_199 : i32 to vector<32x32xi32>
    %477 = arith.addi %30, %476 : vector<32x32xi32>
    %c-1_i32_200 = arith.constant -1 : i32
    %478 = vector.broadcast %c-1_i32_200 : i32 to vector<32x32xi32>
    %479 = arith.addi %32, %478 : vector<32x32xi32>
    %c0_i32_201 = arith.constant 0 : i32
    %480 = vector.broadcast %c0_i32_201 : i32 to vector<32x32xi32>
    %481 = arith.cmpi sge, %475, %480 : vector<32x32xi32>
    %c2_i32_202 = arith.constant 2 : i32
    %482 = vector.broadcast %c2_i32_202 : i32 to vector<32x32xi32>
    %483 = arith.cmpi slt, %475, %482 : vector<32x32xi32>
    %484 = arith.andi %481, %483 : vector<32x32xi1>
    %c0_i32_203 = arith.constant 0 : i32
    %485 = vector.broadcast %c0_i32_203 : i32 to vector<32x32xi32>
    %486 = arith.cmpi sge, %477, %485 : vector<32x32xi32>
    %487 = arith.andi %484, %486 : vector<32x32xi1>
    %c4_i32_204 = arith.constant 4 : i32
    %488 = vector.broadcast %c4_i32_204 : i32 to vector<32x32xi32>
    %489 = arith.cmpi slt, %477, %488 : vector<32x32xi32>
    %490 = arith.andi %487, %489 : vector<32x32xi1>
    %c0_i32_205 = arith.constant 0 : i32
    %491 = vector.broadcast %c0_i32_205 : i32 to vector<32x32xi32>
    %492 = arith.cmpi sge, %479, %491 : vector<32x32xi32>
    %493 = arith.andi %490, %492 : vector<32x32xi1>
    %c4_i32_206 = arith.constant 4 : i32
    %494 = vector.broadcast %c4_i32_206 : i32 to vector<32x32xi32>
    %495 = arith.cmpi slt, %479, %494 : vector<32x32xi32>
    %496 = arith.andi %493, %495 : vector<32x32xi1>
    %cst_207 = arith.constant 0.000000e+00 : f32
    %497 = vector.broadcast %cst_207 : f32 to vector<32x32xf32>
    %498 = arith.select %496, %473, %497 : vector<32x32xi1>, vector<32x32xf32>
    %499 = arith.truncf %498 : vector<32x32xf32> to vector<32x32xbf16>
    %c15 = arith.constant 15 : index
    %c0_208 = arith.constant 0 : index
    %c0_209 = arith.constant 0 : index
    %500 = vector.load %arg4[%c15, %c0_208, %c0_209] : memref<27x32x64xbf16, #tpu.memory_space<vmem>>, vector<1x32x64xbf16>
    %501 = vector.shape_cast %500 : vector<1x32x64xbf16> to vector<32x64xbf16>
    %cst_210 = arith.constant dense<0.000000e+00> : vector<32x64xf32>
    %502 = tpu.matmul %499, %501, %cst_210 {dimension_numbers = #tpu.dot_dimension_numbers<[1], [0], [0], [1], [0, 0, 1, 1], [], []>} : vector<32x32xbf16>, vector<32x64xbf16>, vector<32x64xf32> -> vector<32x64xf32>
    %503 = arith.addf %472, %502 : vector<32x64xf32>
    %c28_i32 = arith.constant 28 : i32
    %504 = tpu.dynamic_rotate %23 by %c28_i32 dim 0 : vector<32x32xf32>, i32 -> vector<32x32xf32>
    %c0_i32_211 = arith.constant 0 : i32
    %505 = vector.broadcast %c0_i32_211 : i32 to vector<32x32xi32>
    %506 = arith.addi %26, %505 : vector<32x32xi32>
    %c1_i32_212 = arith.constant 1 : i32
    %507 = vector.broadcast %c1_i32_212 : i32 to vector<32x32xi32>
    %508 = arith.addi %30, %507 : vector<32x32xi32>
    %c0_i32_213 = arith.constant 0 : i32
    %509 = vector.broadcast %c0_i32_213 : i32 to vector<32x32xi32>
    %510 = arith.addi %32, %509 : vector<32x32xi32>
    %c0_i32_214 = arith.constant 0 : i32
    %511 = vector.broadcast %c0_i32_214 : i32 to vector<32x32xi32>
    %512 = arith.cmpi sge, %506, %511 : vector<32x32xi32>
    %c2_i32_215 = arith.constant 2 : i32
    %513 = vector.broadcast %c2_i32_215 : i32 to vector<32x32xi32>
    %514 = arith.cmpi slt, %506, %513 : vector<32x32xi32>
    %515 = arith.andi %512, %514 : vector<32x32xi1>
    %c0_i32_216 = arith.constant 0 : i32
    %516 = vector.broadcast %c0_i32_216 : i32 to vector<32x32xi32>
    %517 = arith.cmpi sge, %508, %516 : vector<32x32xi32>
    %518 = arith.andi %515, %517 : vector<32x32xi1>
    %c4_i32_217 = arith.constant 4 : i32
    %519 = vector.broadcast %c4_i32_217 : i32 to vector<32x32xi32>
    %520 = arith.cmpi slt, %508, %519 : vector<32x32xi32>
    %521 = arith.andi %518, %520 : vector<32x32xi1>
    %c0_i32_218 = arith.constant 0 : i32
    %522 = vector.broadcast %c0_i32_218 : i32 to vector<32x32xi32>
    %523 = arith.cmpi sge, %510, %522 : vector<32x32xi32>
    %524 = arith.andi %521, %523 : vector<32x32xi1>
    %c4_i32_219 = arith.constant 4 : i32
    %525 = vector.broadcast %c4_i32_219 : i32 to vector<32x32xi32>
    %526 = arith.cmpi slt, %510, %525 : vector<32x32xi32>
    %527 = arith.andi %524, %526 : vector<32x32xi1>
    %cst_220 = arith.constant 0.000000e+00 : f32
    %528 = vector.broadcast %cst_220 : f32 to vector<32x32xf32>
    %529 = arith.select %527, %504, %528 : vector<32x32xi1>, vector<32x32xf32>
    %530 = arith.truncf %529 : vector<32x32xf32> to vector<32x32xbf16>
    %c16 = arith.constant 16 : index
    %c0_221 = arith.constant 0 : index
    %c0_222 = arith.constant 0 : index
    %531 = vector.load %arg4[%c16, %c0_221, %c0_222] : memref<27x32x64xbf16, #tpu.memory_space<vmem>>, vector<1x32x64xbf16>
    %532 = vector.shape_cast %531 : vector<1x32x64xbf16> to vector<32x64xbf16>
    %cst_223 = arith.constant dense<0.000000e+00> : vector<32x64xf32>
    %533 = tpu.matmul %530, %532, %cst_223 {dimension_numbers = #tpu.dot_dimension_numbers<[1], [0], [0], [1], [0, 0, 1, 1], [], []>} : vector<32x32xbf16>, vector<32x64xbf16>, vector<32x64xf32> -> vector<32x64xf32>
    %534 = arith.addf %503, %533 : vector<32x64xf32>
    %c27_i32 = arith.constant 27 : i32
    %535 = tpu.dynamic_rotate %23 by %c27_i32 dim 0 : vector<32x32xf32>, i32 -> vector<32x32xf32>
    %c0_i32_224 = arith.constant 0 : i32
    %536 = vector.broadcast %c0_i32_224 : i32 to vector<32x32xi32>
    %537 = arith.addi %26, %536 : vector<32x32xi32>
    %c1_i32_225 = arith.constant 1 : i32
    %538 = vector.broadcast %c1_i32_225 : i32 to vector<32x32xi32>
    %539 = arith.addi %30, %538 : vector<32x32xi32>
    %c1_i32_226 = arith.constant 1 : i32
    %540 = vector.broadcast %c1_i32_226 : i32 to vector<32x32xi32>
    %541 = arith.addi %32, %540 : vector<32x32xi32>
    %c0_i32_227 = arith.constant 0 : i32
    %542 = vector.broadcast %c0_i32_227 : i32 to vector<32x32xi32>
    %543 = arith.cmpi sge, %537, %542 : vector<32x32xi32>
    %c2_i32_228 = arith.constant 2 : i32
    %544 = vector.broadcast %c2_i32_228 : i32 to vector<32x32xi32>
    %545 = arith.cmpi slt, %537, %544 : vector<32x32xi32>
    %546 = arith.andi %543, %545 : vector<32x32xi1>
    %c0_i32_229 = arith.constant 0 : i32
    %547 = vector.broadcast %c0_i32_229 : i32 to vector<32x32xi32>
    %548 = arith.cmpi sge, %539, %547 : vector<32x32xi32>
    %549 = arith.andi %546, %548 : vector<32x32xi1>
    %c4_i32_230 = arith.constant 4 : i32
    %550 = vector.broadcast %c4_i32_230 : i32 to vector<32x32xi32>
    %551 = arith.cmpi slt, %539, %550 : vector<32x32xi32>
    %552 = arith.andi %549, %551 : vector<32x32xi1>
    %c0_i32_231 = arith.constant 0 : i32
    %553 = vector.broadcast %c0_i32_231 : i32 to vector<32x32xi32>
    %554 = arith.cmpi sge, %541, %553 : vector<32x32xi32>
    %555 = arith.andi %552, %554 : vector<32x32xi1>
    %c4_i32_232 = arith.constant 4 : i32
    %556 = vector.broadcast %c4_i32_232 : i32 to vector<32x32xi32>
    %557 = arith.cmpi slt, %541, %556 : vector<32x32xi32>
    %558 = arith.andi %555, %557 : vector<32x32xi1>
    %cst_233 = arith.constant 0.000000e+00 : f32
    %559 = vector.broadcast %cst_233 : f32 to vector<32x32xf32>
    %560 = arith.select %558, %535, %559 : vector<32x32xi1>, vector<32x32xf32>
    %561 = arith.truncf %560 : vector<32x32xf32> to vector<32x32xbf16>
    %c17 = arith.constant 17 : index
    %c0_234 = arith.constant 0 : index
    %c0_235 = arith.constant 0 : index
    %562 = vector.load %arg4[%c17, %c0_234, %c0_235] : memref<27x32x64xbf16, #tpu.memory_space<vmem>>, vector<1x32x64xbf16>
    %563 = vector.shape_cast %562 : vector<1x32x64xbf16> to vector<32x64xbf16>
    %cst_236 = arith.constant dense<0.000000e+00> : vector<32x64xf32>
    %564 = tpu.matmul %561, %563, %cst_236 {dimension_numbers = #tpu.dot_dimension_numbers<[1], [0], [0], [1], [0, 0, 1, 1], [], []>} : vector<32x32xbf16>, vector<32x64xbf16>, vector<32x64xf32> -> vector<32x64xf32>
    %565 = arith.addf %534, %564 : vector<32x64xf32>
    %c21_i32_237 = arith.constant 21 : i32
    %566 = tpu.dynamic_rotate %23 by %c21_i32_237 dim 0 : vector<32x32xf32>, i32 -> vector<32x32xf32>
    %c1_i32_238 = arith.constant 1 : i32
    %567 = vector.broadcast %c1_i32_238 : i32 to vector<32x32xi32>
    %568 = arith.addi %26, %567 : vector<32x32xi32>
    %c-1_i32_239 = arith.constant -1 : i32
    %569 = vector.broadcast %c-1_i32_239 : i32 to vector<32x32xi32>
    %570 = arith.addi %30, %569 : vector<32x32xi32>
    %c-1_i32_240 = arith.constant -1 : i32
    %571 = vector.broadcast %c-1_i32_240 : i32 to vector<32x32xi32>
    %572 = arith.addi %32, %571 : vector<32x32xi32>
    %c0_i32_241 = arith.constant 0 : i32
    %573 = vector.broadcast %c0_i32_241 : i32 to vector<32x32xi32>
    %574 = arith.cmpi sge, %568, %573 : vector<32x32xi32>
    %c2_i32_242 = arith.constant 2 : i32
    %575 = vector.broadcast %c2_i32_242 : i32 to vector<32x32xi32>
    %576 = arith.cmpi slt, %568, %575 : vector<32x32xi32>
    %577 = arith.andi %574, %576 : vector<32x32xi1>
    %c0_i32_243 = arith.constant 0 : i32
    %578 = vector.broadcast %c0_i32_243 : i32 to vector<32x32xi32>
    %579 = arith.cmpi sge, %570, %578 : vector<32x32xi32>
    %580 = arith.andi %577, %579 : vector<32x32xi1>
    %c4_i32_244 = arith.constant 4 : i32
    %581 = vector.broadcast %c4_i32_244 : i32 to vector<32x32xi32>
    %582 = arith.cmpi slt, %570, %581 : vector<32x32xi32>
    %583 = arith.andi %580, %582 : vector<32x32xi1>
    %c0_i32_245 = arith.constant 0 : i32
    %584 = vector.broadcast %c0_i32_245 : i32 to vector<32x32xi32>
    %585 = arith.cmpi sge, %572, %584 : vector<32x32xi32>
    %586 = arith.andi %583, %585 : vector<32x32xi1>
    %c4_i32_246 = arith.constant 4 : i32
    %587 = vector.broadcast %c4_i32_246 : i32 to vector<32x32xi32>
    %588 = arith.cmpi slt, %572, %587 : vector<32x32xi32>
    %589 = arith.andi %586, %588 : vector<32x32xi1>
    %cst_247 = arith.constant 0.000000e+00 : f32
    %590 = vector.broadcast %cst_247 : f32 to vector<32x32xf32>
    %591 = arith.select %589, %566, %590 : vector<32x32xi1>, vector<32x32xf32>
    %592 = arith.truncf %591 : vector<32x32xf32> to vector<32x32xbf16>
    %c18 = arith.constant 18 : index
    %c0_248 = arith.constant 0 : index
    %c0_249 = arith.constant 0 : index
    %593 = vector.load %arg4[%c18, %c0_248, %c0_249] : memref<27x32x64xbf16, #tpu.memory_space<vmem>>, vector<1x32x64xbf16>
    %594 = vector.shape_cast %593 : vector<1x32x64xbf16> to vector<32x64xbf16>
    %cst_250 = arith.constant dense<0.000000e+00> : vector<32x64xf32>
    %595 = tpu.matmul %592, %594, %cst_250 {dimension_numbers = #tpu.dot_dimension_numbers<[1], [0], [0], [1], [0, 0, 1, 1], [], []>} : vector<32x32xbf16>, vector<32x64xbf16>, vector<32x64xf32> -> vector<32x64xf32>
    %596 = arith.addf %565, %595 : vector<32x64xf32>
    %c20_i32_251 = arith.constant 20 : i32
    %597 = tpu.dynamic_rotate %23 by %c20_i32_251 dim 0 : vector<32x32xf32>, i32 -> vector<32x32xf32>
    %c1_i32_252 = arith.constant 1 : i32
    %598 = vector.broadcast %c1_i32_252 : i32 to vector<32x32xi32>
    %599 = arith.addi %26, %598 : vector<32x32xi32>
    %c-1_i32_253 = arith.constant -1 : i32
    %600 = vector.broadcast %c-1_i32_253 : i32 to vector<32x32xi32>
    %601 = arith.addi %30, %600 : vector<32x32xi32>
    %c0_i32_254 = arith.constant 0 : i32
    %602 = vector.broadcast %c0_i32_254 : i32 to vector<32x32xi32>
    %603 = arith.addi %32, %602 : vector<32x32xi32>
    %c0_i32_255 = arith.constant 0 : i32
    %604 = vector.broadcast %c0_i32_255 : i32 to vector<32x32xi32>
    %605 = arith.cmpi sge, %599, %604 : vector<32x32xi32>
    %c2_i32_256 = arith.constant 2 : i32
    %606 = vector.broadcast %c2_i32_256 : i32 to vector<32x32xi32>
    %607 = arith.cmpi slt, %599, %606 : vector<32x32xi32>
    %608 = arith.andi %605, %607 : vector<32x32xi1>
    %c0_i32_257 = arith.constant 0 : i32
    %609 = vector.broadcast %c0_i32_257 : i32 to vector<32x32xi32>
    %610 = arith.cmpi sge, %601, %609 : vector<32x32xi32>
    %611 = arith.andi %608, %610 : vector<32x32xi1>
    %c4_i32_258 = arith.constant 4 : i32
    %612 = vector.broadcast %c4_i32_258 : i32 to vector<32x32xi32>
    %613 = arith.cmpi slt, %601, %612 : vector<32x32xi32>
    %614 = arith.andi %611, %613 : vector<32x32xi1>
    %c0_i32_259 = arith.constant 0 : i32
    %615 = vector.broadcast %c0_i32_259 : i32 to vector<32x32xi32>
    %616 = arith.cmpi sge, %603, %615 : vector<32x32xi32>
    %617 = arith.andi %614, %616 : vector<32x32xi1>
    %c4_i32_260 = arith.constant 4 : i32
    %618 = vector.broadcast %c4_i32_260 : i32 to vector<32x32xi32>
    %619 = arith.cmpi slt, %603, %618 : vector<32x32xi32>
    %620 = arith.andi %617, %619 : vector<32x32xi1>
    %cst_261 = arith.constant 0.000000e+00 : f32
    %621 = vector.broadcast %cst_261 : f32 to vector<32x32xf32>
    %622 = arith.select %620, %597, %621 : vector<32x32xi1>, vector<32x32xf32>
    %623 = arith.truncf %622 : vector<32x32xf32> to vector<32x32xbf16>
    %c19 = arith.constant 19 : index
    %c0_262 = arith.constant 0 : index
    %c0_263 = arith.constant 0 : index
    %624 = vector.load %arg4[%c19, %c0_262, %c0_263] : memref<27x32x64xbf16, #tpu.memory_space<vmem>>, vector<1x32x64xbf16>
    %625 = vector.shape_cast %624 : vector<1x32x64xbf16> to vector<32x64xbf16>
    %cst_264 = arith.constant dense<0.000000e+00> : vector<32x64xf32>
    %626 = tpu.matmul %623, %625, %cst_264 {dimension_numbers = #tpu.dot_dimension_numbers<[1], [0], [0], [1], [0, 0, 1, 1], [], []>} : vector<32x32xbf16>, vector<32x64xbf16>, vector<32x64xf32> -> vector<32x64xf32>
    %627 = arith.addf %596, %626 : vector<32x64xf32>
    %c19_i32_265 = arith.constant 19 : i32
    %628 = tpu.dynamic_rotate %23 by %c19_i32_265 dim 0 : vector<32x32xf32>, i32 -> vector<32x32xf32>
    %c1_i32_266 = arith.constant 1 : i32
    %629 = vector.broadcast %c1_i32_266 : i32 to vector<32x32xi32>
    %630 = arith.addi %26, %629 : vector<32x32xi32>
    %c-1_i32_267 = arith.constant -1 : i32
    %631 = vector.broadcast %c-1_i32_267 : i32 to vector<32x32xi32>
    %632 = arith.addi %30, %631 : vector<32x32xi32>
    %c1_i32_268 = arith.constant 1 : i32
    %633 = vector.broadcast %c1_i32_268 : i32 to vector<32x32xi32>
    %634 = arith.addi %32, %633 : vector<32x32xi32>
    %c0_i32_269 = arith.constant 0 : i32
    %635 = vector.broadcast %c0_i32_269 : i32 to vector<32x32xi32>
    %636 = arith.cmpi sge, %630, %635 : vector<32x32xi32>
    %c2_i32_270 = arith.constant 2 : i32
    %637 = vector.broadcast %c2_i32_270 : i32 to vector<32x32xi32>
    %638 = arith.cmpi slt, %630, %637 : vector<32x32xi32>
    %639 = arith.andi %636, %638 : vector<32x32xi1>
    %c0_i32_271 = arith.constant 0 : i32
    %640 = vector.broadcast %c0_i32_271 : i32 to vector<32x32xi32>
    %641 = arith.cmpi sge, %632, %640 : vector<32x32xi32>
    %642 = arith.andi %639, %641 : vector<32x32xi1>
    %c4_i32_272 = arith.constant 4 : i32
    %643 = vector.broadcast %c4_i32_272 : i32 to vector<32x32xi32>
    %644 = arith.cmpi slt, %632, %643 : vector<32x32xi32>
    %645 = arith.andi %642, %644 : vector<32x32xi1>
    %c0_i32_273 = arith.constant 0 : i32
    %646 = vector.broadcast %c0_i32_273 : i32 to vector<32x32xi32>
    %647 = arith.cmpi sge, %634, %646 : vector<32x32xi32>
    %648 = arith.andi %645, %647 : vector<32x32xi1>
    %c4_i32_274 = arith.constant 4 : i32
    %649 = vector.broadcast %c4_i32_274 : i32 to vector<32x32xi32>
    %650 = arith.cmpi slt, %634, %649 : vector<32x32xi32>
    %651 = arith.andi %648, %650 : vector<32x32xi1>
    %cst_275 = arith.constant 0.000000e+00 : f32
    %652 = vector.broadcast %cst_275 : f32 to vector<32x32xf32>
    %653 = arith.select %651, %628, %652 : vector<32x32xi1>, vector<32x32xf32>
    %654 = arith.truncf %653 : vector<32x32xf32> to vector<32x32xbf16>
    %c20 = arith.constant 20 : index
    %c0_276 = arith.constant 0 : index
    %c0_277 = arith.constant 0 : index
    %655 = vector.load %arg4[%c20, %c0_276, %c0_277] : memref<27x32x64xbf16, #tpu.memory_space<vmem>>, vector<1x32x64xbf16>
    %656 = vector.shape_cast %655 : vector<1x32x64xbf16> to vector<32x64xbf16>
    %cst_278 = arith.constant dense<0.000000e+00> : vector<32x64xf32>
    %657 = tpu.matmul %654, %656, %cst_278 {dimension_numbers = #tpu.dot_dimension_numbers<[1], [0], [0], [1], [0, 0, 1, 1], [], []>} : vector<32x32xbf16>, vector<32x64xbf16>, vector<32x64xf32> -> vector<32x64xf32>
    %658 = arith.addf %627, %657 : vector<32x64xf32>
    %c17_i32_279 = arith.constant 17 : i32
    %659 = tpu.dynamic_rotate %23 by %c17_i32_279 dim 0 : vector<32x32xf32>, i32 -> vector<32x32xf32>
    %c1_i32_280 = arith.constant 1 : i32
    %660 = vector.broadcast %c1_i32_280 : i32 to vector<32x32xi32>
    %661 = arith.addi %26, %660 : vector<32x32xi32>
    %c0_i32_281 = arith.constant 0 : i32
    %662 = vector.broadcast %c0_i32_281 : i32 to vector<32x32xi32>
    %663 = arith.addi %30, %662 : vector<32x32xi32>
    %c-1_i32_282 = arith.constant -1 : i32
    %664 = vector.broadcast %c-1_i32_282 : i32 to vector<32x32xi32>
    %665 = arith.addi %32, %664 : vector<32x32xi32>
    %c0_i32_283 = arith.constant 0 : i32
    %666 = vector.broadcast %c0_i32_283 : i32 to vector<32x32xi32>
    %667 = arith.cmpi sge, %661, %666 : vector<32x32xi32>
    %c2_i32_284 = arith.constant 2 : i32
    %668 = vector.broadcast %c2_i32_284 : i32 to vector<32x32xi32>
    %669 = arith.cmpi slt, %661, %668 : vector<32x32xi32>
    %670 = arith.andi %667, %669 : vector<32x32xi1>
    %c0_i32_285 = arith.constant 0 : i32
    %671 = vector.broadcast %c0_i32_285 : i32 to vector<32x32xi32>
    %672 = arith.cmpi sge, %663, %671 : vector<32x32xi32>
    %673 = arith.andi %670, %672 : vector<32x32xi1>
    %c4_i32_286 = arith.constant 4 : i32
    %674 = vector.broadcast %c4_i32_286 : i32 to vector<32x32xi32>
    %675 = arith.cmpi slt, %663, %674 : vector<32x32xi32>
    %676 = arith.andi %673, %675 : vector<32x32xi1>
    %c0_i32_287 = arith.constant 0 : i32
    %677 = vector.broadcast %c0_i32_287 : i32 to vector<32x32xi32>
    %678 = arith.cmpi sge, %665, %677 : vector<32x32xi32>
    %679 = arith.andi %676, %678 : vector<32x32xi1>
    %c4_i32_288 = arith.constant 4 : i32
    %680 = vector.broadcast %c4_i32_288 : i32 to vector<32x32xi32>
    %681 = arith.cmpi slt, %665, %680 : vector<32x32xi32>
    %682 = arith.andi %679, %681 : vector<32x32xi1>
    %cst_289 = arith.constant 0.000000e+00 : f32
    %683 = vector.broadcast %cst_289 : f32 to vector<32x32xf32>
    %684 = arith.select %682, %659, %683 : vector<32x32xi1>, vector<32x32xf32>
    %685 = arith.truncf %684 : vector<32x32xf32> to vector<32x32xbf16>
    %c21 = arith.constant 21 : index
    %c0_290 = arith.constant 0 : index
    %c0_291 = arith.constant 0 : index
    %686 = vector.load %arg4[%c21, %c0_290, %c0_291] : memref<27x32x64xbf16, #tpu.memory_space<vmem>>, vector<1x32x64xbf16>
    %687 = vector.shape_cast %686 : vector<1x32x64xbf16> to vector<32x64xbf16>
    %cst_292 = arith.constant dense<0.000000e+00> : vector<32x64xf32>
    %688 = tpu.matmul %685, %687, %cst_292 {dimension_numbers = #tpu.dot_dimension_numbers<[1], [0], [0], [1], [0, 0, 1, 1], [], []>} : vector<32x32xbf16>, vector<32x64xbf16>, vector<32x64xf32> -> vector<32x64xf32>
    %689 = arith.addf %658, %688 : vector<32x64xf32>
    %c16_i32_293 = arith.constant 16 : i32
    %690 = tpu.dynamic_rotate %23 by %c16_i32_293 dim 0 : vector<32x32xf32>, i32 -> vector<32x32xf32>
    %c1_i32_294 = arith.constant 1 : i32
    %691 = vector.broadcast %c1_i32_294 : i32 to vector<32x32xi32>
    %692 = arith.addi %26, %691 : vector<32x32xi32>
    %c0_i32_295 = arith.constant 0 : i32
    %693 = vector.broadcast %c0_i32_295 : i32 to vector<32x32xi32>
    %694 = arith.addi %30, %693 : vector<32x32xi32>
    %c0_i32_296 = arith.constant 0 : i32
    %695 = vector.broadcast %c0_i32_296 : i32 to vector<32x32xi32>
    %696 = arith.addi %32, %695 : vector<32x32xi32>
    %c0_i32_297 = arith.constant 0 : i32
    %697 = vector.broadcast %c0_i32_297 : i32 to vector<32x32xi32>
    %698 = arith.cmpi sge, %692, %697 : vector<32x32xi32>
    %c2_i32_298 = arith.constant 2 : i32
    %699 = vector.broadcast %c2_i32_298 : i32 to vector<32x32xi32>
    %700 = arith.cmpi slt, %692, %699 : vector<32x32xi32>
    %701 = arith.andi %698, %700 : vector<32x32xi1>
    %c0_i32_299 = arith.constant 0 : i32
    %702 = vector.broadcast %c0_i32_299 : i32 to vector<32x32xi32>
    %703 = arith.cmpi sge, %694, %702 : vector<32x32xi32>
    %704 = arith.andi %701, %703 : vector<32x32xi1>
    %c4_i32_300 = arith.constant 4 : i32
    %705 = vector.broadcast %c4_i32_300 : i32 to vector<32x32xi32>
    %706 = arith.cmpi slt, %694, %705 : vector<32x32xi32>
    %707 = arith.andi %704, %706 : vector<32x32xi1>
    %c0_i32_301 = arith.constant 0 : i32
    %708 = vector.broadcast %c0_i32_301 : i32 to vector<32x32xi32>
    %709 = arith.cmpi sge, %696, %708 : vector<32x32xi32>
    %710 = arith.andi %707, %709 : vector<32x32xi1>
    %c4_i32_302 = arith.constant 4 : i32
    %711 = vector.broadcast %c4_i32_302 : i32 to vector<32x32xi32>
    %712 = arith.cmpi slt, %696, %711 : vector<32x32xi32>
    %713 = arith.andi %710, %712 : vector<32x32xi1>
    %cst_303 = arith.constant 0.000000e+00 : f32
    %714 = vector.broadcast %cst_303 : f32 to vector<32x32xf32>
    %715 = arith.select %713, %690, %714 : vector<32x32xi1>, vector<32x32xf32>
    %716 = arith.truncf %715 : vector<32x32xf32> to vector<32x32xbf16>
    %c22 = arith.constant 22 : index
    %c0_304 = arith.constant 0 : index
    %c0_305 = arith.constant 0 : index
    %717 = vector.load %arg4[%c22, %c0_304, %c0_305] : memref<27x32x64xbf16, #tpu.memory_space<vmem>>, vector<1x32x64xbf16>
    %718 = vector.shape_cast %717 : vector<1x32x64xbf16> to vector<32x64xbf16>
    %cst_306 = arith.constant dense<0.000000e+00> : vector<32x64xf32>
    %719 = tpu.matmul %716, %718, %cst_306 {dimension_numbers = #tpu.dot_dimension_numbers<[1], [0], [0], [1], [0, 0, 1, 1], [], []>} : vector<32x32xbf16>, vector<32x64xbf16>, vector<32x64xf32> -> vector<32x64xf32>
    %720 = arith.addf %689, %719 : vector<32x64xf32>
    %c15_i32_307 = arith.constant 15 : i32
    %721 = tpu.dynamic_rotate %23 by %c15_i32_307 dim 0 : vector<32x32xf32>, i32 -> vector<32x32xf32>
    %c1_i32_308 = arith.constant 1 : i32
    %722 = vector.broadcast %c1_i32_308 : i32 to vector<32x32xi32>
    %723 = arith.addi %26, %722 : vector<32x32xi32>
    %c0_i32_309 = arith.constant 0 : i32
    %724 = vector.broadcast %c0_i32_309 : i32 to vector<32x32xi32>
    %725 = arith.addi %30, %724 : vector<32x32xi32>
    %c1_i32_310 = arith.constant 1 : i32
    %726 = vector.broadcast %c1_i32_310 : i32 to vector<32x32xi32>
    %727 = arith.addi %32, %726 : vector<32x32xi32>
    %c0_i32_311 = arith.constant 0 : i32
    %728 = vector.broadcast %c0_i32_311 : i32 to vector<32x32xi32>
    %729 = arith.cmpi sge, %723, %728 : vector<32x32xi32>
    %c2_i32_312 = arith.constant 2 : i32
    %730 = vector.broadcast %c2_i32_312 : i32 to vector<32x32xi32>
    %731 = arith.cmpi slt, %723, %730 : vector<32x32xi32>
    %732 = arith.andi %729, %731 : vector<32x32xi1>
    %c0_i32_313 = arith.constant 0 : i32
    %733 = vector.broadcast %c0_i32_313 : i32 to vector<32x32xi32>
    %734 = arith.cmpi sge, %725, %733 : vector<32x32xi32>
    %735 = arith.andi %732, %734 : vector<32x32xi1>
    %c4_i32_314 = arith.constant 4 : i32
    %736 = vector.broadcast %c4_i32_314 : i32 to vector<32x32xi32>
    %737 = arith.cmpi slt, %725, %736 : vector<32x32xi32>
    %738 = arith.andi %735, %737 : vector<32x32xi1>
    %c0_i32_315 = arith.constant 0 : i32
    %739 = vector.broadcast %c0_i32_315 : i32 to vector<32x32xi32>
    %740 = arith.cmpi sge, %727, %739 : vector<32x32xi32>
    %741 = arith.andi %738, %740 : vector<32x32xi1>
    %c4_i32_316 = arith.constant 4 : i32
    %742 = vector.broadcast %c4_i32_316 : i32 to vector<32x32xi32>
    %743 = arith.cmpi slt, %727, %742 : vector<32x32xi32>
    %744 = arith.andi %741, %743 : vector<32x32xi1>
    %cst_317 = arith.constant 0.000000e+00 : f32
    %745 = vector.broadcast %cst_317 : f32 to vector<32x32xf32>
    %746 = arith.select %744, %721, %745 : vector<32x32xi1>, vector<32x32xf32>
    %747 = arith.truncf %746 : vector<32x32xf32> to vector<32x32xbf16>
    %c23 = arith.constant 23 : index
    %c0_318 = arith.constant 0 : index
    %c0_319 = arith.constant 0 : index
    %748 = vector.load %arg4[%c23, %c0_318, %c0_319] : memref<27x32x64xbf16, #tpu.memory_space<vmem>>, vector<1x32x64xbf16>
    %749 = vector.shape_cast %748 : vector<1x32x64xbf16> to vector<32x64xbf16>
    %cst_320 = arith.constant dense<0.000000e+00> : vector<32x64xf32>
    %750 = tpu.matmul %747, %749, %cst_320 {dimension_numbers = #tpu.dot_dimension_numbers<[1], [0], [0], [1], [0, 0, 1, 1], [], []>} : vector<32x32xbf16>, vector<32x64xbf16>, vector<32x64xf32> -> vector<32x64xf32>
    %751 = arith.addf %720, %750 : vector<32x64xf32>
    %c13_i32_321 = arith.constant 13 : i32
    %752 = tpu.dynamic_rotate %23 by %c13_i32_321 dim 0 : vector<32x32xf32>, i32 -> vector<32x32xf32>
    %c1_i32_322 = arith.constant 1 : i32
    %753 = vector.broadcast %c1_i32_322 : i32 to vector<32x32xi32>
    %754 = arith.addi %26, %753 : vector<32x32xi32>
    %c1_i32_323 = arith.constant 1 : i32
    %755 = vector.broadcast %c1_i32_323 : i32 to vector<32x32xi32>
    %756 = arith.addi %30, %755 : vector<32x32xi32>
    %c-1_i32_324 = arith.constant -1 : i32
    %757 = vector.broadcast %c-1_i32_324 : i32 to vector<32x32xi32>
    %758 = arith.addi %32, %757 : vector<32x32xi32>
    %c0_i32_325 = arith.constant 0 : i32
    %759 = vector.broadcast %c0_i32_325 : i32 to vector<32x32xi32>
    %760 = arith.cmpi sge, %754, %759 : vector<32x32xi32>
    %c2_i32_326 = arith.constant 2 : i32
    %761 = vector.broadcast %c2_i32_326 : i32 to vector<32x32xi32>
    %762 = arith.cmpi slt, %754, %761 : vector<32x32xi32>
    %763 = arith.andi %760, %762 : vector<32x32xi1>
    %c0_i32_327 = arith.constant 0 : i32
    %764 = vector.broadcast %c0_i32_327 : i32 to vector<32x32xi32>
    %765 = arith.cmpi sge, %756, %764 : vector<32x32xi32>
    %766 = arith.andi %763, %765 : vector<32x32xi1>
    %c4_i32_328 = arith.constant 4 : i32
    %767 = vector.broadcast %c4_i32_328 : i32 to vector<32x32xi32>
    %768 = arith.cmpi slt, %756, %767 : vector<32x32xi32>
    %769 = arith.andi %766, %768 : vector<32x32xi1>
    %c0_i32_329 = arith.constant 0 : i32
    %770 = vector.broadcast %c0_i32_329 : i32 to vector<32x32xi32>
    %771 = arith.cmpi sge, %758, %770 : vector<32x32xi32>
    %772 = arith.andi %769, %771 : vector<32x32xi1>
    %c4_i32_330 = arith.constant 4 : i32
    %773 = vector.broadcast %c4_i32_330 : i32 to vector<32x32xi32>
    %774 = arith.cmpi slt, %758, %773 : vector<32x32xi32>
    %775 = arith.andi %772, %774 : vector<32x32xi1>
    %cst_331 = arith.constant 0.000000e+00 : f32
    %776 = vector.broadcast %cst_331 : f32 to vector<32x32xf32>
    %777 = arith.select %775, %752, %776 : vector<32x32xi1>, vector<32x32xf32>
    %778 = arith.truncf %777 : vector<32x32xf32> to vector<32x32xbf16>
    %c24 = arith.constant 24 : index
    %c0_332 = arith.constant 0 : index
    %c0_333 = arith.constant 0 : index
    %779 = vector.load %arg4[%c24, %c0_332, %c0_333] : memref<27x32x64xbf16, #tpu.memory_space<vmem>>, vector<1x32x64xbf16>
    %780 = vector.shape_cast %779 : vector<1x32x64xbf16> to vector<32x64xbf16>
    %cst_334 = arith.constant dense<0.000000e+00> : vector<32x64xf32>
    %781 = tpu.matmul %778, %780, %cst_334 {dimension_numbers = #tpu.dot_dimension_numbers<[1], [0], [0], [1], [0, 0, 1, 1], [], []>} : vector<32x32xbf16>, vector<32x64xbf16>, vector<32x64xf32> -> vector<32x64xf32>
    %782 = arith.addf %751, %781 : vector<32x64xf32>
    %c12_i32_335 = arith.constant 12 : i32
    %783 = tpu.dynamic_rotate %23 by %c12_i32_335 dim 0 : vector<32x32xf32>, i32 -> vector<32x32xf32>
    %c1_i32_336 = arith.constant 1 : i32
    %784 = vector.broadcast %c1_i32_336 : i32 to vector<32x32xi32>
    %785 = arith.addi %26, %784 : vector<32x32xi32>
    %c1_i32_337 = arith.constant 1 : i32
    %786 = vector.broadcast %c1_i32_337 : i32 to vector<32x32xi32>
    %787 = arith.addi %30, %786 : vector<32x32xi32>
    %c0_i32_338 = arith.constant 0 : i32
    %788 = vector.broadcast %c0_i32_338 : i32 to vector<32x32xi32>
    %789 = arith.addi %32, %788 : vector<32x32xi32>
    %c0_i32_339 = arith.constant 0 : i32
    %790 = vector.broadcast %c0_i32_339 : i32 to vector<32x32xi32>
    %791 = arith.cmpi sge, %785, %790 : vector<32x32xi32>
    %c2_i32_340 = arith.constant 2 : i32
    %792 = vector.broadcast %c2_i32_340 : i32 to vector<32x32xi32>
    %793 = arith.cmpi slt, %785, %792 : vector<32x32xi32>
    %794 = arith.andi %791, %793 : vector<32x32xi1>
    %c0_i32_341 = arith.constant 0 : i32
    %795 = vector.broadcast %c0_i32_341 : i32 to vector<32x32xi32>
    %796 = arith.cmpi sge, %787, %795 : vector<32x32xi32>
    %797 = arith.andi %794, %796 : vector<32x32xi1>
    %c4_i32_342 = arith.constant 4 : i32
    %798 = vector.broadcast %c4_i32_342 : i32 to vector<32x32xi32>
    %799 = arith.cmpi slt, %787, %798 : vector<32x32xi32>
    %800 = arith.andi %797, %799 : vector<32x32xi1>
    %c0_i32_343 = arith.constant 0 : i32
    %801 = vector.broadcast %c0_i32_343 : i32 to vector<32x32xi32>
    %802 = arith.cmpi sge, %789, %801 : vector<32x32xi32>
    %803 = arith.andi %800, %802 : vector<32x32xi1>
    %c4_i32_344 = arith.constant 4 : i32
    %804 = vector.broadcast %c4_i32_344 : i32 to vector<32x32xi32>
    %805 = arith.cmpi slt, %789, %804 : vector<32x32xi32>
    %806 = arith.andi %803, %805 : vector<32x32xi1>
    %cst_345 = arith.constant 0.000000e+00 : f32
    %807 = vector.broadcast %cst_345 : f32 to vector<32x32xf32>
    %808 = arith.select %806, %783, %807 : vector<32x32xi1>, vector<32x32xf32>
    %809 = arith.truncf %808 : vector<32x32xf32> to vector<32x32xbf16>
    %c25 = arith.constant 25 : index
    %c0_346 = arith.constant 0 : index
    %c0_347 = arith.constant 0 : index
    %810 = vector.load %arg4[%c25, %c0_346, %c0_347] : memref<27x32x64xbf16, #tpu.memory_space<vmem>>, vector<1x32x64xbf16>
    %811 = vector.shape_cast %810 : vector<1x32x64xbf16> to vector<32x64xbf16>
    %cst_348 = arith.constant dense<0.000000e+00> : vector<32x64xf32>
    %812 = tpu.matmul %809, %811, %cst_348 {dimension_numbers = #tpu.dot_dimension_numbers<[1], [0], [0], [1], [0, 0, 1, 1], [], []>} : vector<32x32xbf16>, vector<32x64xbf16>, vector<32x64xf32> -> vector<32x64xf32>
    %813 = arith.addf %782, %812 : vector<32x64xf32>
    %c11_i32_349 = arith.constant 11 : i32
    %814 = tpu.dynamic_rotate %23 by %c11_i32_349 dim 0 : vector<32x32xf32>, i32 -> vector<32x32xf32>
    %c1_i32_350 = arith.constant 1 : i32
    %815 = vector.broadcast %c1_i32_350 : i32 to vector<32x32xi32>
    %816 = arith.addi %26, %815 : vector<32x32xi32>
    %c1_i32_351 = arith.constant 1 : i32
    %817 = vector.broadcast %c1_i32_351 : i32 to vector<32x32xi32>
    %818 = arith.addi %30, %817 : vector<32x32xi32>
    %c1_i32_352 = arith.constant 1 : i32
    %819 = vector.broadcast %c1_i32_352 : i32 to vector<32x32xi32>
    %820 = arith.addi %32, %819 : vector<32x32xi32>
    %c0_i32_353 = arith.constant 0 : i32
    %821 = vector.broadcast %c0_i32_353 : i32 to vector<32x32xi32>
    %822 = arith.cmpi sge, %816, %821 : vector<32x32xi32>
    %c2_i32_354 = arith.constant 2 : i32
    %823 = vector.broadcast %c2_i32_354 : i32 to vector<32x32xi32>
    %824 = arith.cmpi slt, %816, %823 : vector<32x32xi32>
    %825 = arith.andi %822, %824 : vector<32x32xi1>
    %c0_i32_355 = arith.constant 0 : i32
    %826 = vector.broadcast %c0_i32_355 : i32 to vector<32x32xi32>
    %827 = arith.cmpi sge, %818, %826 : vector<32x32xi32>
    %828 = arith.andi %825, %827 : vector<32x32xi1>
    %c4_i32_356 = arith.constant 4 : i32
    %829 = vector.broadcast %c4_i32_356 : i32 to vector<32x32xi32>
    %830 = arith.cmpi slt, %818, %829 : vector<32x32xi32>
    %831 = arith.andi %828, %830 : vector<32x32xi1>
    %c0_i32_357 = arith.constant 0 : i32
    %832 = vector.broadcast %c0_i32_357 : i32 to vector<32x32xi32>
    %833 = arith.cmpi sge, %820, %832 : vector<32x32xi32>
    %834 = arith.andi %831, %833 : vector<32x32xi1>
    %c4_i32_358 = arith.constant 4 : i32
    %835 = vector.broadcast %c4_i32_358 : i32 to vector<32x32xi32>
    %836 = arith.cmpi slt, %820, %835 : vector<32x32xi32>
    %837 = arith.andi %834, %836 : vector<32x32xi1>
    %cst_359 = arith.constant 0.000000e+00 : f32
    %838 = vector.broadcast %cst_359 : f32 to vector<32x32xf32>
    %839 = arith.select %837, %814, %838 : vector<32x32xi1>, vector<32x32xf32>
    %840 = arith.truncf %839 : vector<32x32xf32> to vector<32x32xbf16>
    %c26 = arith.constant 26 : index
    %c0_360 = arith.constant 0 : index
    %c0_361 = arith.constant 0 : index
    %841 = vector.load %arg4[%c26, %c0_360, %c0_361] : memref<27x32x64xbf16, #tpu.memory_space<vmem>>, vector<1x32x64xbf16>
    %842 = vector.shape_cast %841 : vector<1x32x64xbf16> to vector<32x64xbf16>
    %cst_362 = arith.constant dense<0.000000e+00> : vector<32x64xf32>
    %843 = tpu.matmul %840, %842, %cst_362 {dimension_numbers = #tpu.dot_dimension_numbers<[1], [0], [0], [1], [0, 0, 1, 1], [], []>} : vector<32x32xbf16>, vector<32x64xbf16>, vector<32x64xf32> -> vector<32x64xf32>
    %844 = arith.addf %813, %843 : vector<32x64xf32>
    %c0_363 = arith.constant 0 : index
    %c0_364 = arith.constant 0 : index
    %845 = vector.load %arg5[%c0_363, %c0_364] : memref<1x64xf32, #tpu.memory_space<vmem>>, vector<1x64xf32>
    %846 = vector.broadcast %845 : vector<1x64xf32> to vector<32x64xf32>
    %847 = arith.addf %844, %846 : vector<32x64xf32>
    %848 = vector.extract_strided_slice %847 {offsets = [0, 0], sizes = [32, 32], strides = [1, 1]} : vector<32x64xf32> to vector<32x32xf32>
    %cst_365 = arith.constant 5.000000e-01 : f32
    %849 = vector.broadcast %cst_365 : f32 to vector<32x32xf32>
    %850 = arith.mulf %848, %849 : vector<32x32xf32>
    %851 = vector.extract_strided_slice %847 {offsets = [0, 32], sizes = [32, 32], strides = [1, 1]} : vector<32x64xf32> to vector<32x32xf32>
    %852 = arith.truncf %23 : vector<32x32xf32> to vector<32x32xbf16>
    %c0_366 = arith.constant 0 : index
    %c0_367 = arith.constant 0 : index
    %853 = vector.load %arg6[%c0_366, %c0_367] : memref<32x32xbf16, #tpu.memory_space<vmem>>, vector<32x32xbf16>
    %cst_368 = arith.constant dense<0.000000e+00> : vector<32x32xf32>
    %854 = tpu.matmul %852, %853, %cst_368 {dimension_numbers = #tpu.dot_dimension_numbers<[1], [0], [0], [1], [0, 0, 1, 1], [], []>} : vector<32x32xbf16>, vector<32x32xbf16>, vector<32x32xf32> -> vector<32x32xf32>
    %855 = vector.extract_strided_slice %850 {offsets = [0, 0], sizes = [32, 8], strides = [1, 1]} : vector<32x32xf32> to vector<32x8xf32>
    %856 = arith.truncf %855 : vector<32x8xf32> to vector<32x8xbf16>
    %857 = vector.extract_strided_slice %851 {offsets = [0, 0], sizes = [32, 8], strides = [1, 1]} : vector<32x32xf32> to vector<32x8xf32>
    %858 = arith.truncf %857 : vector<32x8xf32> to vector<32x8xbf16>
    %859 = vector.extract_strided_slice %854 {offsets = [0, 0], sizes = [32, 8], strides = [1, 1]} : vector<32x32xf32> to vector<32x8xf32>
    %860 = arith.truncf %859 : vector<32x8xf32> to vector<32x8xbf16>
    %cst_369 = arith.constant dense<0.000000e+00> : vector<32x32xf32>
    %861 = tpu.matmul %856, %858, %cst_369 {dimension_numbers = #tpu.dot_dimension_numbers<[1], [1], [0], [0], [0, 0, 1, 0], [], []>} : vector<32x8xbf16>, vector<32x8xbf16>, vector<32x32xf32> -> vector<32x32xf32>
    %cst_370 = arith.constant dense<0xFF800000> : vector<32xf32>
    %862 = vector.multi_reduction <maximumf>, %861, %cst_370 [1] : vector<32x32xf32> to vector<32xf32>
    %863 = vector.shape_cast %862 : vector<32xf32> to vector<32x1xf32>
    %864 = vector.broadcast %863 : vector<32x1xf32> to vector<32x32xf32>
    %865 = arith.subf %861, %864 : vector<32x32xf32>
    %866 = math.exp %865 : vector<32x32xf32>
    %cst_371 = arith.constant dense<0.000000e+00> : vector<32xf32>
    %867 = vector.multi_reduction <add>, %866, %cst_371 [1] : vector<32x32xf32> to vector<32xf32>
    %868 = vector.shape_cast %867 : vector<32xf32> to vector<32x1xf32>
    %869 = tpu.reciprocal %868 {approx = true} : vector<32x1xf32> -> vector<32x1xf32>
    %870 = vector.broadcast %869 : vector<32x1xf32> to vector<32x32xf32>
    %871 = arith.mulf %866, %870 : vector<32x32xf32>
    %c0_372 = arith.constant 0 : index
    %c0_373 = arith.constant 0 : index
    %c0_374 = arith.constant 0 : index
    %c0_375 = arith.constant 0 : index
    %872 = vector.load %arg10[%c0_372, %c0_373, %c0_374, %c0_375] : memref<1x4x32x32xf32, #tpu.memory_space<vmem>>, vector<1x1x32x32xf32>
    %873 = vector.shape_cast %872 : vector<1x1x32x32xf32> to vector<32x32xf32>
    %874 = vector.shape_cast %871 : vector<32x32xf32> to vector<1x1x32x32xf32>
    tpu.vector_store %arg10[%c0_372, %c0_373, %c0_374, %c0_375], %874 {strides = array<i32>} : memref<1x4x32x32xf32, #tpu.memory_space<vmem>>, vector<1x1x32x32xf32>,
    %875 = arith.truncf %871 : vector<32x32xf32> to vector<32x32xbf16>
    %cst_376 = arith.constant dense<0.000000e+00> : vector<32x8xf32>
    %876 = tpu.matmul %875, %860, %cst_376 {dimension_numbers = #tpu.dot_dimension_numbers<[1], [0], [0], [1], [0, 0, 1, 1], [], []>} : vector<32x32xbf16>, vector<32x8xbf16>, vector<32x8xf32> -> vector<32x8xf32>
    %c0_377 = arith.constant 0 : index
    %c0_378 = arith.constant 0 : index
    %877 = vector.load %arg11[%c0_377, %c0_378] : memref<32x32xf32, #tpu.memory_space<vmem>>, vector<32x8xf32>
    tpu.vector_store %arg11[%c0_377, %c0_378], %876 {strides = array<i32>} : memref<32x32xf32, #tpu.memory_space<vmem>>, vector<32x8xf32>,
    %878 = vector.extract_strided_slice %850 {offsets = [0, 8], sizes = [32, 8], strides = [1, 1]} : vector<32x32xf32> to vector<32x8xf32>
    %879 = arith.truncf %878 : vector<32x8xf32> to vector<32x8xbf16>
    %880 = vector.extract_strided_slice %851 {offsets = [0, 8], sizes = [32, 8], strides = [1, 1]} : vector<32x32xf32> to vector<32x8xf32>
    %881 = arith.truncf %880 : vector<32x8xf32> to vector<32x8xbf16>
    %882 = vector.extract_strided_slice %854 {offsets = [0, 8], sizes = [32, 8], strides = [1, 1]} : vector<32x32xf32> to vector<32x8xf32>
    %883 = arith.truncf %882 : vector<32x8xf32> to vector<32x8xbf16>
    %cst_379 = arith.constant dense<0.000000e+00> : vector<32x32xf32>
    %884 = tpu.matmul %879, %881, %cst_379 {dimension_numbers = #tpu.dot_dimension_numbers<[1], [1], [0], [0], [0, 0, 1, 0], [], []>} : vector<32x8xbf16>, vector<32x8xbf16>, vector<32x32xf32> -> vector<32x32xf32>
    %cst_380 = arith.constant dense<0xFF800000> : vector<32xf32>
    %885 = vector.multi_reduction <maximumf>, %884, %cst_380 [1] : vector<32x32xf32> to vector<32xf32>
    %886 = vector.shape_cast %885 : vector<32xf32> to vector<32x1xf32>
    %887 = vector.broadcast %886 : vector<32x1xf32> to vector<32x32xf32>
    %888 = arith.subf %884, %887 : vector<32x32xf32>
    %889 = math.exp %888 : vector<32x32xf32>
    %cst_381 = arith.constant dense<0.000000e+00> : vector<32xf32>
    %890 = vector.multi_reduction <add>, %889, %cst_381 [1] : vector<32x32xf32> to vector<32xf32>
    %891 = vector.shape_cast %890 : vector<32xf32> to vector<32x1xf32>
    %892 = tpu.reciprocal %891 {approx = true} : vector<32x1xf32> -> vector<32x1xf32>
    %893 = vector.broadcast %892 : vector<32x1xf32> to vector<32x32xf32>
    %894 = arith.mulf %889, %893 : vector<32x32xf32>
    %c0_382 = arith.constant 0 : index
    %c1_383 = arith.constant 1 : index
    %c0_384 = arith.constant 0 : index
    %c0_385 = arith.constant 0 : index
    %895 = vector.load %arg10[%c0_382, %c1_383, %c0_384, %c0_385] : memref<1x4x32x32xf32, #tpu.memory_space<vmem>>, vector<1x1x32x32xf32>
    %896 = vector.shape_cast %895 : vector<1x1x32x32xf32> to vector<32x32xf32>
    %897 = vector.shape_cast %894 : vector<32x32xf32> to vector<1x1x32x32xf32>
    tpu.vector_store %arg10[%c0_382, %c1_383, %c0_384, %c0_385], %897 {strides = array<i32>} : memref<1x4x32x32xf32, #tpu.memory_space<vmem>>, vector<1x1x32x32xf32>,
    %898 = arith.truncf %894 : vector<32x32xf32> to vector<32x32xbf16>
    %cst_386 = arith.constant dense<0.000000e+00> : vector<32x8xf32>
    %899 = tpu.matmul %898, %883, %cst_386 {dimension_numbers = #tpu.dot_dimension_numbers<[1], [0], [0], [1], [0, 0, 1, 1], [], []>} : vector<32x32xbf16>, vector<32x8xbf16>, vector<32x8xf32> -> vector<32x8xf32>
    %c0_387 = arith.constant 0 : index
    %c8_388 = arith.constant 8 : index
    %900 = vector.load %arg11[%c0_387, %c8_388] : memref<32x32xf32, #tpu.memory_space<vmem>>, vector<32x8xf32>
    tpu.vector_store %arg11[%c0_387, %c8_388], %899 {strides = array<i32>} : memref<32x32xf32, #tpu.memory_space<vmem>>, vector<32x8xf32>,
    %901 = vector.extract_strided_slice %850 {offsets = [0, 16], sizes = [32, 8], strides = [1, 1]} : vector<32x32xf32> to vector<32x8xf32>
    %902 = arith.truncf %901 : vector<32x8xf32> to vector<32x8xbf16>
    %903 = vector.extract_strided_slice %851 {offsets = [0, 16], sizes = [32, 8], strides = [1, 1]} : vector<32x32xf32> to vector<32x8xf32>
    %904 = arith.truncf %903 : vector<32x8xf32> to vector<32x8xbf16>
    %905 = vector.extract_strided_slice %854 {offsets = [0, 16], sizes = [32, 8], strides = [1, 1]} : vector<32x32xf32> to vector<32x8xf32>
    %906 = arith.truncf %905 : vector<32x8xf32> to vector<32x8xbf16>
    %cst_389 = arith.constant dense<0.000000e+00> : vector<32x32xf32>
    %907 = tpu.matmul %902, %904, %cst_389 {dimension_numbers = #tpu.dot_dimension_numbers<[1], [1], [0], [0], [0, 0, 1, 0], [], []>} : vector<32x8xbf16>, vector<32x8xbf16>, vector<32x32xf32> -> vector<32x32xf32>
    %cst_390 = arith.constant dense<0xFF800000> : vector<32xf32>
    %908 = vector.multi_reduction <maximumf>, %907, %cst_390 [1] : vector<32x32xf32> to vector<32xf32>
    %909 = vector.shape_cast %908 : vector<32xf32> to vector<32x1xf32>
    %910 = vector.broadcast %909 : vector<32x1xf32> to vector<32x32xf32>
    %911 = arith.subf %907, %910 : vector<32x32xf32>
    %912 = math.exp %911 : vector<32x32xf32>
    %cst_391 = arith.constant dense<0.000000e+00> : vector<32xf32>
    %913 = vector.multi_reduction <add>, %912, %cst_391 [1] : vector<32x32xf32> to vector<32xf32>
    %914 = vector.shape_cast %913 : vector<32xf32> to vector<32x1xf32>
    %915 = tpu.reciprocal %914 {approx = true} : vector<32x1xf32> -> vector<32x1xf32>
    %916 = vector.broadcast %915 : vector<32x1xf32> to vector<32x32xf32>
    %917 = arith.mulf %912, %916 : vector<32x32xf32>
    %c0_392 = arith.constant 0 : index
    %c2_393 = arith.constant 2 : index
    %c0_394 = arith.constant 0 : index
    %c0_395 = arith.constant 0 : index
    %918 = vector.load %arg10[%c0_392, %c2_393, %c0_394, %c0_395] : memref<1x4x32x32xf32, #tpu.memory_space<vmem>>, vector<1x1x32x32xf32>
    %919 = vector.shape_cast %918 : vector<1x1x32x32xf32> to vector<32x32xf32>
    %920 = vector.shape_cast %917 : vector<32x32xf32> to vector<1x1x32x32xf32>
    tpu.vector_store %arg10[%c0_392, %c2_393, %c0_394, %c0_395], %920 {strides = array<i32>} : memref<1x4x32x32xf32, #tpu.memory_space<vmem>>, vector<1x1x32x32xf32>,
    %921 = arith.truncf %917 : vector<32x32xf32> to vector<32x32xbf16>
    %cst_396 = arith.constant dense<0.000000e+00> : vector<32x8xf32>
    %922 = tpu.matmul %921, %906, %cst_396 {dimension_numbers = #tpu.dot_dimension_numbers<[1], [0], [0], [1], [0, 0, 1, 1], [], []>} : vector<32x32xbf16>, vector<32x8xbf16>, vector<32x8xf32> -> vector<32x8xf32>
    %c0_397 = arith.constant 0 : index
    %c16_398 = arith.constant 16 : index
    %923 = vector.load %arg11[%c0_397, %c16_398] : memref<32x32xf32, #tpu.memory_space<vmem>>, vector<32x8xf32>
    tpu.vector_store %arg11[%c0_397, %c16_398], %922 {strides = array<i32>} : memref<32x32xf32, #tpu.memory_space<vmem>>, vector<32x8xf32>,
    %924 = vector.extract_strided_slice %850 {offsets = [0, 24], sizes = [32, 8], strides = [1, 1]} : vector<32x32xf32> to vector<32x8xf32>
    %925 = arith.truncf %924 : vector<32x8xf32> to vector<32x8xbf16>
    %926 = vector.extract_strided_slice %851 {offsets = [0, 24], sizes = [32, 8], strides = [1, 1]} : vector<32x32xf32> to vector<32x8xf32>
    %927 = arith.truncf %926 : vector<32x8xf32> to vector<32x8xbf16>
    %928 = vector.extract_strided_slice %854 {offsets = [0, 24], sizes = [32, 8], strides = [1, 1]} : vector<32x32xf32> to vector<32x8xf32>
    %929 = arith.truncf %928 : vector<32x8xf32> to vector<32x8xbf16>
    %cst_399 = arith.constant dense<0.000000e+00> : vector<32x32xf32>
    %930 = tpu.matmul %925, %927, %cst_399 {dimension_numbers = #tpu.dot_dimension_numbers<[1], [1], [0], [0], [0, 0, 1, 0], [], []>} : vector<32x8xbf16>, vector<32x8xbf16>, vector<32x32xf32> -> vector<32x32xf32>
    %cst_400 = arith.constant dense<0xFF800000> : vector<32xf32>
    %931 = vector.multi_reduction <maximumf>, %930, %cst_400 [1] : vector<32x32xf32> to vector<32xf32>
    %932 = vector.shape_cast %931 : vector<32xf32> to vector<32x1xf32>
    %933 = vector.broadcast %932 : vector<32x1xf32> to vector<32x32xf32>
    %934 = arith.subf %930, %933 : vector<32x32xf32>
    %935 = math.exp %934 : vector<32x32xf32>
    %cst_401 = arith.constant dense<0.000000e+00> : vector<32xf32>
    %936 = vector.multi_reduction <add>, %935, %cst_401 [1] : vector<32x32xf32> to vector<32xf32>
    %937 = vector.shape_cast %936 : vector<32xf32> to vector<32x1xf32>
    %938 = tpu.reciprocal %937 {approx = true} : vector<32x1xf32> -> vector<32x1xf32>
    %939 = vector.broadcast %938 : vector<32x1xf32> to vector<32x32xf32>
    %940 = arith.mulf %935, %939 : vector<32x32xf32>
    %c0_402 = arith.constant 0 : index
    %c3_403 = arith.constant 3 : index
    %c0_404 = arith.constant 0 : index
    %c0_405 = arith.constant 0 : index
    %941 = vector.load %arg10[%c0_402, %c3_403, %c0_404, %c0_405] : memref<1x4x32x32xf32, #tpu.memory_space<vmem>>, vector<1x1x32x32xf32>
    %942 = vector.shape_cast %941 : vector<1x1x32x32xf32> to vector<32x32xf32>
    %943 = vector.shape_cast %940 : vector<32x32xf32> to vector<1x1x32x32xf32>
    tpu.vector_store %arg10[%c0_402, %c3_403, %c0_404, %c0_405], %943 {strides = array<i32>} : memref<1x4x32x32xf32, #tpu.memory_space<vmem>>, vector<1x1x32x32xf32>,
    %944 = arith.truncf %940 : vector<32x32xf32> to vector<32x32xbf16>
    %cst_406 = arith.constant dense<0.000000e+00> : vector<32x8xf32>
    %945 = tpu.matmul %944, %929, %cst_406 {dimension_numbers = #tpu.dot_dimension_numbers<[1], [0], [0], [1], [0, 0, 1, 1], [], []>} : vector<32x32xbf16>, vector<32x8xbf16>, vector<32x8xf32> -> vector<32x8xf32>
    %c0_407 = arith.constant 0 : index
    %c24_408 = arith.constant 24 : index
    %946 = vector.load %arg11[%c0_407, %c24_408] : memref<32x32xf32, #tpu.memory_space<vmem>>, vector<32x8xf32>
    tpu.vector_store %arg11[%c0_407, %c24_408], %945 {strides = array<i32>} : memref<32x32xf32, #tpu.memory_space<vmem>>, vector<32x8xf32>,
    %c0_409 = arith.constant 0 : index
    %c0_410 = arith.constant 0 : index
    %947 = vector.load %arg11[%c0_409, %c0_410] : memref<32x32xf32, #tpu.memory_space<vmem>>, vector<32x32xf32>
    %948 = arith.truncf %947 : vector<32x32xf32> to vector<32x32xbf16>
    %c0_411 = arith.constant 0 : index
    %c0_412 = arith.constant 0 : index
    %949 = vector.load %arg7[%c0_411, %c0_412] : memref<32x32xbf16, #tpu.memory_space<vmem>>, vector<32x32xbf16>
    %cst_413 = arith.constant dense<0.000000e+00> : vector<32x32xf32>
    %950 = tpu.matmul %948, %949, %cst_413 {dimension_numbers = #tpu.dot_dimension_numbers<[1], [0], [0], [1], [0, 0, 1, 1], [], []>} : vector<32x32xbf16>, vector<32x32xbf16>, vector<32x32xf32> -> vector<32x32xf32>
    %c0_414 = arith.constant 0 : index
    %c0_415 = arith.constant 0 : index
    %951 = vector.load %arg8[%c0_414, %c0_415] : memref<1x32xf32, #tpu.memory_space<vmem>>, vector<1x32xf32>
    %952 = vector.broadcast %951 : vector<1x32xf32> to vector<32x32xf32>
    %953 = arith.addf %950, %952 : vector<32x32xf32>
    %954 = arith.addf %1, %953 : vector<32x32xf32>
    %c0_416 = arith.constant 0 : index
    %c0_417 = arith.constant 0 : index
    %c0_418 = arith.constant 0 : index
    %955 = vector.load %arg9[%c0_416, %c0_417, %c0_418] : memref<1x32x32xf32, #tpu.memory_space<vmem>>, vector<1x32x32xf32>
    %956 = vector.shape_cast %955 : vector<1x32x32xf32> to vector<32x32xf32>
    %957 = vector.shape_cast %954 : vector<32x32xf32> to vector<1x32x32xf32>
    tpu.vector_store %arg9[%c0_416, %c0_417, %c0_418], %957 {strides = array<i32>} : memref<1x32x32xf32, #tpu.memory_space<vmem>>, vector<1x32x32xf32>,
    return
  }
  func.func @transform_0(%arg0: i32) -> (i32, i32, i32) {
    %c0_i32 = arith.constant 0 : i32
    %c0_i32_0 = arith.constant 0 : i32
    %c0_i32_1 = arith.constant 0 : i32
    return %arg0, %c0_i32, %c0_i32_0 : i32, i32, i32
  }
  func.func @transform_1(%arg0: i32) -> (i32, i32) {
    %c0_i32 = arith.constant 0 : i32
    %c0_i32_0 = arith.constant 0 : i32
    %c0_i32_1 = arith.constant 0 : i32
    return %c0_i32, %c0_i32_0 : i32, i32
  }
  func.func @transform_2(%arg0: i32) -> (i32, i32) {
    %c0_i32 = arith.constant 0 : i32
    %c0_i32_0 = arith.constant 0 : i32
    %c0_i32_1 = arith.constant 0 : i32
    return %c0_i32, %c0_i32_0 : i32, i32
  }
  func.func @transform_3(%arg0: i32) -> (i32, i32, i32) {
    %c0_i32 = arith.constant 0 : i32
    %c0_i32_0 = arith.constant 0 : i32
    %c0_i32_1 = arith.constant 0 : i32
    %c0_i32_2 = arith.constant 0 : i32
    return %c0_i32, %c0_i32_0, %c0_i32_1 : i32, i32, i32
  }
  func.func @transform_4(%arg0: i32) -> (i32, i32) {
    %c0_i32 = arith.constant 0 : i32
    %c0_i32_0 = arith.constant 0 : i32
    %c0_i32_1 = arith.constant 0 : i32
    return %c0_i32, %c0_i32_0 : i32, i32
  }
  func.func @transform_5(%arg0: i32) -> (i32, i32) {
    %c0_i32 = arith.constant 0 : i32
    %c0_i32_0 = arith.constant 0 : i32
    %c0_i32_1 = arith.constant 0 : i32
    return %c0_i32, %c0_i32_0 : i32, i32
  }
  func.func @transform_6(%arg0: i32) -> (i32, i32) {
    %c0_i32 = arith.constant 0 : i32
    %c0_i32_0 = arith.constant 0 : i32
    %c0_i32_1 = arith.constant 0 : i32
    return %c0_i32, %c0_i32_0 : i32, i32
  }
  func.func @transform_7(%arg0: i32) -> (i32, i32) {
    %c0_i32 = arith.constant 0 : i32
    %c0_i32_0 = arith.constant 0 : i32
    %c0_i32_1 = arith.constant 0 : i32
    return %c0_i32, %c0_i32_0 : i32, i32
  }
  func.func @transform_8(%arg0: i32) -> (i32, i32, i32) {
    %c0_i32 = arith.constant 0 : i32
    %c0_i32_0 = arith.constant 0 : i32
    %c0_i32_1 = arith.constant 0 : i32
    return %arg0, %c0_i32, %c0_i32_0 : i32, i32, i32
  }
  func.func @transform_9(%arg0: i32) -> (i32, i32, i32, i32) {
    %c0_i32 = arith.constant 0 : i32
    %c0_i32_0 = arith.constant 0 : i32
    %c0_i32_1 = arith.constant 0 : i32
    %c0_i32_2 = arith.constant 0 : i32
    return %arg0, %c0_i32, %c0_i32_0, %c0_i32_1 : i32, i32, i32, i32
  }
}

</mosaic_0001>

<bundles_post_ra>
// kernel: tpu_custom_call.1
= control target key start
LH: loop header
LB: loop body
LE: loop exit
PB: predicated region body
PF: predicated region fallthrough
CT: control target
= control target key end

     0   :  { %s7877_s0 = inlined_call_operand.hbm [shape: f32[2,32,32], index: 0, kind: input, shape index: {}]   ;;  %s7878_s1 = inlined_call_operand.vmem [shape: f32[1,32], index: 1, kind: input, shape index: {}]   ;;  %s7879_s2 = inlined_call_operand.vmem [shape: f32[1,32], index: 2, kind: input, shape index: {}]   ;;  %s7880_s3 = inlined_call_operand.hbm [shape: bf16[27,32,64], index: 3, kind: input, shape index: {}]   ;;  %s7881_s4 = inlined_call_operand.hbm [shape: f32[1,64], index: 4, kind: input, shape index: {}]   ;;  %s7882_s5 = inlined_call_operand.vmem [shape: bf16[32,32], index: 5, kind: input, shape index: {}]   ;;  %s7883_s6 = inlined_call_operand.hbm [shape: bf16[32,32], index: 6, kind: input, shape index: {}]   ;;  %s7884_s7 = inlined_call_operand.vmem [shape: f32[1,32], index: 7, kind: input, shape index: {}]   ;;  %s7885_s8 = inlined_call_operand.hbm [shape: f32[2,32,32], index: 8, kind: output, shape index: {0}]   ;;  %s7886_s9 = inlined_call_operand.hbm [shape: f32[2,4,32,32], index: 9, kind: output, shape index: {1}]  }
   0x1   :  { %8061 = sst [smem:[#allocation73_spill]] %s7885_s8 }
   0x2   :  { %15 = vsyncpa [#allocation4], 0 }
   0x3   :  { %17 = vsyncpa [#allocation4 + $0x1], 0 }
   0x4   :  { %18 = vsyncpa [#allocation7], 0 }
   0x5   :  { %19 = vsyncpa [#allocation10], 0 }
   0x6   :  { %20 = vsyncpa [#allocation5], 0 }
   0x7   :  { %22 = vsyncpa [#allocation5 + $0x1], 0 }
   0x8   :  { %23 = vsyncpa [#allocation13], 0 }
   0x9   :  { %25 = vsyncpa [#allocation13 + $0x1], 0  ;;  %s5529_s30 = smov 0   ;;  %s5531_s10 = smov 0  }
   0xa   :  { %s5533_s11 = smov 0   ;;  %s5535_s12 = smov 0  }
   0xb LB: > { %8062 = sst [smem:[#allocation19_spill]] %s5444_s30  ;;  %s5550_s13 = sadd.s32 4294967295, %s5456_s12   ;;  %s5456_s12 = sphi %s5535_s12, %s8821_s12   ;;  %s5452_s11 = sphi %s5533_s11, %s8820_s11   ;;  %s5448_s10 = sphi %s5531_s10, %s8819_s10   ;;  %s5444_s30 = sphi %s5529_s30, %s8818_s30  }
   0xc   : > { %s4274_s14 = sadd.s32 4294967294, %s5456_s12   ;;  %p51_p0 = scmp.ne.s32.totalorder %s5448_s10, %s5444_s30 }
   0xd   : > { %p7887_p1 = scmp.eq.s32.totalorder %s5550_s13, 0  ;;  %p228_p3 = scmp.eq.s32.totalorder %s4274_s14, 1 }
   0xe   : > { %p4275_p5 = scmp.ge.s32.totalorder %s5456_s12, 1  ;;  %p261_p7 = scmp.lt.s32.totalorder %s5456_s12, 3 }
   0xf   : > { %p5559_p4 = por %p7887_p1, %p51_p0  ;;  %p5564_p6 = por %p228_p3, %p51_p0 }
  0x10   : > { %p5569_p8 = pnand %p4275_p5, %p261_p7  ;;  %s5458_s18 = smov [#allocation6]  }
  0x11   : > { %s8063_s15 = scalar_select %p5559_p4, 1, 0 }
  0x12   : > { %s8064_s16 = scalar_select %p5564_p6, 1, 0 }
  0x13   : > { %s8066_s17 = scalar_select %p5569_p8, 1, 0 }
  0x14   : > { %8065 = sst [smem:[#allocation20_spill]] %s8064_s16  ;;  %s279_s19 = sshll.u32 %s5458_s18, 4  ;;  %s5573_s19 = int_to_ptr.vmem [resolvable:$true] %s279_s19 }
  0x15   : > { %p5023_p9 = pneg %p5569_p8  ;;  %s5459_s21 = smov [#allocation8]  }
  0x16   : > { %s293_s22 = sshll.u32 %s5459_s21, 4  ;;  %s5460_s23 = smov [#allocation9]   ;;  %s5584_s22 = int_to_ptr.vmem [resolvable:$true] %s293_s22 }
  0x17   : > { %p5580_p11 = pnand %p5023_p9, %p7887_p1  ;;  %s5586_s24 = sshll.u32 %s5460_s23, 4  ;;  %s307_s24 = int_to_ptr.vmem [resolvable:$true] %s5586_s24 }
  0x18   : > { %s5236_s27 = scalar_lea.hbm %s7880_s3, 6912 }
  0x19   : > { %p5237_p12 = scmp.ne.s32.totalorder %s7880_s3, %s5236_s27  ;;  %p5596_p13 = pneg %p5580_p11 }
  0x1a   : > { %p5243_p5 = scmp.lt.u32.totalorder %s5236_s27, %s7880_s3 }
  0x1b   : > { %p5239_p0 = pnand %p5596_p13, %p5237_p12 }
  0x1d   : > { %p5240_p3 = pneg %p5239_p0 }
  0x1f   : > { %p5245_p7 = pnand %p5243_p5, %p5240_p3 }
  0x21   : > { %5248 = shalt.err (!%p5245_p7)
}
  0x22   : > { %s5249_s23 = scalar_lea.vmem %s5573_s19, 6912  ;;  %p5257_p2 = scmp.lt.s32.totalorder %s5573_s19, %s5573_s19 }
  0x23   : > { %p5250_p9 = scmp.ne.s32.totalorder %s5573_s19, %s5249_s23  ;;  %p5258_p6 = scmp.lt.s32.totalorder %s5249_s23, %s5249_s23 }
  0x25   : > { %p5252_p10 = pnand %p5250_p9, %p5596_p13  ;;  %p5259_p12 = por %p5258_p6, %p5257_p2 }
  0x27   : > { %p5253_p1 = pneg %p5252_p10 }
  0x29   : > { %p5260_p0 = pnand %p5259_p12, %p5253_p1 }
  0x2b   : > { %5263 = shalt.err (!%p5260_p0)
}
  0x2c   : > { %s5461_s25 = smov 64   ;;  %s5462_s26 = smov 4  }
  0x2d   : > { %5026 = dma.hbm_to_vmem [thread:$0]  (!%p5580_p11), %s7880_s3, 6912, %s5573_s19, [#allocation7], %s5461_s25, %s5461_s25, %s5462_s26  }
  0x2e   : > { %s5264_s21 = scalar_lea.hbm %s7881_s4, 16 }
  0x2f   : > { %p5265_p1 = scmp.ne.s32.totalorder %s7881_s4, %s5264_s21  ;;  %p5271_p10 = scmp.lt.u32.totalorder %s5264_s21, %s7881_s4 }
  0x31   : > { %p5267_p2 = pnand %p5265_p1, %p5596_p13 }
  0x33   : > { %p5268_p6 = pneg %p5267_p2 }
  0x35   : > { %p5273_p3 = pnand %p5271_p10, %p5268_p6 }
  0x37   : > { %5276 = shalt.err (!%p5273_p3)
}
  0x38   : > { %s5277_s19 = scalar_lea.vmem %s5584_s22, 16  ;;  %s5284_s16 = scalar_lea.vmem %s5584_s22, 32 }
  0x39   : > { %p5278_p5 = scmp.ne.s32.totalorder %s5584_s22, %s5277_s19  ;;  %p5285_p12 = scmp.lt.s32.totalorder %s5584_s22, %s5584_s22 }
  0x3a   : > { %p5286_p0 = scmp.lt.s32.totalorder %s5284_s16, %s5277_s19 }
  0x3b   : > { %p5280_p7 = pnand %p5278_p5, %p5596_p13 }
  0x3c   : > { %p5287_p1 = por %p5286_p0, %p5285_p12 }
  0x3d   : > { %p5281_p9 = pneg %p5280_p7 }
  0x3f   : > { %p5288_p2 = pnand %p5287_p1, %p5281_p9 }
  0x41   : > { %5291 = shalt.err (!%p5288_p2)
}
  0x42   : > { %5029 = dma.hbm_to_vmem [thread:$0]  (!%p5580_p11), %s7881_s4, 16, %s5584_s22, [#allocation7]  }
  0x43   : > { %s5292_s29 = scalar_lea.hbm %s7883_s6, 256 }
  0x44   : > { %p5293_p6 = scmp.ne.s32.totalorder %s7883_s6, %s5292_s29  ;;  %p5299_p5 = scmp.lt.u32.totalorder %s5292_s29, %s7883_s6 }
  0x46   : > { %p5295_p10 = pnand %p5293_p6, %p5596_p13 }
  0x48   : > { %p5296_p3 = pneg %p5295_p10 }
  0x4a   : > { %p5301_p7 = pnand %p5299_p5, %p5296_p3 }
  0x4c   : > { %5304 = shalt.err (!%p5301_p7)
}
  0x4d   : > { %s5305_s16 = scalar_lea.vmem %s307_s24, 256  ;;  %p5313_p1 = scmp.lt.s32.totalorder %s307_s24, %s307_s24 }
  0x4e   : > { %p5306_p9 = scmp.ne.s32.totalorder %s307_s24, %s5305_s16  ;;  %p5314_p2 = scmp.lt.s32.totalorder %s5305_s16, %s5305_s16 }
  0x50   : > { %p5308_p12 = pnand %p5306_p9, %p5596_p13  ;;  %p5315_p4 = por %p5314_p2, %p5313_p1 }
  0x52   : > { %p5309_p0 = pneg %p5308_p12 }
  0x54   : > { %p5316_p8 = pnand %p5315_p4, %p5309_p0 }
  0x56   : > { %5319 = shalt.err (!%p5316_p8)
}
  0x57   : > { %5032 = dma.hbm_to_vmem [thread:$0]  (!%p5580_p11), %s7883_s6, 256, %s307_s24, [#allocation10], %s5461_s25, %s5461_s25, %s5462_s26  }
  0x58   : > { %s5667_s14 = sadd.s32 1, %s5456_s12   ;;  %s38_s30 = sadd.s32 1, %s5452_s11 }
  0x59   : > { %s35_s20 = ssub.s32 %s5456_s12, %s5667_s14  ;;  %p45_p8 = scmp.ne.s32.totalorder %s5452_s11, %s5448_s10 }
  0x5a   : > { %p36_p4 = scmp.eq.s32.totalorder %s35_s20, 0  ;;  %p46_p13 = scmp.eq.s32.totalorder %s5456_s12, 0 }
  0x5b   : > { %p5047_p6 = scmp.lt.s32.totalorder %s5456_s12, 2  ;;  %p8069_p3 = scmp.eq.s32.totalorder %s5550_s13, 1 }
  0x5c   : > { %s5677_s27 = scalar_select %p36_p4, %s5452_s11, %s38_s30  }
  0x5d   : > { %p47_p10 = por %p46_p13, %p45_p8  ;;  %p5681_p5 = por %p8069_p3, %p45_p8 }
  0x5e   : > { %s323_s29 = sand.u32 1, %s5452_s11   ;;  %s4446_s18 = sshll.u32 %s5456_s12, 9 }
  0x5f   : > { %s4280_s24 = sshll.u32 %s323_s29, 5  ;;  %s5690_s21 = scalar_lea.hbm %s7877_s0, %s4446_s18 }
  0x60   : > { %s327_s23 = scalar_lea.vmem [#allocation3], %s4280_s24  ;;  %p5692_p11 = pnand %p5047_p6, %p47_p10 }
  0x61   : > { %s334_s19 = sshll.u32 %s327_s23, 4  ;;  %s5698_s22 = scalar_lea.sflag [#allocation4], %s323_s29  ;;  %s5696_s19 = int_to_ptr.vmem [resolvable:$true] %s334_s19 }
  0x62   : > { %s5320_s8 = scalar_lea.hbm %s5690_s21, 512  ;;  %p5322_p9 = pneg %p5692_p11 }
  0x63   : > { %p5321_p7 = scmp.ne.s32.totalorder %s5690_s21, %s5320_s8  ;;  %s5325_s18 = scalar_lea.hbm %s7877_s0, 1024 }
  0x64   : > { %p5326_p1 = scmp.lt.u32.totalorder %s5690_s21, %s7877_s0  ;;  %p5327_p2 = scmp.lt.u32.totalorder %s5325_s18, %s5320_s8 }
  0x65   : > { %p5323_p12 = pnand %p5322_p9, %p5321_p7  ;;  %p5329_p8 = scmp.lt.u32.totalorder %s5320_s8, %s5690_s21 }
  0x66   : > { %p5328_p4 = por %p5327_p2, %p5326_p1 }
  0x67   : > { %p5324_p0 = pneg %p5323_p12 }
  0x68   : > { %p5330_p13 = por %p5329_p8, %p5328_p4 }
  0x6a   : > { %p5331_p6 = pnand %p5330_p13, %p5324_p0 }
  0x6c   : > { %5334 = shalt.err (!%p5331_p6)
}
  0x6d   : > { %s5335_s29 = scalar_lea.vmem %s5696_s19, 512  ;;  %s5463_s26 = smov [#allocation3]  }
  0x6e   : > { %p5336_p10 = scmp.ne.s32.totalorder %s5696_s19, %s5335_s29  ;;  %s5340_s23 = sshll.u32 %s5463_s26, 4  ;;  %s5341_s23 = int_to_ptr.vmem [resolvable:$false] %s5340_s23 }
  0x6f   : > { %s5342_s20 = scalar_lea.vmem %s5341_s23, 1024  ;;  %p5343_p12 = scmp.lt.s32.totalorder %s5696_s19, %s5341_s23 }
  0x70   : > { %p5338_p3 = pnand %p5336_p10, %p5322_p9  ;;  %p5344_p1 = scmp.lt.s32.totalorder %s5342_s20, %s5335_s29 }
  0x72   : > { %p5339_p7 = pneg %p5338_p3  ;;  %p5345_p2 = por %p5344_p1, %p5343_p12 }
  0x74   : > { %p5346_p4 = pnand %p5345_p2, %p5339_p7 }
  0x76   : > { %5349 = shalt.err (!%p5346_p4)
}
  0x77   : > { %s5464_s8 = smov 128   ;;  %s5465_s30 = smov 8  }
  0x78   : > { %5036 = dma.hbm_to_vmem [thread:$0]  (!%p5692_p11), %s5690_s21, 512, %s5696_s19, %s5698_s22, %s5464_s8, %s5464_s8, %s5465_s30  }
  0x79   : > { %p8072_p9 = scmp.ne.s32.totalorder %s8066_s17, 0 }
  0x7b   : > { %346 = sbr.rel (%p8072_p9) target bundleno = 3915 (0xf4b), region = 52 }
  0x82   : > { %s5729_s18 = sand.u32 1, %s5448_s10   ;;  %p8073_p0 = scmp.ne.s32.totalorder %s8063_s15, 0 }
  0x83   : > { %s4284_s24 = sshll.u32 %s5729_s18, 5  ;;  %s349_s25 = scalar_lea.sflag [#allocation4], %s5729_s18 }
  0x84   : > { %s5735_s29 = scalar_lea.vmem [#allocation3], %s4284_s24 }
  0x85   : > { %5423 = dma.done.wait (%p8073_p0), %s349_s25, 512  }
  0x86   : > { %5425 = vsyncadd (%p8073_p0), %s349_s25, 4294966784  ;;  %p8074_p11 = scmp.eq.s32.totalorder %s5550_s13, 0 }
  0x88   : > { %5427 = dma.done.wait (%p8074_p11), [#allocation7], 6928   ;;  %p8075_p8 = pmov %p8074_p11 }
  0x8a   : > { %5429 = vsyncadd (%p8075_p8), [#allocation7], 4294960368  ;;  %p8076_p13 = pmov %p8075_p8 }
  0x8b   : > { %p8077_p6 = pmov %p8075_p8 }
  0x8c   : > { %5431 = dma.done.wait (%p8076_p13), [#allocation10], 256  }
  0x8d   : > { %5433 = vsyncadd (%p8077_p6), [#allocation10], 4294967040  ;;  %vm7893_vm0 = vcmask 261120   ;;  %v405_v0 = vld [vmem:[%s5735_s29] sm:$0xff]  ;;  %v408_v1 = vld [vmem:[%s5735_s29 + $0x18] sm:$0xff]  ;;  %v485_v28 = vlaneseq  ;;  %v8080_v45 = vmov 0 }
  0x8e   : > { %v407_v2 = vld [vmem:[%s5735_s29 + $0x10] sm:$0xff]  ;;  %v412_v3 = vsel %vm7893_vm0, %v405_v0, 0.0  ;;  %v421_v4 = vsel %vm7893_vm0, %v408_v1, 0.0  ;;  %v406_v5 = vld [vmem:[%s5735_s29 + $0x8] sm:$0xff]  ;;  %v5102_v33 = vld [vmem:[#allocation6 + $0x60] sm:$0xff]   ;;  %v8083_v47 = vmov 0 }
  0x8f   : > { %413 = vadd.xlane.f32.xlu0 %v412_v3  ;;  %422 = vadd.xlane.f32.xlu1 %v421_v4  ;;  %v418_v6 = vsel %vm7893_vm0, %v407_v2, 0.0  ;;  %v415_v7 = vsel %vm7893_vm0, %v406_v5, 0.0  ;;  %v5777_v29 = vshrl.u32 %v485_v28, 7  ;;  %v5103_v34 = vld [vmem:[#allocation6 + $0x10] sm:$0xff]   ;;  %v5104_v35 = vld [vmem:[#allocation6 + $0x68] sm:$0xff]   ;;  %v5105_v40 = vld [vmem:[#allocation6 + $0x18] sm:$0xff]  }
  0x90   : > { %4645 = vmatprep.subr.bf16.mxu0 %v5102_v33  ;;  %4597 = vmatprep.subr.bf16.mxu1 %v5103_v34  ;;  %v5799_v42 = vld [vmem:[#allocation6 + $0x70] sm:$0xff]   ;;  %v8086_v48 = vmov 0  ;;  %v5835_v49 = vld [vmem:[#allocation6] sm:$0xff]   ;;  %v8088_v50 = vmov 0  ;;  %v8090_v51 = vmov 0  ;;  %v8093_v52 = vmov 0 }
  0x91   : > { %v5780_v30 = vadd.s32 8, %v5777_v29  ;;  %v494_v31 = vshra.s32 %v5777_v29, 2  ;;  %4646 = vmatpush3.bf16.msra.mxu0 %v5102_v33  ;;  %4598 = vmatpush3.bf16.msra.mxu1 %v5103_v34  ;;  %v5789_v38 = vshra.s32 %v5777_v29, 4  ;;  %v8096_v53 = vmov 0  ;;  %s5466_s20 = smov 96   ;;  %s5467_s8 = smov 88  }
  0x92   : > { %4647 = vmatprep.subr.bf16.mxu0 %v5104_v35  ;;  %4599 = vmatprep.subr.bf16.mxu1 %v5105_v40  ;;  %v8099_v54 = vmov 0  ;;  %v8102_v57 = vmov 0  ;;  %v8104_v58 = vmov 0  ;;  %v5903_v59 = vadd.s32 16, %v5777_v29  ;;  %s5468_s30 = smov 120   ;;  %s4289_s25 = sshll.u32 %s5729_s18, 7 }
  0x93   : > { %419 = vadd.xlane.f32.xlu0 %v418_v6  ;;  %416 = vadd.xlane.f32.xlu1 %v415_v7  ;;  %v495_v32 = vshra.s32 %v5780_v30, 2  ;;  %v5784_v36 = vand.u32 3, %v494_v31  ;;  %v5792_v39 = vshra.s32 %v5780_v30, 4  ;;  %vm1456_vm1 = vcmp.ge.s32.totalorder %v5789_v38, 0  ;;  %s7638_s15 = scalar_lea.vmem [#allocation12], %s4289_s25  ;;  %s5469_s17 = smov 80  }
  0x94   : > { %vm1460_vm2 = vcmp.lt.s32.totalorder %v5789_v38, 2  ;;  %v2290_v44 = vadd.s32 1, %v5789_v38  ;;  %v5906_v60 = vadd.s32 24, %v5777_v29  ;;  %v5909_v61 = vshra.s32 %v5903_v59, 4  ;;  %s5470_s21 = smov 112   ;;  %s5471_s19 = smov 72  }
  0x95   : > { %8078 = vst [vmem:[#allocation21_spill] sm:$0xff] %v5784_v36  ;;  %v5786_v37 = vand.u32 3, %v495_v32  ;;  %v5795_v41 = vadd.s32 1, %v5784_v36  ;;  %4648 = vmatpush3.bf16.msra.mxu0 %v5104_v35  ;;  %vm1457_vm3 = vcmp.ge.s32.totalorder %v5792_v39, 0  ;;  %vm1461_vm4 = vcmp.lt.s32.totalorder %v5792_v39, 2  ;;  %4600 = vmatpush3.bf16.msra.mxu1 %v5105_v40  ;;  %vm5808_vm5 = vmand %vm1456_vm1, %vm1460_vm2  ;;  %s5472_s16 = smov 104  }
  0x96   : > { %4653 = vmatprep.subr.bf16.mxu0 %v5799_v42  ;;  %v8081_v45 = vsel %vm5808_vm5, 4294967295, %v8080_v45  ;;  %v2291_v46 = vadd.s32 1, %v5792_v39  ;;  %vm5814_vm7 = vmand %vm1457_vm3, %vm1461_vm4  ;;  %vm2294_vm12 = vcmp.ge.s32.totalorder %v2290_v44, 0  ;;  %vm2298_vm13 = vcmp.lt.s32.totalorder %v2290_v44, 2  ;;  %4605 = vmatprep.subr.bf16.mxu1 %v5835_v49  ;;  %s5473_s22 = smov 8   ;;  %s5474_s26 = smov 16  }
  0x97   : > { %8079 = vst [vmem:[#allocation22_spill] sm:$0xff] %v5786_v37  ;;  %v5802_v43 = vadd.s32 1, %v5786_v37  ;;  %8082 = vst [vmem:[#allocation23_spill] sm:$0xff] %v8081_v45  ;;  %vm7897_vm6 = vcmp.ge.s32.totalorder %v5795_v41, 0  ;;  %v8084_v47 = vsel %vm5814_vm7, 4294967295, %v8083_v47  ;;  %vm7895_vm10 = vcmp.lt.s32.totalorder %v5795_v41, 4 }
  0x98   : > { %8085 = vst [vmem:[#allocation24_spill] sm:$0xff] %v8084_v47  ;;  %vm2012_vm9 = vmand %vm5808_vm5, %vm7897_vm6  ;;  %vm2295_vm1 = vcmp.ge.s32.totalorder %v2291_v46, 0  ;;  %vm2299_vm2 = vcmp.lt.s32.totalorder %v2291_v46, 2  ;;  %v5873_v55 = vadd.s32 4294967295, %v5786_v37  ;;  %v5876_v56 = vadd.s32 4294967295, %v5784_v36  ;;  %s5475_s23 = smov 24  }
  0x99   : > { %vm7896_vm8 = vcmp.ge.s32.totalorder %v5802_v43, 0  ;;  %vm7894_vm14 = vcmp.lt.s32.totalorder %v5802_v43, 4  ;;  %vm5831_vm15 = vmand %vm2012_vm9, %vm7895_vm10  ;;  %v496_v62 = vshra.s32 %v5903_v59, 2  ;;  %v5913_v63 = vshra.s32 %v5906_v60, 4 }
  0x9a   : > { %vm2013_vm11 = vmand %vm5814_vm7, %vm7896_vm8  ;;  %v8087_v48 = vsel %vm5831_vm15, 4294967295, %v8086_v48  ;;  %v8109_v7 = vmov 0  ;;  %v503_v31 = vand.u32 3, %v5780_v30  ;;  %v8124_v32 = vmov 0 }
  0x9b   : > { %vm5839_vm3 = vmand %vm2013_vm11, %vm7894_vm14  ;;  %v2293_v4 = vadd.s32 1, %v5913_v63  ;;  %v517_v33 = vadd.s32 4294967295, %v5909_v61  ;;  %v518_v35 = vadd.s32 4294967295, %v5913_v63  ;;  %v8128_v30 = vmov 0 }
  0x9c   : > { %v8089_v50 = vsel %vm5839_vm3, 4294967295, %v8088_v50  ;;  %vm5843_vm4 = vmand %vm2294_vm12, %vm2298_vm13  ;;  %v5994_v40 = vadd.s32 4294967295, %v503_v31  ;;  %v8135_v44 = vmov 0  ;;  %v8182_v45 = vmov 0 }
  0x9d   : > { %v8091_v51 = vsel %vm5843_vm4, 4294967295, %v8090_v51  ;;  %vm5848_vm9 = vmand %vm2295_vm1, %vm2299_vm2  ;;  %vm7900_vm1 = vcmp.ge.s32.totalorder %v5873_v55, 0  ;;  %vm7901_vm2 = vcmp.ge.s32.totalorder %v5876_v56, 0  ;;  %vm529_vm3 = vcmp.ge.s32.totalorder %v517_v33, 0 }
  0x9e   : > { %8092 = vst [vmem:[#allocation25_spill] sm:$0xff] %v8091_v51  ;;  %v8094_v52 = vsel %vm5848_vm9, 4294967295, %v8093_v52  ;;  %vm2863_vm11 = vmand %vm5848_vm9, %vm7896_vm8 }
  0x9f   : > { %8095 = vst [vmem:[#allocation26_spill] sm:$0xff] %v8094_v52  ;;  %vm5868_vm13 = vmand %vm2863_vm11, %vm7894_vm14  ;;  %vm7899_vm14 = vcmp.lt.s32.totalorder %v5876_v56, 4 }
  0xa0   : > { %v8100_v54 = vsel %vm5868_vm13, 4294967295, %v8099_v54  ;;  %vm2306_vm11 = vmand %vm5843_vm4, %vm7901_vm2 }
  0xa1   : > { %8101 = vst [vmem:[#allocation28_spill] sm:$0xff] %v8100_v54  ;;  %vm5892_vm8 = vmand %vm2306_vm11, %vm7899_vm14  ;;  %vm2301_vm14 = vcmp.lt.s32.totalorder %v2293_v4, 2 }
  0xa2   : > { %v8103_v57 = vsel %vm5892_vm8, 4294967295, %v8102_v57 }
 0x11c   : > { %v414_v8 = vpop.xlane.xlu0 %413  ;;  %v423_v9 = vpop.xlane.xlu1 %422 }
 0x11d   : > { %v425_v10 = vmul.f32 0.03125, %v414_v8  ;;  %v428_v11 = vmul.f32 0.03125, %v423_v9  ;;  %v8112_v8 = vmov 0  ;;  %v8115_v9 = vmov 0 }
 0x11f   : > { %v5757_v12 = vsub.f32 %v405_v0, %v425_v10  ;;  %v5759_v13 = vsub.f32 %v408_v1, %v428_v11  ;;  %v497_v0 = vshra.s32 %v5906_v60, 2  ;;  %v5916_v1 = vand.u32 3, %v496_v62 }
 0x120   : > { %v420_v14 = vpop.xlane.xlu0 %419  ;;  %v417_v15 = vpop.xlane.xlu1 %416  ;;  %v8118_v10 = vmov 0  ;;  %v515_v11 = vadd.s32 4294967295, %v5789_v38  ;;  %v8275_v62 = vmov 0 }
 0x121   : > { %v427_v16 = vmul.f32 0.03125, %v420_v14  ;;  %v426_v17 = vmul.f32 0.03125, %v417_v15  ;;  %v433_v18 = vmul.f32 %v5757_v12, %v5757_v12  ;;  %v436_v19 = vmul.f32 %v5759_v13, %v5759_v13  ;;  %8107 = vst [vmem:[#allocation30_spill] sm:$0xff] %v5916_v1 }
 0x122   : > { %v5919_v3 = vand.u32 3, %v497_v0  ;;  %v516_v15 = vadd.s32 4294967295, %v5792_v39  ;;  %v7929_v0 = vand.u32 3, %v5903_v59 }
 0x123   : > { %v5765_v20 = vsub.f32 %v407_v2, %v427_v16  ;;  %v5767_v21 = vsub.f32 %v406_v5, %v426_v17  ;;  %v437_v22 = vsel %vm7893_vm0, %v433_v18, 0.0  ;;  %v446_v23 = vsel %vm7893_vm0, %v436_v19, 0.0 }
 0x124   : > { %438 = vadd.xlane.f32.xlu0 %v437_v22  ;;  %v2292_v2 = vadd.s32 1, %v5909_v61  ;;  %8108 = vst [vmem:[#allocation31_spill] sm:$0xff] %v5919_v3  ;;  %v5923_v5 = vadd.s32 4294967295, %v5916_v1  ;;  %v5926_v6 = vadd.s32 4294967295, %v5919_v3  ;;  %v6010_v46 = vadd.s32 1, %v5919_v3 }
 0x125   : > { %v435_v24 = vmul.f32 %v5765_v20, %v5765_v20  ;;  %v434_v25 = vmul.f32 %v5767_v21, %v5767_v21 }
 0x126   : > { %vm2300_vm11 = vcmp.lt.s32.totalorder %v2292_v2, 2  ;;  %vm7908_vm13 = vcmp.lt.s32.totalorder %v5923_v5, 4  ;;  %8137 = vst [vmem:[#allocation38_spill] sm:$0xff] %v6010_v46 }
 0x127   : > { %v443_v26 = vsel %vm7893_vm0, %v435_v24, 0.0  ;;  %v440_v27 = vsel %vm7893_vm0, %v434_v25, 0.0  ;;  %vm2862_vm0 = vmand %vm5843_vm4, %vm7897_vm6 }
 0x128   : > { %447 = vadd.xlane.f32.xlu0 %v446_v23  ;;  %444 = vadd.xlane.f32.xlu1 %v443_v26  ;;  %vm5862_vm12 = vmand %vm2862_vm0, %vm7895_vm10  ;;  %vm7898_vm0 = vcmp.lt.s32.totalorder %v5873_v55, 4 }
 0x129   : > { %v8097_v53 = vsel %vm5862_vm12, 4294967295, %v8096_v53  ;;  %vm2307_vm10 = vmand %vm5848_vm9, %vm7900_vm1  ;;  %vm7907_vm1 = vcmp.ge.s32.totalorder %v5923_v5, 0  ;;  %vm7906_vm9 = vcmp.ge.s32.totalorder %v5926_v6, 0 }
 0x12a   : > { %8098 = vst [vmem:[#allocation27_spill] sm:$0xff] %v8097_v53  ;;  %vm5898_vm6 = vmand %vm2307_vm10, %vm7898_vm0  ;;  %vm2296_vm10 = vcmp.ge.s32.totalorder %v2292_v2, 0  ;;  %vm2297_vm0 = vcmp.ge.s32.totalorder %v2293_v4, 0  ;;  %v7928_v4 = vand.u32 3, %v5906_v60 }
 0x12b   : > { %v8105_v58 = vsel %vm5898_vm6, 4294967295, %v8104_v58  ;;  %vm5929_vm2 = vmand %vm2296_vm10, %vm2300_vm11  ;;  %vm7909_vm11 = vcmp.lt.s32.totalorder %v5926_v6, 4 }
 0x12c   : > { %441 = vadd.xlane.f32.xlu1 %v440_v27  ;;  %8106 = vst [vmem:[#allocation29_spill] sm:$0xff] %v8105_v58  ;;  %v8110_v7 = vsel %vm5929_vm2, 4294967295, %v8109_v7  ;;  %vm5934_vm12 = vmand %vm2297_vm0, %vm2301_vm14  ;;  %v502_v27 = vand.u32 3, %v5777_v29  ;;  %v8218_v58 = vmov 0 }
 0x12d   : > { %8111 = vst [vmem:[#allocation32_spill] sm:$0xff] %v8110_v7  ;;  %v8113_v8 = vsel %vm5934_vm12, 4294967295, %v8112_v8  ;;  %vm2308_vm6 = vmand %vm5929_vm2, %vm7907_vm1  ;;  %vm531_vm1 = vcmp.lt.s32.totalorder %v515_v11, 2  ;;  %vm8138_vm2 = vcmp.lt.s32.totalorder %v5876_v56, 4 }
 0x12e   : > { %8114 = vst [vmem:[#allocation33_spill] sm:$0xff] %v8113_v8  ;;  %vm2309_vm10 = vmand %vm5934_vm12, %vm7906_vm9  ;;  %vm527_vm9 = vcmp.ge.s32.totalorder %v515_v11, 0  ;;  %v5988_v39 = vadd.s32 4294967295, %v502_v27  ;;  %vm534_vm12 = vcmp.lt.s32.totalorder %v518_v35, 2  ;;  %v8144_v11 = vmov 0 }
 0x12f   : > { %vm5950_vm14 = vmand %vm2308_vm6, %vm7908_vm13  ;;  %vm528_vm6 = vcmp.ge.s32.totalorder %v516_v15, 0  ;;  %vm532_vm13 = vcmp.lt.s32.totalorder %v516_v15, 2 }
 0x130   : > { %v8116_v9 = vsel %vm5950_vm14, 4294967295, %v8115_v9  ;;  %vm5956_vm0 = vmand %vm2309_vm10, %vm7909_vm11  ;;  %vm8123_vm11 = vcmp.ge.s32.totalorder %v5795_v41, 0  ;;  %8130 = vst [vmem:[#allocation36_spill] sm:$0xff] %v5988_v39 }
 0x131   : > { %8117 = vst [vmem:[#allocation34_spill] sm:$0xff] %v8116_v9  ;;  %v8119_v10 = vsel %vm5956_vm0, 4294967295, %v8118_v10  ;;  %vm5962_vm10 = vmand %vm527_vm9, %vm531_vm1  ;;  %vm8126_vm9 = vcmp.ge.s32.totalorder %v5802_v43, 0  ;;  %v8214_v9 = vmov 0 }
 0x132   : > { %8120 = vst [vmem:[#allocation35_spill] sm:$0xff] %v8119_v10  ;;  %vm1174_vm0 = vmand %vm5962_vm10, %vm8123_vm11  ;;  %vm8127_vm11 = vcmp.lt.s32.totalorder %v5795_v41, 4  ;;  %v6001_v41 = vadd.s32 1, %v5916_v1 }
 0x133   : > { %vm5972_vm14 = vmand %vm528_vm6, %vm532_vm13  ;;  %vm8131_vm13 = vcmp.ge.s32.totalorder %v5876_v56, 0 }
 0x134   : > { %v8125_v32 = vsel %vm5972_vm14, 4294967295, %v8124_v32  ;;  %vm1175_vm1 = vmand %vm5972_vm14, %vm8126_vm9  ;;  %vm8132_vm9 = vcmp.ge.s32.totalorder %v5873_v55, 0  ;;  %8133 = vst [vmem:[#allocation37_spill] sm:$0xff] %v6001_v41 }
 0x135   : > { %vm5984_vm4 = vmand %vm1174_vm0, %vm8127_vm11  ;;  %vm533_vm0 = vcmp.lt.s32.totalorder %v517_v33, 2  ;;  %vm8134_vm11 = vcmp.lt.s32.totalorder %v5802_v43, 4  ;;  %v8142_v43 = vmov 0  ;;  %v6096_v33 = vadd.s32 4294967295, %v7928_v4 }
 0x136   : > { %v8129_v30 = vsel %vm5984_vm4, 4294967295, %v8128_v30  ;;  %vm543_vm6 = vmand %vm5962_vm10, %vm8131_vm13  ;;  %vm530_vm13 = vcmp.ge.s32.totalorder %v518_v35, 0  ;;  %v4291_v35 = vld [vmem:[%s7879_s2] ss:$0 sm:$0xff] }
 0x137   : > { %vm544_vm8 = vmand %vm5972_vm14, %vm8132_vm9  ;;  %vm8141_vm14 = vcmp.lt.s32.totalorder %v5873_v55, 4 }
 0x138   : > { %vm6005_vm15 = vmand %vm1175_vm1, %vm8134_vm11 }
 0x139   : > { %v8136_v44 = vsel %vm6005_vm15, 4294967295, %v8135_v44  ;;  %vm6014_vm9 = vmand %vm543_vm6, %vm8138_vm2  ;;  %vm7925_vm2 = vcmp.ge.s32.totalorder %v5988_v39, 0  ;;  %vm7926_vm6 = vcmp.ge.s32.totalorder %v5994_v40, 0 }
 0x13a   : > { %vm6021_vm1 = vmand %vm544_vm8, %vm8141_vm14  ;;  %vm7922_vm14 = vcmp.ge.s32.totalorder %v6001_v41, 0 }
 0x13b   : > { %v8143_v43 = vsel %vm6021_vm1, 4294967295, %v8142_v43  ;;  %vm6026_vm11 = vmand %vm529_vm3, %vm533_vm0  ;;  %vm8148_vm3 = vcmp.ge.s32.totalorder %v5876_v56, 0  ;;  %vm7923_vm1 = vcmp.ge.s32.totalorder %v6010_v46, 0 }
 0x13c   : > { %v8145_v11 = vsel %vm6026_vm11, 4294967295, %v8144_v11  ;;  %vm6036_vm8 = vmand %vm530_vm13, %vm534_vm12 }
 0x13d   : > { %vm6045_vm0 = vmand %vm5808_vm5, %vm8148_vm3 }
 0x13e   : > { %vm6054_vm12 = vmand %vm6026_vm11, %vm7922_vm14 }
 0x13f   : > { %vm6066_vm13 = vmand %vm6036_vm8, %vm7923_vm1  ;;  %vm8159_vm1 = vcmp.ge.s32.totalorder %v5873_v55, 0 }
 0x140   : > { %vm6074_vm3 = vmand %vm5984_vm4, %vm7925_vm2  ;;  %vm7934_vm2 = vcmp.lt.s32.totalorder %v6001_v41, 4  ;;  %vm8170_vm4 = vcmp.ge.s32.totalorder %v5784_v36, 0 }
 0x141   : > { %vm6082_vm14 = vmand %vm6005_vm15, %vm7926_vm6  ;;  %vm7935_vm6 = vcmp.lt.s32.totalorder %v6010_v46, 4 }
 0x142   : > { %vm6090_vm5 = vmand %vm5814_vm7, %vm8159_vm1  ;;  %vm8176_vm1 = vcmp.ge.s32.totalorder %v5926_v6, 0 }
 0x143   : > { %vm6111_vm7 = vmand %vm6054_vm12, %vm7934_vm2  ;;  %vm8167_vm2 = vcmp.ge.s32.totalorder %v5923_v5, 0 }
 0x144   : > { %vm6122_vm15 = vmand %vm6066_vm13, %vm7935_vm6 }
 0x145   : > { %vm6146_vm12 = vmand %vm5962_vm10, %vm8170_vm4  ;;  %vm8179_vm4 = vcmp.ge.s32.totalorder %v5988_v39, 0 }
 0x146   : > { %vm6174_vm10 = vmand %vm6014_vm9, %vm8179_vm4 }
 0x1b1   : > { %v439_v14 = vpop.xlane.xlu0 %438 }
 0x1b2   : > { %v449_v16 = vmul.f32 0.03125, %v439_v14  ;;  %v4290_v14 = vld [vmem:[%s7878_s1] ss:$0 sm:$0xff] }
 0x1b4   : > { %v453_v17 = vadd.f32 1e-06, %v449_v16  ;;  %v8146_v16 = vmov 0 }
 0x1b5   : > { %v445_v18 = vpop.xlane.xlu1 %444  ;;  %v448_v19 = vpop.xlane.xlu0 %447  ;;  %v8147_v16 = vsel %vm6036_vm8, 4294967295, %v8146_v16 }
 0x1b6   : > { %5160 = vrsqrt.f32 %v453_v17  ;;  %v451_v22 = vmul.f32 0.03125, %v445_v18  ;;  %v452_v23 = vmul.f32 0.03125, %v448_v19  ;;  %v6060_v18 = vadd.s32 4294967295, %v7929_v0 }
 0x1b7   : > { %v6116_v0 = vadd.s32 1, %v503_v31  ;;  %v8224_v17 = vand.u32 3, %v5903_v59  ;;  %v8232_v59 = vmov 0 }
 0x1b8   : > { %v455_v25 = vadd.f32 1e-06, %v451_v22  ;;  %v456_v26 = vadd.f32 1e-06, %v452_v23  ;;  %vm8173_vm13 = vcmp.ge.s32.totalorder %v6060_v18, 0 }
 0x1b9   : > { %v442_v28 = vpop.xlane.xlu1 %441  ;;  %8164 = vst [vmem:[#allocation39_spill] sm:$0xff] %v6116_v0  ;;  %vm6155_vm6 = vmand %vm6111_vm7, %vm8173_vm13  ;;  %vm8184_vm13 = vcmp.lt.s32.totalorder %v5913_v63, 2 }
 0x1ba   : > { %5162 = vrsqrt.f32 %v455_v25  ;;  %v450_v34 = vmul.f32 0.03125, %v442_v28 }
 0x1bb   : > { %5164 = vrsqrt.f32 %v456_v26  ;;  %v8157_v26 = vmov 0 }
 0x1bc   : > { %v454_v38 = vadd.f32 1e-06, %v450_v34  ;;  %v8158_v26 = vsel %vm6082_vm14, 4294967295, %v8157_v26  ;;  %vm6133_vm14 = vmand %vm6026_vm11, %vm8167_vm2  ;;  %vm7941_vm2 = vcmp.ge.s32.totalorder %v6096_v33, 0 }
 0x1bd   : > { %vm6163_vm11 = vmand %vm6036_vm8, %vm8176_vm1  ;;  %vm8185_vm8 = vcmp.ge.s32.totalorder %v5913_v63, 0  ;;  %v8195_v63 = vmov 0 }
 0x1be   : > { %5166 = vrsqrt.f32 %v454_v38  ;;  %vm6182_vm1 = vmand %vm6122_vm15, %vm7941_vm2  ;;  %vm8190_vm2 = vcmp.lt.s32.totalorder %v5923_v5, 4 }
 0x1bf   : > { %v8183_v45 = vsel %vm6182_vm1, 4294967295, %v8182_v45 }
 0x1c0   : > { %v5161_v2 = vpop.eup %5160 }
 0x1c1   : > { %v461_v15 = vmul.f32 %v5161_v2, %v5757_v12  ;;  %v6103_v2 = vadd.s32 1, %v502_v27 }
 0x1c3   : > { %v471_v23 = vmul.f32 %v4290_v14, %v461_v15  ;;  %v8162_v15 = vmov 0 }
 0x1c4   : > { %v5163_v22 = vpop.eup %5162  ;;  %v8163_v15 = vsel %vm6111_vm7, 4294967295, %v8162_v15  ;;  %vm6190_vm7 = vmand %vm8185_vm8, %vm8184_vm13  ;;  %vm8193_vm8 = vcmp.lt.s32.totalorder %v5909_v61, 2  ;;  %vm8194_vm13 = vcmp.ge.s32.totalorder %v5909_v61, 0  ;;  %v8204_v61 = vmov 0 }
 0x1c5   : > { %v5165_v34 = vpop.eup %5164  ;;  %v463_v38 = vmul.f32 %v5163_v22, %v5765_v20  ;;  %v8165_v20 = vmov 0  ;;  %v6139_v12 = vadd.f32 %v4291_v35, %v471_v23  ;;  %v8171_v22 = vmov 0  ;;  %vm6211_vm1 = vmand %vm8194_vm13, %vm8193_vm8 }
 0x1c6   : > { %v464_v4 = vmul.f32 %v5165_v34, %v5759_v13  ;;  %v8166_v20 = vsel %vm6122_vm15, 4294967295, %v8165_v20  ;;  %v8172_v22 = vsel %vm6146_vm12, 4294967295, %v8171_v22  ;;  %vm6203_vm15 = vmand %vm6133_vm14, %vm8190_vm2  ;;  %v8196_v63 = vsel %vm6211_vm1, 4294967295, %v8195_v63 }
 0x1c7   : > { %v473_v27 = vmul.f32 %v4290_v14, %v463_v38  ;;  %v8180_v38 = vmov 0  ;;  %8197 = vst [vmem:[#allocation42_spill] sm:$0xff] %v8196_v63  ;;  %vm8198_vm14 = vcmp.ge.s32.totalorder %v5786_v37, 0  ;;  %vm8199_vm2 = vnez %v8125_v32 }
 0x1c8   : > { %v5167_v31 = vpop.eup %5166  ;;  %v474_v19 = vmul.f32 %v4290_v14, %v464_v4  ;;  %v8181_v38 = vsel %vm6174_vm10, 4294967295, %v8180_v38  ;;  %vm6222_vm10 = vmand %vm8199_vm2, %vm8198_vm14  ;;  %v8200_v13 = vmov 0  ;;  %vm8202_vm8 = vcmp.ge.s32.totalorder %v5994_v40, 0 }
 0x1c9   : > { %v6167_v4 = vadd.f32 %v4291_v35, %v473_v27  ;;  %v462_v34 = vmul.f32 %v5167_v31, %v5767_v21  ;;  %v8186_v21 = vmov 0  ;;  %v8191_v31 = vmov 0 }
 0x1ca   : > { %v8187_v21 = vsel %vm6190_vm7, 4294967295, %v8186_v21  ;;  %v6194_v27 = vadd.f32 %v4291_v35, %v474_v19  ;;  %v8192_v31 = vsel %vm6203_vm15, 4294967295, %v8191_v31  ;;  %v8201_v13 = vsel %vm6222_vm10, 4294967295, %v8200_v13 }
 0x1cb   : > { %8188 = vst [vmem:[#allocation40_spill] sm:$0xff] %v8187_v21  ;;  %v472_v19 = vmul.f32 %v4290_v14, %v462_v34  ;;  %v508_v47 = vrot.slane %v6167_v4, 3  ;;  %v583_v54 = vrot.slane %v6167_v4, 4  ;;  %vm8203_vm13 = vnez %v8143_v43 }
 0x1cc   : > { %8189 = vst [vmem:[#allocation41_spill] sm:$0xff] %v6194_v27  ;;  %vm6230_vm4 = vmand %vm8203_vm13, %vm8202_vm8  ;;  %vm8206_vm15 = vcmp.ge.s32.totalorder %v5923_v5, 0  ;;  %v506_v32 = vrot.slane %v6139_v12, 3  ;;  %v509_v34 = vrot.slane %v6194_v27, 3  ;;  %v584_v53 = vrot.slane %v6194_v27, 4 }
 0x1cd   : > { %v8205_v61 = vsel %vm6230_vm4, 4294967295, %v8204_v61  ;;  %vm6238_vm12 = vmand %vm6211_vm1, %vm8206_vm15  ;;  %vm8209_vm14 = vcmp.ge.s32.totalorder %v5926_v6, 0  ;;  %v6254_v52 = vadd.f32 %v4291_v35, %v472_v19  ;;  %vm8213_vm15 = vcmp.lt.s32.totalorder %v5876_v56, 4 }
 0x1ce   : > { %vm6249_vm2 = vmand %vm6190_vm7, %vm8209_vm14  ;;  %vm8217_vm10 = vcmp.lt.s32.totalorder %v5873_v55, 4  ;;  %vm8221_vm8 = vcmp.lt.s32.totalorder %v5926_v6, 4  ;;  %v6282_v35 = vadd.s32 1, %v8224_v17  ;;  %v8226_v55 = vand.u32 3, %v5906_v60 }
 0x1cf   : > { %8212 = vst [vmem:[#allocation43_spill] sm:$0xff] %v6254_v52  ;;  %vm6260_vm1 = vmand %vm6045_vm0, %vm8213_vm15  ;;  %vm8228_vm0 = vcmp.lt.s32.totalorder %v5777_v29, 5  ;;  %v581_v51 = vrot.slane %v6139_v12, 4  ;;  %v8239_v14 = vmov 0  ;;  %vm8243_vm15 = vnez %v8110_v7 }
 0x1d0   : > { %v8215_v9 = vsel %vm6260_vm1, 4294967295, %v8214_v9  ;;  %vm6268_vm14 = vmand %vm6090_vm5, %vm8217_vm10  ;;  %8225 = vst [vmem:[#allocation46_spill] sm:$0xff] %v6282_v35  ;;  %v6286_v19 = vadd.s32 1, %v8226_v55  ;;  %v6291_v28 = vsel %vm8228_vm0, %v508_v47, %v509_v34  ;;  %vm8235_vm5 = vcmp.lt.s32.totalorder %v5777_v29, 4 }
 0x1d1   : > { %8216 = vst [vmem:[#allocation44_spill] sm:$0xff] %v8215_v9  ;;  %v8219_v58 = vsel %vm6268_vm14, 4294967295, %v8218_v58  ;;  %vm6276_vm7 = vmand %vm6163_vm11, %vm8221_vm8  ;;  %vm8231_vm11 = vcmp.lt.s32.totalorder %v5923_v5, 4  ;;  %v6309_v60 = vsel %vm8235_vm5, %v583_v54, %v584_v53  ;;  %vm8242_vm5 = vcmp.ge.s32.totalorder %v5916_v1, 0 }
 0x1d2   : > { %8220 = vst [vmem:[#allocation45_spill] sm:$0xff] %v8219_v58  ;;  %8227 = vst [vmem:[#allocation47_spill] sm:$0xff] %v6286_v19  ;;  %v582_v10 = vrot.slane %v6254_v52, 4  ;;  %vm8251_vm1 = vcmask 261120   ;;  %vm8252_vm4 = vnez %v8129_v30  ;;  %v607_v30 = vsel %vm8203_vm13, %v6309_v60, 0.0 }
 0x1d3   : > { %8229 = vst [vmem:[#allocation48_spill] sm:$0xff] %v6291_v28  ;;  %vm8230_vm10 = vmmov %vm8228_vm0  ;;  %vm8237_vm0 = vnez %v8158_v26  ;;  %v1284_v17 = vsel %vm8252_vm4, %v6309_v60, 0.0  ;;  %v8315_v56 = vmov 0 }
 0x1d4   : > { %v6295_v24 = vsel %vm8230_vm10, %v509_v34, %v506_v32  ;;  %vm6302_vm8 = vmand %vm6238_vm12, %vm8231_vm11  ;;  %8236 = vst [vmem:[#allocation50_spill] sm:$0xff] %v6309_v60  ;;  %v1194_v34 = vsel %vm6074_vm3, %v6291_v28, 0.0  ;;  %vm8238_vm10 = vcmp.lt.s32.totalorder %v5926_v6, 4  ;;  %vm7966_vm11 = vcmp.ge.s32.totalorder %v5919_v3, 0 }
 0x1d5   : > { %v8233_v59 = vsel %vm6302_vm8, 4294967295, %v8232_v59  ;;  %v1195_v5 = vsel %vm8237_vm0, %v6295_v24, 0.0  ;;  %vm6321_vm12 = vmand %vm6249_vm2, %vm8238_vm10  ;;  %vm8244_vm3 = vcmp.lt.s32.totalorder %v5777_v29, 4  ;;  %v507_v6 = vrot.slane %v6254_v52, 3 }
 0x1d6   : > { %8234 = vst [vmem:[#allocation49_spill] sm:$0xff] %v8233_v59  ;;  %v8240_v14 = vsel %vm6321_vm12, 4294967295, %v8239_v14  ;;  %vm2586_vm8 = vmand %vm8243_vm15, %vm8242_vm5  ;;  %v6332_v25 = vsel %vm8244_vm3, %v584_v53, %v581_v51  ;;  %v1198_v26 = vpack.c.bf16 %v1195_v5, %v1194_v34  ;;  %vm8246_vm2 = vnez %v8113_v8 }
 0x1d7   : > { %8241 = vst [vmem:[#allocation51_spill] sm:$0xff] %v8240_v14  ;;  %8245 = vst [vmem:[#allocation52_spill] sm:$0xff] %v6332_v25  ;;  %vm7978_vm10 = vcmp.lt.s32.totalorder %v6282_v35, 4  ;;  %vm7969_vm15 = vcmp.lt.s32.totalorder %v5919_v3, 4  ;;  %vm8247_vm3 = vcmp.lt.s32.totalorder %v5916_v1, 4  ;;  %v8248_v53 = vmov 0 }
 0x1d8   : > { %vm2587_vm0 = vmand %vm8246_vm2, %vm7966_vm11  ;;  %4649 = vmatprep.mubr.msk.bf16.mxu0 %vm8251_vm1, %v1198_v26  ;;  %vm8253_vm11 = vcmp.lt.s32.totalorder %v5777_v29, 5  ;;  %vm8255_vm5 = vcmp.lt.s32.totalorder %v5777_v29, 4  ;;  %vm8256_vm12 = vcmp.lt.s32.totalorder %v6103_v2, 4  ;;  %v8265_v8 = vmov 0 }
 0x1d9   : > { %vm6346_vm14 = vmand %vm2586_vm8, %vm8247_vm3  ;;  %v6356_v55 = vsel %vm8253_vm11, %v507_v6, %v508_v47  ;;  %v6360_v34 = vsel %vm8255_vm5, %v582_v10, %v583_v54  ;;  %v8260_v47 = vmov 0  ;;  %vm8263_vm5 = vnez %v8136_v44 }
 0x1da   : > { %v8249_v53 = vsel %vm6346_vm14, 4294967295, %v8248_v53  ;;  %8254 = vst [vmem:[#allocation54_spill] sm:$0xff] %v6356_v55  ;;  %vm6366_vm8 = vmand %vm6014_vm9, %vm8256_vm12  ;;  %v1285_v54 = vsel %vm8263_vm5, %v6332_v25, 0.0  ;;  %v8271_v44 = vmov 0  ;;  %vm8284_vm2 = vcmp.lt.s32.totalorder %v6286_v19, 4 }
 0x1db   : > { %8250 = vst [vmem:[#allocation53_spill] sm:$0xff] %v8249_v53  ;;  %vm8259_vm1 = vmmov %vm8253_vm11  ;;  %v8373_v5 = vmov 0 }
 0x1dc   : > { %v6372_v26 = vsel %vm8259_vm1, %v506_v32, %v507_v6  ;;  %vm6376_vm11 = vmand %vm2587_vm0, %vm7969_vm15  ;;  %vm8267_vm1 = vcmp.lt.s32.totalorder %v6116_v0, 4  ;;  %v8268_v32 = vmov 0  ;;  %v606_v6 = vsel %vm6014_vm9, %v6360_v34, 0.0 }
 0x1dd   : > { %v8261_v47 = vsel %vm6376_vm11, 4294967295, %v8260_v47  ;;  %vm8264_vm3 = vmmov %vm8256_vm12  ;;  %v1196_v7 = vsel %vm6155_vm6, %v6372_v26, 0.0  ;;  %vm8274_vm9 = vnez %v8172_v22  ;;  %vm8278_vm15 = vnez %v8181_v38 }
 0x1de   : > { %8262 = vst [vmem:[#allocation55_spill] sm:$0xff] %v8261_v47  ;;  %vm6387_vm12 = vmand %vm8252_vm4, %vm8264_vm3  ;;  %vm8270_vm4 = vcmp.ge.s32.totalorder %v6096_v33, 0  ;;  %vm8273_vm3 = vcmp.lt.s32.totalorder %v5784_v36, 4  ;;  %v571_v23 = vsel %vm8278_vm15, %v6356_v55, 0.0  ;;  %v610_v60 = vpack.c.bf16 %v607_v30, %v606_v6 }
 0x1df   : > { %v8266_v8 = vsel %vm6387_vm12, 4294967295, %v8265_v8  ;;  %vm6395_vm0 = vmand %vm8263_vm5, %vm8267_vm1  ;;  %vm8279_vm6 = vnez %v8183_v45  ;;  %v8282_v22 = vmov 0  ;;  %vm8285_vm15 = vnez %v8166_v20 }
 0x1e0   : > { %v8269_v32 = vsel %vm6395_vm0, 4294967295, %v8268_v32  ;;  %vm6412_vm5 = vmand %vm6276_vm7, %vm8270_vm4  ;;  %v1197_v47 = vsel %vm8279_vm6, %v6356_v55, 0.0  ;;  %vm8280_vm4 = vcmp.lt.s32.totalorder %v5777_v29, 4  ;;  %v8286_v38 = vmov 0 }
 0x1e1   : > { %v8272_v44 = vsel %vm6412_vm5, 4294967295, %v8271_v44  ;;  %vm6420_vm1 = vmand %vm8274_vm9, %vm8273_vm3  ;;  %v6432_v53 = vsel %vm8280_vm4, %v581_v51, %v582_v10  ;;  %vm8281_vm3 = vnez %v8163_v15  ;;  %vm8288_vm6 = vcmp.ge.s32.totalorder %v5916_v1, 0 }
 0x1e2   : > { %v8276_v62 = vsel %vm6420_vm1, 4294967295, %v8275_v62  ;;  %vm6438_vm9 = vmand %vm8281_vm3, %vm7978_vm10  ;;  %vm8289_vm4 = vnez %v8145_v11  ;;  %vm8292_vm10 = vcmp.lt.s32.totalorder %v6116_v0, 4  ;;  %v8293_v51 = vmov 0 }
 0x1e3   : > { %8277 = vst [vmem:[#allocation56_spill] sm:$0xff] %v8276_v62  ;;  %v8283_v22 = vsel %vm6438_vm9, 4294967295, %v8282_v22  ;;  %vm6446_vm11 = vmand %vm8285_vm15, %vm8284_vm2  ;;  %v1199_v10 = vpack.c.bf16 %v1197_v47, %v1196_v7  ;;  %vm8295_vm2 = vcmp.ge.s32.totalorder %v6060_v18, 0  ;;  %v8297_v6 = vmov 0 }
 0x1e4   : > { %v8287_v38 = vsel %vm6446_vm11, 4294967295, %v8286_v38  ;;  %vm6454_vm14 = vmand %vm8289_vm4, %vm8288_vm6  ;;  %vm8296_vm11 = vnez %v8192_v31  ;;  %v609_v43 = vsel %vm6276_vm7, %v6432_v53, 0.0  ;;  %vm8303_vm4 = vnez %v8205_v61 }
 0x1e5   : > { %vm6462_vm9 = vmand %vm8203_vm13, %vm8292_vm10  ;;  %v608_v11 = vsel %vm8296_vm11, %v6332_v25, 0.0  ;;  %vm8299_vm13 = vcmp.ge.s32.totalorder %v5919_v3, 0  ;;  %vm8300_vm10 = vnez %v8147_v16  ;;  %v572_v47 = vsel %vm8303_vm4, %v6291_v28, 0.0  ;;  %v5108_v16 = vld [vmem:[#allocation6 + $0x78] sm:$0xff]   ;;  %v5109_v28 = vld [vmem:[#allocation6 + $0x8] sm:$0xff]  }
 0x1e6   : > { %v8294_v51 = vsel %vm6462_vm9, 4294967295, %v8293_v51  ;;  %vm6470_vm0 = vmand %vm8296_vm11, %vm8295_vm2  ;;  %vm8304_vm2 = vcmask 261120   ;;  %v752_v30 = vrot.slane %v6254_v52, 5  ;;  %v611_v25 = vpack.c.bf16 %v609_v43, %v608_v11 }
 0x1e7   : > { %v8298_v6 = vsel %vm6470_vm0, 4294967295, %v8297_v6  ;;  %vm6484_vm6 = vmand %vm8300_vm10, %vm8299_vm13  ;;  %4601 = vmatprep.mubr.msk.bf16.mxu1 %vm8304_vm2, %v610_v60  ;;  %vm8305_vm0 = vcmp.lt.s32.totalorder %v6286_v19, 4  ;;  %v8306_v55 = vmov 0  ;;  %vm8308_vm13 = vcmp.lt.s32.totalorder %v5786_v37, 4 }
 0x1e8   : > { %vm6497_vm9 = vmand %vm6276_vm7, %vm8305_vm0  ;;  %vm8309_vm10 = vnez %v8201_v13  ;;  %v8310_v61 = vmov 0  ;;  %v753_v60 = vrot.slane %v6167_v4, 5  ;;  %v754_v11 = vrot.slane %v6194_v27, 5 }
 0x1e9   : > { %v8307_v55 = vsel %vm6497_vm9, 4294967295, %v8306_v55  ;;  %vm6505_vm12 = vmand %vm8309_vm10, %vm8308_vm13  ;;  %vm8314_vm7 = vcmp.lt.s32.totalorder %v6282_v35, 4  ;;  %v1288_v43 = vpack.c.bf16 %v1285_v54, %v1284_v17  ;;  %v575_v13 = vpack.c.bf16 %v572_v47, %v571_v23  ;;  %v6565_v54 = vld [vmem:[#allocation6 + $0x80] sm:$0xff]  }
 0x1ea   : > { %v8311_v61 = vsel %vm6505_vm12, 4294967295, %v8310_v61  ;;  %vm8313_vm4 = vmmov %vm8304_vm2  ;;  %vm8317_vm2 = vcmp.lt.s32.totalorder %v5916_v1, 4  ;;  %v8318_v37 = vmov 0  ;;  %v8323_v31 = vmov 0 }
 0x1eb   : > { %8312 = vst [vmem:[#allocation57_spill] sm:$0xff] %v8311_v61  ;;  %4650 = vmatmul.mubr.msk.bf16.vlgmr.msra.gmra.mrb[0].mxu0 %vm8313_vm4, %v1199_v10  ;;  %vm6516_vm0 = vmand %vm8296_vm11, %vm8314_vm7  ;;  %4602 = vmatmul.mubr.msk.bf16.vlgmr.msra.gmra.mrb[0].mxu1 %vm8313_vm4, %v611_v25  ;;  %vm8321_vm11 = vcmp.ge.s32.totalorder %v5988_v39, 0  ;;  %vm8322_vm7 = vnez %v8215_v9  ;;  %vm8325_vm9 = vcmp.ge.s32.totalorder %v5994_v40, 0  ;;  %v8327_v17 = vmov 0 }
 0x1ec   : > { %v8316_v56 = vsel %vm6516_vm0, 4294967295, %v8315_v56  ;;  %vm6524_vm13 = vmand %vm6454_vm14, %vm8317_vm2  ;;  %4654 = vmatpush3.bf16.msra.mxu0 %v5799_v42  ;;  %vm8326_vm14 = vnez %v8219_v58  ;;  %vm8329_vm10 = vcmp.ge.s32.totalorder %v6060_v18, 0  ;;  %vm8330_vm4 = vnez %v8233_v59  ;;  %4606 = vmatpush3.bf16.msra.mxu1 %v5835_v49 }
 0x1ed   : > { %v8319_v37 = vsel %vm6524_vm13, 4294967295, %v8318_v37  ;;  %vm6535_vm0 = vmand %vm8322_vm7, %vm8321_vm11  ;;  %v8331_v42 = vmov 0  ;;  %vm8333_vm11 = vcmp.lt.s32.totalorder %v5919_v3, 4  ;;  %v8334_v25 = vmov 0  ;;  %4655 = vmatprep.subr.bf16.mxu0 %v5108_v16  ;;  %4607 = vmatprep.subr.bf16.mxu1 %v5109_v28  ;;  %v6613_v3 = vld [vmem:[#allocation6 + $0x20] sm:$0xff]  }
 0x1ee   : > { %8320 = vst [vmem:[#allocation58_spill] sm:$0xff] %v8319_v37  ;;  %v8324_v31 = vsel %vm6535_vm0, 4294967295, %v8323_v31  ;;  %vm6543_vm2 = vmand %vm8326_vm14, %vm8325_vm9  ;;  %vm8337_vm9 = vcmask 261120   ;;  %v751_v23 = vrot.slane %v6139_v12, 5  ;;  %v8346_v7 = vmov 0 }
 0x1ef   : > { %v8328_v17 = vsel %vm6543_vm2, 4294967295, %v8327_v17  ;;  %vm6551_vm5 = vmand %vm8330_vm4, %vm8329_vm10  ;;  %4657 = vmatprep.mubr.msk.bf16.mxu0 %vm8337_vm9, %v1288_v43  ;;  %vm8339_vm10 = vcmp.ge.s32.totalorder %v6001_v41, 0  ;;  %vm8340_vm4 = vnez %v8196_v63  ;;  %vm8353_vm2 = vnez %v8187_v21 }
 0x1f0   : > { %v8332_v42 = vsel %vm6551_vm5, 4294967295, %v8331_v42  ;;  %vm6559_vm7 = vmand %vm6484_vm6, %vm8333_vm11  ;;  %vm8343_vm6 = vcmp.lt.s32.totalorder %v5777_v29, 3  ;;  %v8361_v21 = vmov 0  ;;  %4656 = vmatpush3.bf16.msra.mxu0 %v5108_v16  ;;  %v862_v63 = vrot.slane %v6139_v12, 7  ;;  %4608 = vmatpush3.bf16.msra.mxu1 %v5109_v28 }
 0x1f1   : > { %v8335_v25 = vsel %vm6559_vm7, 4294967295, %v8334_v25  ;;  %vm8338_vm14 = vmmov %vm8337_vm9  ;;  %v6578_v10 = vsel %vm8343_vm6, %v752_v30, %v753_v60  ;;  %vm8348_vm9 = vcmp.ge.s32.totalorder %v6096_v33, 0  ;;  %vm8352_vm6 = vcmp.ge.s32.totalorder %v6010_v46, 0  ;;  %4661 = vmatprep.subr.bf16.mxu0 %v6565_v54  ;;  %4613 = vmatprep.subr.bf16.mxu1 %v6613_v3 }
 0x1f2   : > { %8336 = vst [vmem:[#allocation59_spill] sm:$0xff] %v8335_v25  ;;  %4609 = vmatprep.mubr.msk.bf16.mxu1 %vm8338_vm14, %v575_v13  ;;  %vm6572_vm5 = vmand %vm8340_vm4, %vm8339_vm10  ;;  %vm8345_vm14 = vcmp.ge.s32.totalorder %v5988_v39, 0  ;;  %vm8349_vm10 = vnez %v8240_v14  ;;  %v780_v16 = vsel %vm6366_vm8, %v6578_v10, 0.0  ;;  %v1287_v14 = vsel %vm8285_vm15, %v6360_v34, 0.0 }
 0x1f3   : > { %8344 = vst [vmem:[#allocation60_spill] sm:$0xff] %v6578_v10  ;;  %vm6585_vm11 = vmand %vm6420_vm1, %vm8345_vm14  ;;  %vm8356_vm14 = vcmp.lt.s32.totalorder %v5777_v29, 3  ;;  %v864_v45 = vrot.slane %v6167_v4, 7  ;;  %vm8375_vm8 = vnez %v8272_v44  ;;  %vm8377_vm15 = vnez %v8269_v32 }
 0x1f4   : > { %v8347_v7 = vsel %vm6585_vm11, 4294967295, %v8346_v7  ;;  %vm6593_vm4 = vmand %vm8349_vm10, %vm8348_vm9  ;;  %v6607_v43 = vsel %vm8356_vm14, %v753_v60, %v754_v11  ;;  %vm8360_vm9 = vcmp.ge.s32.totalorder %v5994_v40, 0  ;;  %v574_v15 = vsel %vm8375_vm8, %v6372_v26, 0.0 }
 0x1f5   : > { %vm6601_vm0 = vmand %vm8353_vm2, %vm8352_vm6  ;;  %8357 = vst [vmem:[#allocation61_spill] sm:$0xff] %v6607_v43  ;;  %vm8363_vm6 = vcmp.ge.s32.totalorder %v6096_v33, 0  ;;  %v863_v25 = vrot.slane %v6254_v52, 7  ;;  %vm8382_vm8 = vcmp.ge.s32.totalorder %v5994_v40, 0  ;;  %vm8383_vm2 = vnez %v8089_v50 }
 0x1f6   : > { %vm8358_vm11 = vmmov %vm8356_vm14  ;;  %v865_v49 = vrot.slane %v6194_v27, 7  ;;  %v8394_v62 = vmov 0  ;;  %v8491_v1 = vmov 0  ;;  %v8495_v58 = vrot.slane %v6139_v12, 1 }
 0x1f7   : > { %v6611_v13 = vsel %vm8358_vm11, %v754_v11, %v751_v23  ;;  %vm6619_vm10 = vmand %vm6505_vm12, %vm8360_vm9  ;;  %v6633_v11 = vsel %vm8358_vm11, %v751_v23, %v752_v30  ;;  %vm8366_vm9 = vcmp.ge.s32.totalorder %v6060_v18, 0  ;;  %v8370_v30 = vmov 0 }
 0x1f8   : > { %8359 = vst [vmem:[#allocation62_spill] sm:$0xff] %v6611_v13  ;;  %v8362_v21 = vsel %vm6619_vm10, 4294967295, %v8361_v21  ;;  %vm6627_vm14 = vmand %vm6559_vm7, %vm8363_vm6  ;;  %vm8369_vm6 = vcmp.lt.s32.totalorder %v6001_v41, 4  ;;  %v1286_v23 = vsel %vm8281_vm3, %v6432_v53, 0.0  ;;  %vm8376_vm3 = vnez %v8266_v8 }
 0x1f9   : > { %vm6641_vm10 = vmand %vm6524_vm13, %vm8366_vm9  ;;  %vm8372_vm9 = vcmp.lt.s32.totalorder %v6010_v46, 4  ;;  %v1374_v20 = vsel %vm8376_vm3, %v6607_v43, 0.0  ;;  %v1375_v37 = vsel %vm8377_vm15, %v6611_v13, 0.0  ;;  %vm8386_vm3 = vnez %v8283_v22 }
 0x1fa   : > { %vm6650_vm11 = vmand %vm6572_vm5, %vm8369_vm6  ;;  %v1376_v32 = vsel %vm8386_vm3, %v6633_v11, 0.0  ;;  %vm8387_vm15 = vnez %v8287_v38  ;;  %v8389_v46 = vmov 0  ;;  %vm8391_vm3 = vnez %v8294_v51 }
 0x1fb   : > { %v8371_v30 = vsel %vm6650_vm11, 4294967295, %v8370_v30  ;;  %vm6670_vm6 = vmand %vm6601_vm0, %vm8372_vm9  ;;  %vm8378_vm0 = vcmp.ge.s32.totalorder %v5988_v39, 0  ;;  %vm8379_vm9 = vnez %v8087_v48  ;;  %v1377_v44 = vsel %vm8387_vm15, %v6578_v10, 0.0 }
 0x1fc   : > { %v8374_v5 = vsel %vm6670_vm6, 4294967295, %v8373_v5  ;;  %vm6688_vm5 = vmand %vm8379_vm9, %vm8378_vm0  ;;  %vm8388_vm0 = vcmp.ge.s32.totalorder %v6060_v18, 0  ;;  %v781_v22 = vsel %vm8391_vm3, %v6607_v43, 0.0  ;;  %v1289_v38 = vpack.c.bf16 %v1287_v14, %v1286_v23 }
 0x1fd   : > { %vm6696_vm13 = vmand %vm8383_vm2, %vm8382_vm8  ;;  %vm8392_vm15 = vnez %v8298_v6  ;;  %vm8393_vm7 = vcmp.ge.s32.totalorder %v6096_v33, 0  ;;  %v1378_v51 = vpack.c.bf16 %v1375_v37, %v1374_v20  ;;  %v784_v43 = vpack.c.bf16 %v781_v22, %v780_v16  ;;  %v5112_v37 = vld [vmem:[#allocation6 + $0x88] sm:$0xff]  }
 0x1fe   : > { %vm6715_vm8 = vmand %vm6650_vm11, %vm8388_vm0  ;;  %v573_v41 = vsel %vm8392_vm15, %v6295_v24, 0.0  ;;  %vm8396_vm3 = vnez %v8307_v55  ;;  %vm8397_vm15 = vcmp.lt.s32.totalorder %v6103_v2, 4  ;;  %v8398_v6 = vmov 0  ;;  %v5113_v22 = vld [vmem:[#allocation6 + $0x28] sm:$0xff]  }
 0x1ff   : > { %v8390_v46 = vsel %vm6715_vm8, 4294967295, %v8389_v46  ;;  %vm6732_vm0 = vmand %vm6670_vm6, %vm8393_vm7  ;;  %v576_v10 = vpack.c.bf16 %v574_v15, %v573_v41  ;;  %v783_v14 = vsel %vm8396_vm3, %v6633_v11, 0.0  ;;  %vm8401_vm7 = vcmp.lt.s32.totalorder %v6116_v0, 4 }
 0x200   : > { %v8395_v62 = vsel %vm6732_vm0, 4294967295, %v8394_v62  ;;  %vm6743_vm12 = vmand %vm8379_vm9, %vm8397_vm15  ;;  %v8402_v41 = vmov 0  ;;  %v6755_v16 = vpack.c.bf16 %v1377_v44, %v1376_v32  ;;  %vm8406_vm3 = vnez %v8316_v56  ;;  %v8423_v32 = vld [vmem:[#allocation25_spill] sm:$0xff] }
 0x201   : > { %v8399_v6 = vsel %vm6743_vm12, 4294967295, %v8398_v6  ;;  %vm6751_vm1 = vmand %vm8383_vm2, %vm8401_vm7  ;;  %v782_v55 = vsel %vm8406_vm3, %v6611_v13, 0.0  ;;  %vm8407_vm15 = vcmp.lt.s32.totalorder %v5777_v29, 1  ;;  %vm8409_vm7 = vcmp.lt.s32.totalorder %v6282_v35, 4 }
 0x202   : > { %8400 = vst [vmem:[#allocation63_spill] sm:$0xff] %v8399_v6  ;;  %v8403_v41 = vsel %vm6751_vm1, 4294967295, %v8402_v41  ;;  %8405 = vst [vmem:[#allocation65_spill] sm:$0xff] %v6755_v16  ;;  %v6762_v23 = vsel %vm8407_vm15, %v863_v25, %v864_v45  ;;  %v8410_v20 = vmov 0  ;;  %vm8413_vm2 = vcmp.lt.s32.totalorder %v6286_v19, 4 }
 0x203   : > { %8404 = vst [vmem:[#allocation64_spill] sm:$0xff] %v8403_v41  ;;  %vm8408_vm12 = vmmov %vm8407_vm15  ;;  %v8414_v56 = vmov 0  ;;  %vm8417_vm15 = vcmp.ge.s32.totalorder %v5988_v39, 0  ;;  %v1070_v41 = vrot.slane %v6194_v27, 1  ;;  %v8472_v44 = vmov 0 }
 0x204   : > { %v6766_v15 = vsel %vm8408_vm12, %v862_v63, %v863_v25  ;;  %vm6772_vm1 = vmand %vm6650_vm11, %vm8409_vm7  ;;  %vm8418_vm12 = vnez %v8103_v57  ;;  %v8419_v25 = vmov 0  ;;  %vm8422_vm7 = vcmp.ge.s32.totalorder %v5784_v36, 0 }
 0x205   : > { %v8411_v20 = vsel %vm6772_vm1, 4294967295, %v8410_v20  ;;  %vm6780_vm3 = vmand %vm6670_vm6, %vm8413_vm2  ;;  %vm8424_vm1 = vnez %v8423_v32  ;;  %vm8427_vm2 = vcmask 261120   ;;  %v8431_v32 = vld [vmem:[#allocation54_spill] sm:$0xff]  ;;  %v6943_v13 = vpack.c.bf16 %v6194_v27, %v6167_v4 }
 0x206   : > { %8412 = vst [vmem:[#allocation66_spill] sm:$0xff] %v8411_v20  ;;  %v8415_v56 = vsel %vm6780_vm3, 4294967295, %v8414_v56  ;;  %vm6788_vm9 = vmand %vm8418_vm12, %vm8417_vm15  ;;  %4658 = vmatmul.mubr.msk.bf16.vlgmr.msra.gmra.mrb[0].mxu0 %vm8427_vm2, %v1289_v38  ;;  %vm8428_vm3 = vnez %v8324_v31  ;;  %vm8429_vm15 = vnez %v8328_v17  ;;  %v8434_v38 = vld [vmem:[#allocation29_spill] sm:$0xff]  ;;  %v8440_v31 = vld [vmem:[#allocation34_spill] sm:$0xff]  ;;  %v8442_v17 = vmov 0 }
 0x207   : > { %8416 = vst [vmem:[#allocation67_spill] sm:$0xff] %v8415_v56  ;;  %v8420_v25 = vsel %vm6788_vm9, 4294967295, %v8419_v25  ;;  %vm6796_vm11 = vmand %vm8424_vm1, %vm8422_vm7  ;;  %v1484_v59 = vsel %vm8428_vm3, %v6295_v24, 0.0  ;;  %v1485_v61 = vsel %vm8429_vm15, %v6372_v26, 0.0  ;;  %vm8430_vm9 = vcmp.lt.s32.totalorder %v5777_v29, 1  ;;  %4662 = vmatpush3.bf16.msra.mxu0 %v6565_v54  ;;  %v6858_v54 = vld [vmem:[#allocation6 + $0x90] sm:$0xff]  }
 0x208   : > { %8421 = vst [vmem:[#allocation68_spill] sm:$0xff] %v8420_v25  ;;  %v6809_v16 = vsel %vm8430_vm9, %v864_v45, %v865_v49  ;;  %vm8432_vm1 = vnez %v8332_v42  ;;  %vm8433_vm7 = vcmp.ge.s32.totalorder %v5994_v40, 0  ;;  %vm8435_vm2 = vnez %v8434_v38  ;;  %v8445_v45 = vld [vmem:[#allocation22_spill] sm:$0xff]  ;;  %4663 = vmatprep.subr.bf16.mxu0 %v5112_v37 }
 0x209   : > { %v1486_v25 = vsel %vm8432_vm1, %v8431_v32, 0.0  ;;  %vm6818_vm6 = vmand %vm8435_vm2, %vm8433_vm7  ;;  %v8436_v56 = vmov 0  ;;  %vm8439_vm3 = vcmp.ge.s32.totalorder %v6060_v18, 0  ;;  %vm8441_vm15 = vnez %v8440_v31  ;;  %v8447_v42 = vld [vmem:[#allocation26_spill] sm:$0xff]  ;;  %v7162_v31 = vld [vmem:[#allocation6 + $0xa0] sm:$0xff]  }
 0x20a   : > { %v8437_v56 = vsel %vm6818_vm6, 4294967295, %v8436_v56  ;;  %vm6826_vm0 = vmand %vm8441_vm15, %vm8439_vm3  ;;  %vm8446_vm9 = vcmp.ge.s32.totalorder %v8445_v45, 0  ;;  %vm8448_vm1 = vnez %v8447_v42  ;;  %vm8451_vm7 = vcmask 261120   ;;  %v8454_v42 = vld [vmem:[#allocation35_spill] sm:$0xff] }
 0x20b   : > { %8438 = vst [vmem:[#allocation25_spill] sm:$0xff] %v8437_v56  ;;  %v8443_v17 = vsel %vm6826_vm0, 4294967295, %v8442_v17  ;;  %vm6834_vm8 = vmand %vm8448_vm1, %vm8446_vm9  ;;  %4610 = vmatmul.mubr.msk.bf16.vlgmr.msra.gmra.mrb[0].mxu1 %vm8451_vm7, %v576_v10  ;;  %v6840_v56 = vpack.c.bf16 %v783_v14, %v782_v55  ;;  %vm8452_vm6 = vcmp.lt.s32.totalorder %v5777_v29, 1  ;;  %vm8453_vm3 = vcmp.ge.s32.totalorder %v6096_v33, 0  ;;  %v8461_v10 = vld [vmem:[#allocation48_spill] sm:$0xff]  ;;  %4664 = vmatpush3.bf16.msra.mxu0 %v5112_v37 }
 0x20c   : > { %8444 = vst [vmem:[#allocation29_spill] sm:$0xff] %v8443_v17  ;;  %v6844_v20 = vsel %vm8452_vm6, %v865_v49, %v862_v63  ;;  %v1069_v17 = vrot.slane %v6167_v4, 1  ;;  %vm8455_vm9 = vnez %v8454_v42  ;;  %vm8458_vm0 = vmmov %vm8451_vm7  ;;  %vm8460_vm6 = vnez %v8347_v7  ;;  %4614 = vmatpush3.bf16.msra.mxu1 %v6613_v3  ;;  %4669 = vmatprep.subr.bf16.mxu0 %v6858_v54 }
 0x20d   : > { %vm6852_vm1 = vmand %vm8455_vm9, %vm8453_vm3  ;;  %4665 = vmatprep.mubr.msk.bf16.mxu0 %vm8458_vm0, %v1378_v51  ;;  %v895_v63 = vsel %vm8460_vm6, %v6762_v23, 0.0  ;;  %v1487_v49 = vsel %vm6593_vm4, %v8461_v10, 0.0  ;;  %v898_v14 = vsel %vm6627_vm14, %v6766_v15, 0.0  ;;  %v1068_v55 = vrot.slane %v6254_v52, 1  ;;  %4615 = vmatprep.subr.bf16.mxu1 %v5113_v22  ;;  %8486 = vst [vmem:[#allocation35_spill] sm:$0xff] %v6943_v13 }
 0x20e   : > { %vm8459_vm7 = vmmov %vm8458_vm0  ;;  %vm8462_vm0 = vcmp.lt.s32.totalorder %v6103_v2, 4  ;;  %v6887_v47 = vpack.c.bf16 %v1485_v61, %v1484_v59  ;;  %vm8468_vm4 = vnez %v8362_v21  ;;  %v6892_v51 = vpack.c.bf16 %v1487_v49, %v1486_v25  ;;  %v6930_v61 = vld [vmem:[#allocation6 + $0x30] sm:$0xff]   ;;  %v8483_v49 = vld [vmem:[#allocation52_spill] sm:$0xff] }
 0x20f   : > { %4617 = vmatprep.mubr.msk.bf16.mxu1 %vm8459_vm7, %v784_v43  ;;  %vm6874_vm3 = vmand %vm8418_vm12, %vm8462_vm0  ;;  %v8463_v43 = vmov 0  ;;  %vm8465_vm7 = vcmp.lt.s32.totalorder %v5784_v36, 4  ;;  %v896_v60 = vsel %vm8468_vm4, %v6809_v16, 0.0  ;;  %v6896_v36 = vpack.c.bf16 %v6254_v52, %v6139_v12  ;;  %v8498_v52 = vld [vmem:[#allocation53_spill] sm:$0xff] }
 0x210   : > { %v8464_v43 = vsel %vm6874_vm3, 4294967295, %v8463_v43  ;;  %vm6882_vm6 = vmand %vm6796_vm11, %vm8465_vm7  ;;  %8469 = vst [vmem:[#allocation34_spill] sm:$0xff] %v6892_v51  ;;  %vm8471_vm14 = vcmp.lt.s32.totalorder %v6116_v0, 4  ;;  %vm8474_vm0 = vcmp.lt.s32.totalorder %v6282_v35, 4  ;;  %vm8477_vm4 = vcmp.lt.s32.totalorder %v6286_v19, 4  ;;  %4616 = vmatpush3.bf16.msra.mxu1 %v5113_v22 }
 0x211   : > { %8470 = vst [vmem:[#allocation26_spill] sm:$0xff] %v6896_v36  ;;  %vm6902_vm11 = vmand %vm8435_vm2, %vm8471_vm14  ;;  %v8478_v21 = vmov 0  ;;  %vm8480_vm14 = vcmp.lt.s32.totalorder %v8445_v45, 4  ;;  %v897_v25 = vsel %vm6641_vm10, %v6844_v20, 0.0  ;;  %v8488_v51 = vmov 0  ;;  %4621 = vmatprep.subr.bf16.mxu1 %v6930_v61 }
 0x212   : > { %v8473_v44 = vsel %vm6902_vm11, 4294967295, %v8472_v44  ;;  %vm6910_vm7 = vmand %vm8441_vm15, %vm8474_vm0  ;;  %vm8490_vm10 = vcmp.ge.s32.totalorder %v5994_v40, 0  ;;  %v899_v45 = vpack.c.bf16 %v896_v60, %v895_v63  ;;  %v6961_v36 = vpack.c.bf16 %v898_v14, %v897_v25  ;;  %v8508_v60 = vld [vmem:[#allocation55_spill] sm:$0xff]  ;;  %v8524_v25 = vld [vmem:[#allocation50_spill] sm:$0xff] }
 0x213   : > { %vm6918_vm3 = vmand %vm8455_vm9, %vm8477_vm4  ;;  %vm8494_vm4 = vcmp.lt.s32.totalorder %v5777_v29, 7  ;;  %v8500_v27 = vmov 0  ;;  %v8504_v63 = vmov %v8495_v58  ;;  %v2029_v14 = vsel %vm6696_vm13, %v8431_v32, 0.0 }
 0x214   : > { %v8479_v21 = vsel %vm6918_vm3, 4294967295, %v8478_v21  ;;  %vm6926_vm11 = vmand %vm6834_vm8, %vm8480_vm14  ;;  %vm8487_vm8 = vcmp.ge.s32.totalorder %v5988_v39, 0  ;;  %8493 = vst [vmem:[#allocation48_spill] sm:$0xff] %v6961_v36  ;;  %v6965_v13 = vsel %vm8494_vm4, %v1069_v17, %v1070_v41  ;;  %vm8515_vm13 = vnez %v8087_v48 }
 0x215   : > { %vm6949_vm14 = vmand %vm6882_vm6, %vm8487_vm8  ;;  %v8517_v22 = vmov 0  ;;  %v2412_v6 = vsel %vm8418_vm12, %v6360_v34, 0.0  ;;  %v2414_v57 = vsel %vm8441_vm15, %v8483_v49, 0.0  ;;  %vm8578_vm12 = vnez %v8464_v43 }
 0x216   : > { %v8489_v51 = vsel %vm6949_vm14, 4294967295, %v8488_v51  ;;  %vm6957_vm0 = vmand %vm6926_vm11, %vm8490_vm10  ;;  %vm8497_vm14 = vcmp.ge.s32.totalorder %v6060_v18, 0  ;;  %vm8499_vm10 = vnez %v8498_v52 }
 0x217   : > { %v8492_v1 = vsel %vm6957_vm0, 4294967295, %v8491_v1  ;;  %vm8496_vm8 = vmmov %vm8494_vm4 }
 0x218   : > { %v6971_v9 = vsel %vm8496_vm8, %v1070_v41, %v8495_v58  ;;  %vm6977_vm3 = vmand %vm8499_vm10, %vm8497_vm14  ;;  %v2028_v41 = vsel %vm6688_vm5, %v6372_v26, 0.0  ;;  %vm8507_vm14 = vcmp.ge.s32.totalorder %v6096_v33, 0  ;;  %vm8509_vm8 = vnez %v8508_v60 }
 0x219   : > { %v8501_v27 = vsel %vm6977_vm3, 4294967295, %v8500_v27  ;;  %vm8502_vm0 = vmmov %vm8494_vm4  ;;  %v7006_v29 = vpack.c.bf16 %v2029_v14, %v2028_v41  ;;  %vm8514_vm5 = vnez %v8395_v62  ;;  %vm8519_vm3 = vcmp.lt.s32.totalorder %v6116_v0, 4 }
 0x21a   : > { %v6984_v37 = vsel %vm8502_vm0, %v1068_v55, %v1069_v17  ;;  %vm8505_vm4 = vmmov %vm8502_vm0  ;;  %v8510_v17 = vmov 0  ;;  %v2031_v8 = vsel %vm8514_vm5, %v6295_v24, 0.0  ;;  %vm8523_vm5 = vnez %v8089_v50 }
 0x21b   : > { %8503 = vst [vmem:[#allocation52_spill] sm:$0xff] %v6984_v37  ;;  %v6990_v58 = vsel %vm8505_vm4, %v8504_v63, %v1068_v55  ;;  %vm7002_vm0 = vmand %vm8509_vm8, %vm8507_vm14  ;;  %vm8513_vm4 = vnez %v8390_v46  ;;  %v2118_v55 = vsel %vm8515_vm13, %v6432_v53, 0.0  ;;  %vm8516_vm14 = vcmp.lt.s32.totalorder %v6103_v2, 4 }
 0x21c   : > { %8506 = vst [vmem:[#allocation53_spill] sm:$0xff] %v6990_v58  ;;  %v8511_v17 = vsel %vm7002_vm0, 4294967295, %v8510_v17  ;;  %8512 = vst [vmem:[#allocation55_spill] sm:$0xff] %v7006_v29  ;;  %v2030_v28 = vsel %vm8513_vm4, %v8461_v10, 0.0  ;;  %v8520_v46 = vmov 0  ;;  %v2119_v62 = vsel %vm8523_vm5, %v6360_v34, 0.0 }
 0x21d   : > { %vm7021_vm0 = vmand %vm6882_vm6, %vm8516_vm14  ;;  %v7034_v48 = vpack.c.bf16 %v2031_v8, %v2030_v28  ;;  %vm8525_vm13 = vnez %v8371_v30  ;;  %vm8526_vm14 = vnez %v8374_v5  ;;  %v8528_v14 = vmov 0  ;;  %v8537_v28 = vld [vmem:[#allocation63_spill] sm:$0xff]  ;;  %v8540_v29 = vld [vmem:[#allocation64_spill] sm:$0xff] }
 0x21e   : > { %v8518_v22 = vsel %vm7021_vm0, 4294967295, %v8517_v22  ;;  %vm7029_vm4 = vmand %vm6926_vm11, %vm8519_vm3  ;;  %v2120_v63 = vsel %vm8525_vm13, %v8524_v25, 0.0  ;;  %v2121_v41 = vsel %vm8526_vm14, %v8483_v49, 0.0  ;;  %vm8527_vm3 = vcmp.lt.s32.totalorder %v6282_v35, 4  ;;  %v8542_v35 = vld [vmem:[#allocation37_spill] sm:$0xff] }
 0x21f   : > { %v8521_v46 = vsel %vm7029_vm4, 4294967295, %v8520_v46  ;;  %8522 = vst [vmem:[#allocation69_spill] sm:$0xff] %v7034_v48  ;;  %vm7049_vm4 = vmand %vm8499_vm10, %vm8527_vm3  ;;  %vm8531_vm0 = vcmp.lt.s32.totalorder %v6286_v19, 4  ;;  %v8532_v50 = vmov 0  ;;  %v7061_v30 = vpack.c.bf16 %v2119_v62, %v2118_v55  ;;  %v8539_v48 = vld [vmem:[#allocation60_spill] sm:$0xff]  ;;  %v8549_v62 = vld [vmem:[#allocation61_spill] sm:$0xff] }
 0x220   : > { %v8529_v14 = vsel %vm7049_vm4, 4294967295, %v8528_v14  ;;  %vm7057_vm5 = vmand %vm8509_vm8, %vm8531_vm0  ;;  %v7063_v5 = vpack.c.bf16 %v2121_v41, %v2120_v63  ;;  %vm8538_vm13 = vnez %v8537_v28  ;;  %vm8541_vm14 = vnez %v8540_v29  ;;  %v8544_v19 = vld [vmem:[#allocation32_spill] sm:$0xff]  ;;  %v8550_v63 = vld [vmem:[#allocation66_spill] sm:$0xff] }
 0x221   : > { %8530 = vst [vmem:[#allocation50_spill] sm:$0xff] %v8529_v14  ;;  %v8533_v50 = vsel %vm7057_vm5, 4294967295, %v8532_v50  ;;  %8535 = vst [vmem:[#allocation71_spill] sm:$0xff] %v7061_v30  ;;  %v2208_v8 = vsel %vm8538_vm13, %v6633_v11, 0.0  ;;  %v2209_v36 = vsel %vm8541_vm14, %v8539_v48, 0.0  ;;  %vm8543_vm3 = vcmp.ge.s32.totalorder %v8542_v35, 0 }
 0x222   : > { %8534 = vst [vmem:[#allocation70_spill] sm:$0xff] %v8533_v50  ;;  %8536 = vst [vmem:[#allocation72_spill] sm:$0xff] %v7063_v5  ;;  %vm8545_vm4 = vnez %v8544_v19  ;;  %v7079_v55 = vpack.c.bf16 %v2209_v36, %v2208_v8  ;;  %vm8551_vm5 = vnez %v8550_v63  ;;  %v8552_v28 = vld [vmem:[#allocation62_spill] sm:$0xff]  ;;  %v8553_v5 = vld [vmem:[#allocation67_spill] sm:$0xff]  ;;  %vm8574_vm10 = vcmask 261120  }
 0x223   : > { %vm7075_vm0 = vmand %vm8545_vm4, %vm8543_vm3  ;;  %v2210_v41 = vsel %vm8551_vm5, %v8549_v62, 0.0  ;;  %vm8554_vm13 = vnez %v8553_v5  ;;  %v8555_v29 = vld [vmem:[#allocation68_spill] sm:$0xff]  ;;  %v8557_v14 = vld [vmem:[#allocation38_spill] sm:$0xff]  ;;  %4618 = vmatmul.mubr.msk.bf16.vlgmr.msra.gmra.mrb[0].mxu1 %vm8574_vm10, %v6840_v56  ;;  %v2502_v38 = vsel %vm8578_vm12, %v8539_v48, 0.0  ;;  %v2504_v43 = vsel %vm6910_vm7, %v8552_v28, 0.0 }
 0x224   : > { %8548 = vst [vmem:[#allocation63_spill] sm:$0xff] %v7079_v55  ;;  %v2211_v30 = vsel %vm8554_vm13, %v8552_v28, 0.0  ;;  %vm8556_vm14 = vnez %v8555_v29  ;;  %vm8558_vm8 = vcmp.ge.s32.totalorder %v8557_v14, 0  ;;  %v8559_v19 = vld [vmem:[#allocation33_spill] sm:$0xff]  ;;  %v5116_v36 = vld [vmem:[#allocation6 + $0x98] sm:$0xff]   ;;  %vm8583_vm15 = vmmov %vm8574_vm10  ;;  %4622 = vmatpush3.bf16.msra.mxu1 %v6930_v61  ;;  %vm8591_vm7 = vnez %v8489_v51 }
 0x225   : > { %v2322_v50 = vsel %vm8556_vm14, %v8431_v32, 0.0  ;;  %vm8560_vm4 = vnez %v8559_v19  ;;  %v7098_v8 = vpack.c.bf16 %v2211_v30, %v2210_v41  ;;  %v8564_v63 = vld [vmem:[#allocation25_spill] sm:$0xff]  ;;  %v2325_v32 = vsel %vm6852_vm1, %v6372_v26, 0.0  ;;  %v8569_v19 = vld [vmem:[#allocation27_spill] sm:$0xff]  ;;  %4625 = vmatprep.mubr.msk.bf16.mxu1 %vm8583_vm15, %v899_v45 }
 0x226   : > { %vm7094_vm3 = vmand %vm8560_vm4, %vm8558_vm8  ;;  %vm8565_vm5 = vnez %v8564_v63  ;;  %v8566_v55 = vld [vmem:[#allocation29_spill] sm:$0xff]  ;;  %vm8568_vm8 = vcmp.ge.s32.totalorder %v5988_v39, 0  ;;  %vm8570_vm14 = vnez %v8569_v19  ;;  %v5117_v41 = vld [vmem:[#allocation6 + $0x38] sm:$0xff]   ;;  %vm8575_vm1 = vcmp.lt.s32.totalorder %v8542_v35, 4 }
 0x227   : > { %8563 = vst [vmem:[#allocation60_spill] sm:$0xff] %v7098_v8  ;;  %v2323_v5 = vsel %vm8565_vm5, %v8461_v10, 0.0  ;;  %vm8567_vm13 = vnez %v8566_v55  ;;  %vm7113_vm4 = vmand %vm8570_vm14, %vm8568_vm8  ;;  %v8573_v30 = vld [vmem:[#allocation65_spill] sm:$0xff]  ;;  %v2413_v8 = vsel %vm8435_vm2, %v8524_v25, 0.0  ;;  %v2415_v35 = vsel %vm8455_vm9, %v6432_v53, 0.0  ;;  %4623 = vmatprep.subr.bf16.mxu1 %v5117_v41 }
 0x228   : > { %v2324_v29 = vsel %vm8567_vm13, %v6295_v24, 0.0  ;;  %4666 = vmatmul.mubr.msk.bf16.vlgmr.msra.gmra.mrb[0].mxu0 %vm8574_vm10, %v8573_v30  ;;  %v7119_v63 = vpack.c.bf16 %v2323_v5, %v2322_v50  ;;  %vm7133_vm5 = vmand %vm7075_vm0, %vm8575_vm1  ;;  %vm8579_vm2 = vcmp.lt.s32.totalorder %v8557_v14, 4  ;;  %v7164_v42 = vpack.c.bf16 %v2415_v35, %v2414_v57  ;;  %v5119_v61 = vld [vmem:[#allocation6 + $0x40] sm:$0xff]   ;;  %v8603_v30 = vld [vmem:[#allocation43_spill] sm:$0xff]  ;;  %4624 = vmatpush3.bf16.msra.mxu1 %v5117_v41 }
 0x229   : > { %v7121_v55 = vpack.c.bf16 %v2325_v32, %v2324_v29  ;;  %4670 = vmatpush3.bf16.msra.mxu0 %v6858_v54  ;;  %v7140_v32 = vpack.c.bf16 %v2413_v8, %v2412_v6  ;;  %vm7155_vm0 = vmand %vm7094_vm3, %vm8579_vm2  ;;  %vm8584_vm9 = vnez %v8473_v44  ;;  %vm8585_vm3 = vnez %v8479_v21  ;;  %v8610_v35 = vld [vmem:[#allocation39_spill] sm:$0xff]  ;;  %4629 = vmatprep.subr.bf16.mxu1 %v5119_v61  ;;  %v5120_v19 = vld [vmem:[#allocation6 + $0xa8] sm:$0xff]  }
 0x22a   : > { %vm8582_vm13 = vmmov %vm8574_vm10  ;;  %v2503_v54 = vsel %vm8584_vm9, %v8549_v62, 0.0  ;;  %v2505_v37 = vsel %vm8585_vm3, %v6633_v11, 0.0  ;;  %vm8586_vm8 = vcmp.ge.s32.totalorder %v5994_v40, 0  ;;  %4671 = vmatprep.subr.bf16.mxu0 %v5116_v36  ;;  %v2600_v3 = vsel %vm8591_vm7, %v6762_v23, 0.0 }
 0x22b   : > { %4673 = vmatprep.mubr.msk.bf16.mxu0 %vm8582_vm13, %v6887_v47  ;;  %v8587_v47 = vld [vmem:[#allocation28_spill] sm:$0xff]  ;;  %v7184_v44 = vpack.c.bf16 %v2503_v54, %v2502_v38  ;;  %v7186_v58 = vpack.c.bf16 %v2505_v37, %v2504_v43  ;;  %vm8592_vm12 = vnez %v8492_v1  ;;  %vm8593_vm2 = vcmp.ge.s32.totalorder %v6060_v18, 0  ;;  %v8614_v43 = vld [vmem:[#allocation53_spill] sm:$0xff]  ;;  %v8615_v37 = vld [vmem:[#allocation50_spill] sm:$0xff] }
 0x22c   : > { %vm8588_vm1 = vnez %v8587_v47  ;;  %v2601_v21 = vsel %vm8592_vm12, %v6809_v16, 0.0  ;;  %vm7198_vm13 = vmand %vm7133_vm5, %vm8593_vm2  ;;  %vm8596_vm15 = vnez %v8501_v27  ;;  %vm8597_vm9 = vnez %v8511_v17  ;;  %v8601_v27 = vld [vmem:[#allocation41_spill] sm:$0xff] }
 0x22d   : > { %vm7179_vm10 = vmand %vm8588_vm1, %vm8586_vm8  ;;  %v7202_v50 = vpack.c.bf16 %v2601_v21, %v2600_v3  ;;  %v2602_v51 = vsel %vm8596_vm15, %v6844_v20, 0.0  ;;  %v2603_v1 = vsel %vm8597_vm9, %v6766_v15, 0.0  ;;  %v2690_v8 = vsel %vm6882_vm6, %v6167_v4, 0.0  ;;  %4672 = vmatpush3.bf16.msra.mxu0 %v5116_v36  ;;  %v8617_v3 = vld [vmem:[#allocation52_spill] sm:$0xff]  ;;  %v8618_v21 = vld [vmem:[#allocation70_spill] sm:$0xff] }
 0x22e   : > { %vm8598_vm3 = vcmp.ge.s32.totalorder %v6096_v33, 0  ;;  %v7221_v29 = vpack.c.bf16 %v2603_v1, %v2602_v51  ;;  %v2691_v17 = vsel %vm6926_vm11, %v8601_v27, 0.0  ;;  %vm8602_vm7 = vnez %v8498_v52  ;;  %4677 = vmatprep.subr.bf16.mxu0 %v7162_v31  ;;  %v8620_v1 = vld [vmem:[#allocation46_spill] sm:$0xff]  ;;  %v8631_v36 = vld [vmem:[#allocation44_spill] sm:$0xff] }
 0x22f   : > { %vm7217_vm8 = vmand %vm7155_vm0, %vm8598_vm3  ;;  %v2692_v7 = vsel %vm8602_vm7, %v6139_v12, 0.0  ;;  %vm8604_vm6 = vnez %v8508_v60  ;;  %vm8605_vm12 = vcmp.lt.s32.totalorder %v6103_v2, 4  ;;  %v7241_v59 = vpack.c.bf16 %v2691_v17, %v2690_v8 }
 0x230   : > { %v2693_v6 = vsel %vm8604_vm6, %v8603_v30, 0.0  ;;  %vm7236_vm2 = vmand %vm8570_vm14, %vm8605_vm12  ;;  %vm8608_vm11 = vnez %v8518_v22  ;;  %vm8609_vm15 = vnez %v8521_v46  ;;  %vm8611_vm9 = vcmp.lt.s32.totalorder %v8610_v35, 4 }
 0x231   : > { %v7243_v57 = vpack.c.bf16 %v2693_v6, %v2692_v7  ;;  %v2780_v52 = vsel %vm8608_vm11, %v6965_v13, 0.0  ;;  %v2781_v60 = vsel %vm8609_vm15, %v6971_v9, 0.0  ;;  %vm7255_vm3 = vmand %vm8588_vm1, %vm8611_vm9  ;;  %vm8616_vm7 = vnez %v8615_v37  ;;  %v8625_v6 = vld [vmem:[#allocation47_spill] sm:$0xff] }
 0x232   : > { %v7259_v54 = vpack.c.bf16 %v2781_v60, %v2780_v52  ;;  %v2782_v22 = vsel %vm8616_vm7, %v8614_v43, 0.0  ;;  %vm8619_vm6 = vnez %v8618_v21  ;;  %v2878_v51 = vsel %vm7113_vm4, %v8461_v10, 0.0  ;;  %v8624_v10 = vld [vmem:[#allocation54_spill] sm:$0xff] }
 0x233   : > { %v2783_v46 = vsel %vm8619_vm6, %v8617_v3, 0.0  ;;  %vm8621_vm12 = vcmp.lt.s32.totalorder %v8620_v1, 4  ;;  %v2879_v17 = vsel %vm7179_vm10, %v6295_v24, 0.0  ;;  %v2880_v0 = vsel %vm7198_vm13, %v6372_v26, 0.0 }
 0x234   : > { %vm7274_vm11 = vmand %vm7133_vm5, %vm8621_vm12  ;;  %v7278_v8 = vpack.c.bf16 %v2783_v46, %v2782_v22  ;;  %v2881_v7 = vsel %vm7217_vm8, %v8624_v10, 0.0  ;;  %vm8626_vm4 = vcmp.lt.s32.totalorder %v8625_v6, 4  ;;  %v7297_v60 = vpack.c.bf16 %v2879_v17, %v2878_v51  ;;  %v8629_v46 = vld [vmem:[#allocation34_spill] sm:$0xff]  ;;  %v8634_v17 = vld [vmem:[#allocation45_spill] sm:$0xff] }
 0x235   : > { %vm7293_vm15 = vmand %vm7155_vm0, %vm8626_vm4  ;;  %v7299_v45 = vpack.c.bf16 %v2881_v7, %v2880_v0  ;;  %v2968_v24 = vsel %vm8570_vm14, %v8524_v25, 0.0  ;;  %v2969_v26 = vsel %vm8588_vm1, %v8483_v49, 0.0  ;;  %v2970_v5 = vsel %vm7133_vm5, %v6432_v53, 0.0  ;;  %v8637_v10 = vld [vmem:[#allocation56_spill] sm:$0xff]  ;;  %v8640_v7 = vld [vmem:[#allocation57_spill] sm:$0xff] }
 0x236   : > { %v7307_v14 = vpack.c.bf16 %v2969_v26, %v2968_v24  ;;  %v2971_v37 = vsel %vm7155_vm0, %v6360_v34, 0.0  ;;  %v3058_v22 = vsel %vm7236_vm2, %v8549_v62, 0.0  ;;  %v3059_v47 = vsel %vm7255_vm3, %v8552_v28, 0.0  ;;  %v5121_v26 = vld [vmem:[#allocation6 + $0x48] sm:$0xff]   ;;  %vm8652_vm12 = vmmov %vm8611_vm9 }
 0x237   : > { %v7318_v21 = vpack.c.bf16 %v2971_v37, %v2970_v5  ;;  %v3060_v39 = vsel %vm7274_vm11, %v6633_v11, 0.0  ;;  %v3061_v56 = vsel %vm7293_vm15, %v8539_v48, 0.0  ;;  %vm8630_vm14 = vcmask 261120  }
 0x238   : > { %4674 = vmatmul.mubr.msk.bf16.vlgmr.msra.gmra.mrb[0].mxu0 %vm8630_vm14, %v8629_v46  ;;  %vm8632_vm5 = vnez %v8631_v36  ;;  %vm8635_vm0 = vnez %v8634_v17  ;;  %vm8638_vm1 = vnez %v8637_v10  ;;  %vm8641_vm10 = vnez %v8640_v7  ;;  %vm8644_vm13 = vmmov %vm8630_vm14  ;;  %v8662_v36 = vld [vmem:[#allocation58_spill] sm:$0xff]  ;;  %v5124_v10 = vld [vmem:[#allocation6 + $0xb8] sm:$0xff]  }
 0x239   : > { %v8633_v51 = vsel %vm8632_vm5, %v8483_v49, 0.0  ;;  %v8636_v38 = vsel %vm8635_vm0, %v6432_v53, 0.0  ;;  %v8639_v41 = vsel %vm8638_vm1, %v6167_v4, 0.0  ;;  %v8642_v52 = vsel %vm8641_vm10, %v8601_v27, 0.0  ;;  %4678 = vmatpush3.bf16.msra.mxu0 %v7162_v31  ;;  %v8643_v49 = vld [vmem:[#allocation48_spill] sm:$0xff]  ;;  %vm8645_vm8 = vmmov %vm8644_vm13  ;;  %v5122_v4 = vld [vmem:[#allocation6 + $0xb0] sm:$0xff]  }
 0x23a   : > { %v1578_v0 = vpack.c.bf16 %v8636_v38, %v8633_v51  ;;  %v989_v24 = vpack.c.bf16 %v8642_v52, %v8639_v41  ;;  %v7347_v5 = vpack.c.bf16 %v3059_v47, %v3058_v22  ;;  %v7349_v37 = vpack.c.bf16 %v3061_v56, %v3060_v39  ;;  %4626 = vmatmul.mubr.msk.bf16.vlgmr.msra.gmra.mrb[0].mxu1 %vm8644_vm13, %v8643_v49  ;;  %vm8646_vm2 = vmmov %vm8645_vm8  ;;  %v5123_v31 = vld [vmem:[#allocation6 + $0x50] sm:$0xff]   ;;  %v8655_v22 = vld [vmem:[#allocation49_spill] sm:$0xff] }
 0x23b   : > { %4679 = vmatprep.subr.bf16.mxu0 %v5120_v19  ;;  %4630 = vmatpush3.bf16.msra.mxu1 %v5119_v61  ;;  %vm7360_vm3 = vmand %vm8635_vm0, %vm8611_vm9  ;;  %vm8649_vm7 = vcmp.lt.s32.totalorder %v6103_v2, 4  ;;  %vm8656_vm4 = vnez %v8655_v22  ;;  %v8657_v47 = vld [vmem:[#allocation59_spill] sm:$0xff]  ;;  %vm8670_vm9 = vcmask 261120   ;;  %v5126_v49 = vld [vmem:[#allocation6 + $0xc0] sm:$0xff]  }
 0x23c   : > { %4681 = vmatprep.mubr.msk.bf16.mxu0 %vm8645_vm8, %v1578_v0  ;;  %4633 = vmatprep.mubr.msk.bf16.mxu1 %vm8646_vm2, %v989_v24  ;;  %vm7368_vm6 = vmand %vm8638_vm1, %vm8649_vm7  ;;  %vm8658_vm15 = vnez %v8657_v47  ;;  %v8660_v56 = vld [vmem:[#allocation51_spill] sm:$0xff]  ;;  %v1665_v51 = vsel %vm7360_vm3, %v6633_v11, 0.0  ;;  %vm8667_vm8 = vcmp.lt.s32.totalorder %v8625_v6, 4  ;;  %v8671_v24 = vld [vmem:[#allocation22_spill] sm:$0xff] }
 0x23d   : > { %4631 = vmatprep.subr.bf16.mxu1 %v5121_v26  ;;  %4680 = vmatpush3.bf16.msra.mxu0 %v5120_v19  ;;  %vm7376_vm11 = vmand %vm8641_vm10, %vm8652_vm12  ;;  %v1576_v19 = vsel %vm8656_vm4, %v6360_v34, 0.0  ;;  %v988_v39 = vsel %vm8658_vm15, %v8603_v30, 0.0  ;;  %vm8661_vm1 = vnez %v8660_v56  ;;  %v1084_v34 = vsel %vm7368_vm6, %v6965_v13, 0.0  ;;  %v5125_v52 = vld [vmem:[#allocation6 + $0x58] sm:$0xff]   ;;  %v8681_v53 = vld [vmem:[#allocation21_spill] sm:$0xff] }
 0x23e   : > { %4685 = vmatprep.subr.bf16.mxu0 %v5122_v4  ;;  %vm8659_vm14 = vmmov %vm8649_vm7  ;;  %v1577_v46 = vsel %vm8661_vm1, %v8524_v25, 0.0  ;;  %v1085_v30 = vsel %vm7376_vm11, %v6971_v9, 0.0  ;;  %vm8664_vm10 = vcmp.lt.s32.totalorder %v8620_v1, 4  ;;  %vm8672_vm3 = vcmp.ge.s32.totalorder %v8671_v24, 0  ;;  %v8683_v27 = vld [vmem:[#allocation23_spill] sm:$0xff]  ;;  %v5127_v61 = vld [vmem:[%s7882_s5] sm:$0xff]  }
 0x23f   : > { %4632 = vmatpush3.bf16.msra.mxu1 %v5121_v26  ;;  %vm1660_vm0 = vmand %vm8632_vm5, %vm8659_vm14  ;;  %v1579_v17 = vpack.c.bf16 %v1577_v46, %v1576_v19  ;;  %vm8663_vm5 = vnez %v8662_v36  ;;  %v1088_v7 = vpack.c.bf16 %v1085_v30, %v1084_v34  ;;  %v8673_v26 = vld [vmem:[#allocation24_spill] sm:$0xff]  ;;  %v5128_v34 = vld [vmem:[#allocation6 + $0xc8] sm:$0xff]  }
 0x240   : > { %4637 = vmatprep.subr.bf16.mxu1 %v5123_v31  ;;  %v987_v38 = vsel %vm8663_vm5, %v6139_v12, 0.0  ;;  %vm7409_vm13 = vmand %vm8656_vm4, %vm8664_vm10  ;;  %v1664_v0 = vsel %vm1660_vm0, %v8552_v28, 0.0  ;;  %vm8674_vm7 = vnez %v8673_v26  ;;  %v8695_v30 = vld [vmem:[#allocation30_spill] sm:$0xff]  ;;  %v8716_v41 = vld [vmem:[#allocation35_spill] sm:$0xff] }
 0x241   : > { %v990_v11 = vpack.c.bf16 %v988_v39, %v987_v38  ;;  %vm7418_vm2 = vmand %vm8661_vm1, %vm8667_vm8  ;;  %v1668_v12 = vpack.c.bf16 %v1665_v51, %v1664_v0  ;;  %vm8682_vm1 = vcmp.ge.s32.totalorder %v8681_v53, 0  ;;  %v1666_v22 = vsel %vm7409_vm13, %v8539_v48, 0.0  ;;  %v8693_v39 = vld [vmem:[#allocation36_spill] sm:$0xff]  ;;  %v5129_v38 = vld [vmem:[%s7882_s5 + $0x8] sm:$0xff]  }
 0x242   : > { %vm1747_vm6 = vmand %vm8674_vm7, %vm8672_vm3  ;;  %vm8696_vm13 = vcmp.ge.s32.totalorder %v8695_v30, 0  ;;  %v5135_v26 = vld [vmem:[#allocation6 + $0xf8] sm:$0xff]   ;;  %v5136_v28 = vld [vmem:[#allocation6 + $0x100] sm:$0xff]  }
 0x243   : > { %vm8675_vm12 = vmmov %vm8670_vm9 }
 0x244   : > { %4682 = vmatmul.mubr.msk.bf16.vlgmr.msra.gmra.mrb[0].mxu0 %vm8670_vm9, %v1579_v17  ;;  %vm8676_vm11 = vmmov %vm8664_vm10  ;;  %vm8684_vm10 = vnez %v8683_v27  ;;  %v8697_v17 = vld [vmem:[#allocation42_spill] sm:$0xff]  ;;  %v8732_v27 = vld [vmem:[#allocation72_spill] sm:$0xff] }
 0x245   : > { %4686 = vmatpush3.bf16.msra.mxu0 %v5122_v4  ;;  %vm7432_vm4 = vmand %vm8663_vm5, %vm8676_vm11  ;;  %vm8688_vm5 = vcmp.lt.s32.totalorder %v8625_v6, 4  ;;  %v8734_v4 = vld [vmem:[#allocation63_spill] sm:$0xff] }
 0x246   : > { %4634 = vmatmul.mubr.msk.bf16.vlgmr.msra.gmra.mrb[0].mxu1 %vm8675_vm12, %v990_v11  ;;  %vm8679_vm14 = vmmov %vm8670_vm9  ;;  %4687 = vmatprep.subr.bf16.mxu0 %v5124_v10  ;;  %vm8689_vm12 = vcmp.lt.s32.totalorder %v8681_v53, 4  ;;  %v1086_v19 = vsel %vm7432_vm4, %v8614_v43, 0.0  ;;  %vm8698_vm4 = vnez %v8697_v17  ;;  %v8709_v11 = vld [vmem:[#allocation26_spill] sm:$0xff]  ;;  %v5139_v53 = vld [vmem:[#allocation6 + $0x118] sm:$0xff]  }
 0x247   : > { %4689 = vmatprep.mubr.msk.bf16.mxu0 %vm8679_vm14, %v1668_v12  ;;  %vm8680_vm0 = vmmov %vm8670_vm9  ;;  %4638 = vmatpush3.bf16.msra.mxu1 %v5123_v31  ;;  %vm8685_vm9 = vcmp.lt.s32.totalorder %v8671_v24, 4  ;;  %v5141_v31 = vld [vmem:[#allocation6 + $0x128] sm:$0xff]  }
 0x248   : > { %4641 = vmatprep.mubr.msk.bf16.mxu1 %vm8680_vm0, %v1088_v7  ;;  %vm1746_vm8 = vmand %vm8684_vm10, %vm8682_vm1  ;;  %4639 = vmatprep.subr.bf16.mxu1 %v5125_v52  ;;  %vm8699_vm10 = vcmask 261120  }
 0x249   : > { %vm7444_vm3 = vmand %vm1747_vm6, %vm8685_vm9  ;;  %4688 = vmatpush3.bf16.msra.mxu0 %v5124_v10  ;;  %vm8692_vm6 = vcmp.ge.s32.totalorder %v5994_v40, 0  ;;  %v1667_v40 = vsel %vm7418_vm2, %v8549_v62, 0.0  ;;  %v8700_v62 = vld [vmem:[#allocation31_spill] sm:$0xff] }
 0x24a   : > { %vm1083_vm7 = vmand %vm8658_vm15, %vm8688_vm5  ;;  %4693 = vmatprep.subr.bf16.mxu0 %v5126_v49  ;;  %vm8694_vm15 = vcmp.ge.s32.totalorder %v8693_v39, 0  ;;  %v1669_v46 = vpack.c.bf16 %v1667_v40, %v1666_v22  ;;  %vm8701_vm2 = vcmp.ge.s32.totalorder %v8700_v62, 0  ;;  %v8736_v22 = vld [vmem:[#allocation60_spill] sm:$0xff]  ;;  %v5145_v40 = vld [vmem:[#allocation6 + $0x148] sm:$0xff]  }
 0x24b   : > { %vm7457_vm11 = vmand %vm1746_vm8, %vm8689_vm12  ;;  %4640 = vmatpush3.bf16.msra.mxu1 %v5125_v52  ;;  %v1087_v47 = vsel %vm1083_vm7, %v8617_v3, 0.0  ;;  %vm8706_vm12 = vcmp.lt.s32.totalorder %v8695_v30, 4  ;;  %v5133_v52 = vld [vmem:[#allocation6 + $0xe8] sm:$0xff]   ;;  %v5144_v39 = vld [vmem:[#allocation6 + $0x140] sm:$0xff]  }
 0x24c   : > { %vm1755_vm14 = vmand %vm7444_vm3, %vm8692_vm6  ;;  %4813 = vmatprep.subr.bf16.mxu1 %v5127_v61  ;;  %v1089_v48 = vpack.c.bf16 %v1087_v47, %v1086_v19  ;;  %v5142_v19 = vld [vmem:[#allocation6 + $0x130] sm:$0xff]   ;;  %v5143_v47 = vld [vmem:[#allocation6 + $0x138] sm:$0xff]  }
 0x24d   : > { %vm1754_vm0 = vmand %vm7457_vm11, %vm8694_vm15  ;;  %v1763_v56 = vsel %vm1755_vm14, %v6766_v15, 0.0  ;;  %v8702_v15 = vld [vmem:[#allocation40_spill] sm:$0xff]  ;;  %vm8711_vm15 = vcmp.lt.s32.totalorder %v8700_v62, 4 }
 0x24e   : > { %v1762_v51 = vsel %vm1754_vm0, %v6844_v20, 0.0  ;;  %vm1748_vm1 = vmand %vm8698_vm4, %vm8696_vm13  ;;  %vm8703_vm8 = vnez %v8702_v15  ;;  %v5130_v20 = vld [vmem:[#allocation6 + $0xd0] sm:$0xff]   ;;  %vm8714_vm13 = vcmp.ge.s32.totalorder %v6060_v18, 0  ;;  %v5131_v18 = vld [vmem:[#allocation6 + $0xd8] sm:$0xff]  }
 0x24f   : > { %v1766_v36 = vpack.c.bf16 %v1763_v56, %v1762_v51  ;;  %vm1749_vm9 = vmand %vm8703_vm8, %vm8701_vm2 }
 0x250   : > { %4690 = vmatmul.mubr.msk.bf16.vlgmr.msra.gmra.mrb[0].mxu0 %vm8699_vm10, %v1669_v46  ;;  %vm8704_vm5 = vmmov %vm8699_vm10 }
 0x251   : > { %4694 = vmatpush3.bf16.msra.mxu0 %v5126_v49  ;;  %vm8705_vm7 = vmmov %vm8704_vm5  ;;  %v8728_v49 = vld [vmem:[#allocation69_spill] sm:$0xff] }
 0x252   : > { %4642 = vmatmul.mubr.msk.bf16.vlgmr.msra.gmra.mrb[0].mxu1 %vm8704_vm5, %v1089_v48  ;;  %4697 = vmatprep.mubr.msk.bf16.mxu0 %vm8705_vm7, %v1766_v36  ;;  %vm7497_vm6 = vmand %vm1748_vm1, %vm8706_vm12  ;;  %vm8715_vm1 = vcmp.ge.s32.totalorder %v6096_v33, 0  ;;  %v5132_v33 = vld [vmem:[#allocation6 + $0xe0] sm:$0xff]   ;;  %vm8721_vm12 = vcmp.lt.s32.totalorder %v8610_v35, 4  ;;  %v4400_v36 = vld [vmem:[#allocation8] ss:$0 sm:$0xff] }
 0x253   : > { %4814 = vmatpush3.bf16.msra.mxu1 %v5127_v61  ;;  %vm8710_vm14 = vmmov %vm8704_vm5  ;;  %4695 = vmatprep.subr.bf16.mxu0 %v5128_v34  ;;  %v5140_v61 = vld [vmem:[#allocation6 + $0x120] sm:$0xff]  }
 0x254   : > { %4817 = vmatprep.mubr.msk.bf16.mxu1 %vm8710_vm14, %v8709_v11  ;;  %vm7505_vm0 = vmand %vm1749_vm9, %vm8711_vm15  ;;  %4815 = vmatprep.subr.bf16.mxu1 %v5129_v38 }
 0x255   : > { %vm1756_vm4 = vmand %vm7497_vm6, %vm8714_vm13  ;;  %4696 = vmatpush3.bf16.msra.mxu0 %v5128_v34 }
 0x256   : > { %4701 = vmatprep.subr.bf16.mxu0 %v5130_v20  ;;  %vm1757_vm10 = vmand %vm7505_vm0, %vm8715_vm1  ;;  %v1764_v10 = vsel %vm1756_vm4, %v6762_v23, 0.0  ;;  %vm8725_vm4 = vcmp.lt.s32.totalorder %v8625_v6, 4  ;;  %v5137_v6 = vld [vmem:[#allocation6 + $0x108] sm:$0xff]  }
 0x257   : > { %4816 = vmatpush3.bf16.msra.mxu1 %v5129_v38  ;;  %vm8717_vm2 = vmmov %vm8704_vm5  ;;  %v1765_v12 = vsel %vm1757_vm10, %v6809_v16, 0.0  ;;  %vm8720_vm5 = vcmp.lt.s32.totalorder %v6103_v2, 4  ;;  %v5134_v2 = vld [vmem:[#allocation6 + $0xf0] sm:$0xff]  }
 0x258   : > { %v1767_v7 = vpack.c.bf16 %v1765_v12, %v1764_v10  ;;  %vm8718_vm8 = vmmov %vm8717_vm2 }
 0x259   : > { %vm8719_vm9 = vmmov %vm8717_vm2 }
 0x25a   : > { %4818 = vmatmul.mubr.msk.bf16.vlgmr.msra.gmra.mrb[4].mxu1 %vm8717_vm2, %v8716_v41  ;;  %vm1926_vm7 = vmand %vm7457_vm11, %vm8720_vm5  ;;  %vm8724_vm11 = vcmp.lt.s32.totalorder %v8620_v1, 4  ;;  %v8727_v1 = vld [vmem:[#allocation55_spill] sm:$0xff] }
 0x25b   : > { %vm1927_vm14 = vmand %vm7444_vm3, %vm8721_vm12  ;;  %v1930_v16 = vsel %vm1926_vm7, %v8614_v43, 0.0 }
 0x25c   : > { %4698 = vmatmul.mubr.msk.bf16.vlgmr.msra.gmra.mrb[0].mxu0 %vm8718_vm8, %v1767_v7  ;;  %v1931_v23 = vsel %vm1927_vm14, %v8617_v3, 0.0  ;;  %vm8722_vm15 = vmmov %vm8717_vm2 }
 0x25d   : > { %4702 = vmatpush3.bf16.msra.mxu0 %v5130_v20  ;;  %4705 = vmatprep.mubr.msk.bf16.mxu0 %vm8719_vm9, %v8709_v11  ;;  %v1934_v24 = vpack.c.bf16 %v1931_v23, %v1930_v16  ;;  %vm8723_vm13 = vmmov %vm8717_vm2 }
 0x25e   : > { %4703 = vmatprep.subr.bf16.mxu0 %v5131_v18  ;;  %vm1928_vm3 = vmand %vm7497_vm6, %vm8724_vm11 }
 0x25f   : > { %vm1929_vm1 = vmand %vm7505_vm0, %vm8725_vm4  ;;  %v1932_v35 = vsel %vm1928_vm3, %v6965_v13, 0.0  ;;  %v8730_v13 = vld [vmem:[#allocation71_spill] sm:$0xff] }
 0x260   : > { %v1933_v43 = vsel %vm1929_vm1, %v6971_v9, 0.0  ;;  %vm8726_vm10 = vmmov %vm8717_vm2  ;;  %v5138_v9 = vld [vmem:[#allocation6 + $0x110] sm:$0xff]  }
 0x261   : > { %4704 = vmatpush3.bf16.msra.mxu0 %v5131_v18  ;;  %v1935_v3 = vpack.c.bf16 %v1933_v43, %v1932_v35  ;;  %vm8729_vm6 = vmmov %vm8717_vm2 }
 0x262   : > { %4709 = vmatprep.subr.bf16.mxu0 %v5132_v33  ;;  %vm8731_vm0 = vmmov %vm8717_vm2 }
 0x263   : > { %vm8733_vm8 = vmmov %vm8731_vm0 }
 0x264   : > { %vm8735_vm9 = vmmov %vm8731_vm0 }
 0x265   : > { %vm8737_vm5 = vmmov %vm8731_vm0 }
 0x266   : > { %vm8738_vm7 = vmmov %vm8731_vm0 }
 0x267   : > { %vm8739_vm12 = vmmov %vm8731_vm0 }
 0x268   : > { %4706 = vmatmul.mubr.msk.bf16.vlgmr.msra.gmra.mrb[0].mxu0 %vm8722_vm15, %v8716_v41  ;;  %vm8740_vm14 = vmmov %vm8731_vm0 }
 0x269   : > { %4710 = vmatpush3.bf16.msra.mxu0 %v5132_v33  ;;  %4713 = vmatprep.mubr.msk.bf16.mxu0 %vm8723_vm13, %v1934_v24  ;;  %vm8741_vm15 = vmmov %vm8731_vm0 }
 0x26a   : > { %4711 = vmatprep.subr.bf16.mxu0 %v5133_v52  ;;  %vm8742_vm13 = vmmov %vm8731_vm0 }
 0x26b   : > { %vm8743_vm11 = vmmov %vm8731_vm0 }
 0x26c   : > { %vm8744_vm3 = vmmov %vm8731_vm0 }
 0x26d   : > { %4712 = vmatpush3.bf16.msra.mxu0 %v5133_v52  ;;  %vm8745_vm4 = vmmov %vm8731_vm0 }
 0x26e   : > { %4717 = vmatprep.subr.bf16.mxu0 %v5134_v2  ;;  %vm8746_vm1 = vmmov %vm8731_vm0 }
 0x274   : > { %4714 = vmatmul.mubr.msk.bf16.vlgmr.msra.gmra.mrb[0].mxu0 %vm8726_vm10, %v1935_v3  ;;  %vm8747_vm10 = vmmov %vm8731_vm0 }
 0x275   : > { %4718 = vmatpush3.bf16.msra.mxu0 %v5134_v2  ;;  %4721 = vmatprep.mubr.msk.bf16.mxu0 %vm8717_vm2, %v8727_v1  ;;  %vm8748_vm2 = vmmov %vm8731_vm0 }
 0x276   : > { %4719 = vmatprep.subr.bf16.mxu0 %v5135_v26 }
 0x279   : > { %4720 = vmatpush3.bf16.msra.mxu0 %v5135_v26 }
 0x27a   : > { %4725 = vmatprep.subr.bf16.mxu0 %v5136_v28 }
 0x280   : > { %4722 = vmatmul.mubr.msk.bf16.vlgmr.msra.gmra.mrb[0].mxu0 %vm8729_vm6, %v8728_v49  ;;  %vm8749_vm6 = vmmov %vm8731_vm0 }
 0x281   : > { %4726 = vmatpush3.bf16.msra.mxu0 %v5136_v28  ;;  %4729 = vmatprep.mubr.msk.bf16.mxu0 %vm8731_vm0, %v8730_v13 }
 0x282   : > { %4727 = vmatprep.subr.bf16.mxu0 %v5137_v6 }
 0x285   : > { %4728 = vmatpush3.bf16.msra.mxu0 %v5137_v6 }
 0x286   : > { %4733 = vmatprep.subr.bf16.mxu0 %v5138_v9 }
 0x28c   : > { %4730 = vmatmul.mubr.msk.bf16.vlgmr.msra.gmra.mrb[0].mxu0 %vm8733_vm8, %v8732_v27  ;;  %vm8750_vm8 = vmmov %vm8731_vm0 }
 0x28d   : > { %4734 = vmatpush3.bf16.msra.mxu0 %v5138_v9  ;;  %4737 = vmatprep.mubr.msk.bf16.mxu0 %vm8735_vm9, %v8734_v4  ;;  %vm8751_vm9 = vmmov %vm8731_vm0 }
 0x28e   : > { %4735 = vmatprep.subr.bf16.mxu0 %v5139_v53 }
 0x291   : > { %4736 = vmatpush3.bf16.msra.mxu0 %v5139_v53 }
 0x292   : > { %4741 = vmatprep.subr.bf16.mxu0 %v5140_v61 }
 0x298   : > { %4738 = vmatmul.mubr.msk.bf16.vlgmr.msra.gmra.mrb[0].mxu0 %vm8737_vm5, %v8736_v22  ;;  %vm8752_vm5 = vmmov %vm8731_vm0 }
 0x299   : > { %4742 = vmatpush3.bf16.msra.mxu0 %v5140_v61  ;;  %4745 = vmatprep.mubr.msk.bf16.mxu0 %vm8738_vm7, %v7119_v63  ;;  %v5146_v63 = vld [vmem:[#allocation6 + $0x150] sm:$0xff]   ;;  %vm8753_vm7 = vmmov %vm8731_vm0 }
 0x29a   : > { %4743 = vmatprep.subr.bf16.mxu0 %v5141_v31 }
 0x29d   : > { %4744 = vmatpush3.bf16.msra.mxu0 %v5141_v31 }
 0x29e   : > { %4749 = vmatprep.subr.bf16.mxu0 %v5142_v19 }
 0x2a4   : > { %4746 = vmatmul.mubr.msk.bf16.vlgmr.msra.gmra.mrb[0].mxu0 %vm8739_vm12, %v7121_v55  ;;  %v5147_v55 = vld [vmem:[#allocation6 + $0x158] sm:$0xff]   ;;  %vm8754_vm12 = vmmov %vm8731_vm0 }
 0x2a5   : > { %4750 = vmatpush3.bf16.msra.mxu0 %v5142_v19  ;;  %4753 = vmatprep.mubr.msk.bf16.mxu0 %vm8740_vm14, %v7140_v32  ;;  %v5148_v32 = vld [vmem:[#allocation6 + $0x160] sm:$0xff]   ;;  %vm3232_vm14 = vcmask 64512  }
 0x2a6   : > { %4751 = vmatprep.subr.bf16.mxu0 %v5143_v47 }
 0x2a9   : > { %4752 = vmatpush3.bf16.msra.mxu0 %v5143_v47 }
 0x2aa   : > { %4757 = vmatprep.subr.bf16.mxu0 %v5144_v39 }
 0x2b0   : > { %4754 = vmatmul.mubr.msk.bf16.vlgmr.msra.gmra.mrb[0].mxu0 %vm8741_vm15, %v7164_v42  ;;  %v5149_v42 = vld [vmem:[#allocation6 + $0x168] sm:$0xff]   ;;  %vm8755_vm15 = vmmov %vm8731_vm0 }
 0x2b1   : > { %4758 = vmatpush3.bf16.msra.mxu0 %v5144_v39  ;;  %4761 = vmatprep.mubr.msk.bf16.mxu0 %vm8742_vm13, %v7184_v44  ;;  %v5150_v44 = vld [vmem:[#allocation6 + $0x170] sm:$0xff]   ;;  %vm8756_vm13 = vmmov %vm8731_vm0 }
 0x2b2   : > { %4759 = vmatprep.subr.bf16.mxu0 %v5145_v40 }
 0x2b5   : > { %4760 = vmatpush3.bf16.msra.mxu0 %v5145_v40 }
 0x2b6   : > { %4765 = vmatprep.subr.bf16.mxu0 %v5146_v63 }
 0x2bc   : > { %4762 = vmatmul.mubr.msk.bf16.vlgmr.msra.gmra.mrb[0].mxu0 %vm8743_vm11, %v7186_v58  ;;  %v5151_v58 = vld [vmem:[#allocation6 + $0x178] sm:$0xff]   ;;  %vm8757_vm11 = vmmov %vm8731_vm0 }
 0x2bd   : > { %4766 = vmatpush3.bf16.msra.mxu0 %v5146_v63  ;;  %4769 = vmatprep.mubr.msk.bf16.mxu0 %vm8744_vm3, %v7202_v50  ;;  %v5152_v50 = vld [vmem:[#allocation6 + $0x180] sm:$0xff]   ;;  %vm8758_vm3 = vmmov %vm8731_vm0 }
 0x2be   : > { %4767 = vmatprep.subr.bf16.mxu0 %v5147_v55 }
 0x2c1   : > { %4768 = vmatpush3.bf16.msra.mxu0 %v5147_v55 }
 0x2c2   : > { %4773 = vmatprep.subr.bf16.mxu0 %v5148_v32 }
 0x2c8   : > { %4770 = vmatmul.mubr.msk.bf16.vlgmr.msra.gmra.mrb[0].mxu0 %vm8745_vm4, %v7221_v29  ;;  %v5153_v29 = vld [vmem:[#allocation6 + $0x188] sm:$0xff]   ;;  %vm8759_vm4 = vmmov %vm8731_vm0 }
 0x2c9   : > { %4774 = vmatpush3.bf16.msra.mxu0 %v5148_v32  ;;  %4777 = vmatprep.mubr.msk.bf16.mxu0 %vm8746_vm1, %v7241_v59  ;;  %v5154_v59 = vld [vmem:[#allocation6 + $0x190] sm:$0xff]   ;;  %vm8760_vm1 = vmmov %vm8731_vm0 }
 0x2ca   : > { %4775 = vmatprep.subr.bf16.mxu0 %v5149_v42 }
 0x2cd   : > { %4776 = vmatpush3.bf16.msra.mxu0 %v5149_v42 }
 0x2ce   : > { %4781 = vmatprep.subr.bf16.mxu0 %v5150_v44 }
 0x2d4   : > { %4778 = vmatmul.mubr.msk.bf16.vlgmr.msra.gmra.mrb[0].mxu0 %vm8747_vm10, %v7243_v57  ;;  %v5155_v57 = vld [vmem:[#allocation6 + $0x198] sm:$0xff]   ;;  %vm8761_vm10 = vmmov %vm8731_vm0 }
 0x2d5   : > { %4782 = vmatpush3.bf16.msra.mxu0 %v5150_v44  ;;  %4785 = vmatprep.mubr.msk.bf16.mxu0 %vm8748_vm2, %v7259_v54  ;;  %v5156_v54 = vld [vmem:[#allocation6 + $0x1a0] sm:$0xff]   ;;  %vm8762_vm2 = vmmov %vm8731_vm0 }
 0x2d6   : > { %4783 = vmatprep.subr.bf16.mxu0 %v5151_v58 }
 0x2d9   : > { %4784 = vmatpush3.bf16.msra.mxu0 %v5151_v58 }
 0x2da   : > { %4789 = vmatprep.subr.bf16.mxu0 %v5152_v50 }
 0x2e0   : > { %4786 = vmatmul.mubr.msk.bf16.vlgmr.msra.gmra.mrb[0].mxu0 %vm8749_vm6, %v7278_v8  ;;  %v5157_v8 = vld [vmem:[#allocation6 + $0x1a8] sm:$0xff]   ;;  %vm8763_vm6 = vmmov %vm8731_vm0 }
 0x2e1   : > { %4790 = vmatpush3.bf16.msra.mxu0 %v5152_v50  ;;  %4793 = vmatprep.mubr.msk.bf16.mxu0 %vm8731_vm0, %v7297_v60 }
 0x2e2   : > { %4791 = vmatprep.subr.bf16.mxu0 %v5153_v29 }
 0x2e5   : > { %4792 = vmatpush3.bf16.msra.mxu0 %v5153_v29 }
 0x2e6   : > { %4797 = vmatprep.subr.bf16.mxu0 %v5154_v59 }
 0x2ec   : > { %4794 = vmatmul.mubr.msk.bf16.vlgmr.msra.gmra.mrb[0].mxu0 %vm8750_vm8, %v7299_v45  ;;  %vm8764_vm8 = vmmov %vm8731_vm0 }
 0x2ed   : > { %4798 = vmatpush3.bf16.msra.mxu0 %v5154_v59  ;;  %4801 = vmatprep.mubr.msk.bf16.mxu0 %vm8751_vm9, %v7307_v14  ;;  %vm8765_vm9 = vmmov %vm8731_vm0 }
 0x2ee   : > { %4799 = vmatprep.subr.bf16.mxu0 %v5155_v57 }
 0x2f1   : > { %4800 = vmatpush3.bf16.msra.mxu0 %v5155_v57 }
 0x2f2   : > { %4805 = vmatprep.subr.bf16.mxu0 %v5156_v54 }
 0x2f8   : > { %4802 = vmatmul.mubr.msk.bf16.vlgmr.msra.gmra.mrb[0].mxu0 %vm8752_vm5, %v7318_v21  ;;  %vm8766_vm5 = vmmov %vm8731_vm0 }
 0x2f9   : > { %4806 = vmatpush3.bf16.msra.mxu0 %v5156_v54  ;;  %4809 = vmatprep.mubr.msk.bf16.mxu0 %vm8753_vm7, %v7347_v5  ;;  %vm8767_vm7 = vmmov %vm8731_vm0 }
 0x2fa   : > { %4807 = vmatprep.subr.bf16.mxu0 %v5157_v8 }
 0x2fd   : > { %4808 = vmatpush3.bf16.msra.mxu0 %v5157_v8 }
 0x304   : > { %4810 = vmatmul.mubr.msk.bf16.vlgmr.msra.gmra.mrb[0].mxu0 %vm8754_vm12, %v7349_v37  ;;  %vm8768_vm12 = vmmov %vm8731_vm0 }
 0x325   : > { %v4643_v60 = vpop.f32.mrb[0].mxu1 }
 0x326   : > { %v1147_v45 = vpop.f32.mrb[1].mxu1 }
 0x327   : > { %v4644_v14 = vpop.f32.mrb[2].mxu1 }
 0x328   : > { %v1150_v56 = vpop.f32.mrb[3].mxu1 }
 0x32d   : > { %v4819_v46 = vpop.f32.mrb[4].mxu1 }
 0x32e   : > { %v3205_v48 = vpop.f32.mrb[5].mxu1 }
 0x32f   : > { %v4820_v51 = vpop.f32.mrb[6].mxu1 }
 0x330   : > { %v7596_v34 = vpack.c.bf16 %v4820_v51, %v4819_v46  ;;  %v3208_v30 = vpop.f32.mrb[7].mxu1 }
 0x331   : > { %v7598_v21 = vpack.c.bf16 %v3208_v30, %v3205_v48 }
 0x3d7   : > { %v4811_v17 = vpop.f32.mrb[0].mxu0 }
 0x3d8   : > { %v4893_v5 = vadd.f32 %v4811_v17, %v4643_v60  ;;  %v3121_v38 = vpop.f32.mrb[1].mxu0 }
 0x3d9   : > { %v4894_v62 = vadd.f32 %v3121_v38, %v1147_v45  ;;  %v4812_v15 = vpop.f32.mrb[2].mxu0 }
 0x3da   : > { %v3149_v20 = vadd.f32 %v4893_v5, %v4400_v36  ;;  %v4895_v37 = vadd.f32 %v4812_v15, %v4644_v14  ;;  %v3124_v25 = vpop.f32.mrb[3].mxu0 }
 0x3db   : > { %v3147_v11 = vadd.f32 %v4894_v62, %v4400_v36  ;;  %v4896_v0 = vadd.f32 %v3124_v25, %v1150_v56 }
 0x3dc   : > { %v3150_v10 = vadd.f32 %v4895_v37, %v4400_v36  ;;  %v3153_v12 = vmul.f32 0.5, %v3149_v20 }
 0x3dd   : > { %v3148_v41 = vadd.f32 %v4896_v0, %v4400_v36  ;;  %v3151_v33 = vmul.f32 0.5, %v3147_v11 }
 0x3de   : > { %v3154_v7 = vmul.f32 0.5, %v3150_v10  ;;  %v7600_v18 = vpack.c.bf16 %v3150_v10, %v3149_v20 }
 0x3df   : > { %v3152_v16 = vmul.f32 0.5, %v3148_v41  ;;  %v7602_v23 = vpack.c.bf16 %v3148_v41, %v3147_v11 }
 0x3e0   : > { %v7604_v52 = vpack.c.bf16 %v3154_v7, %v3153_v12  ;;  %3230 = vrot.lane.b32.xlu1 %v7600_v18, %s5466_s20 }
 0x3e1   : > { %v7607_v24 = vpack.c.bf16 %v3152_v16, %v3151_v33  ;;  %3228 = vrot.lane.b32.xlu0 %v7602_v23, %s5466_s20  ;;  %s4448_s20 = sshll.u32 %s5550_s13, 11 }
 0x3e2   : > { %s7779_s25 = scalar_lea.hbm %s7886_s9, %s4448_s20 }
 0x3e3   : > { %4825 = vmatprep.mubr.msk.bf16.mxu1 %vm3232_vm14, %v7607_v24 }
 0x452   : > { %v3231_v43 = vpop.permute.xlu1 %3230 }
 0x453   : > { %v3229_v2 = vpop.permute.xlu0 %3228  ;;  %v3243_v3 = vsel %vm3232_vm14, %v3231_v43, 0 }
 0x454   : > { %v3240_v35 = vsel %vm3232_vm14, %v3229_v2, 0  ;;  %4997 = vmatprep.subr.msk.bf16.mxu1 %vm3232_vm14, %v3229_v2 }
 0x455   : > { %4822 = vmatpush3.bf16.xpose.msra.mxu1 %v3240_v35 }
 0x456   : > { %4998 = vmatprep.subr.msk.bf16.mxu1 %vm3232_vm14, %v3231_v43 }
 0x45d   : > { %4824 = vmatpush3.bf16.xpose.msra.mxu1 %v3243_v3 }
 0x45e   : > { %4829 = vmatprep.subr.bf16.mxu1 %v7598_v21 }
 0x464   : > { %4826 = vmatmul.mubr.msk.bf16.vlgmr.msra.gmra.mrb[8].mxu1 %vm3232_vm14, %v7604_v52 }
 0x465   : > { %4830 = vmatpush3.bf16.msra.mxu1 %v7598_v21 }
 0x466   : > { %4831 = vmatprep.subr.bf16.mxu1 %v7596_v34 }
 0x469   : > { %4832 = vmatpush3.bf16.msra.mxu1 %v7596_v34 }
 0x537   : > { %v4827_v26 = vpop.f32.mrb[8].mxu1 }
 0x538   : > { %v3279_v1 = vpop.f32.mrb[9].mxu1  ;;  %v3300_v53 = vsel %vm8758_vm3, %v4827_v26, -inf  ;;  %vm8772_vm3 = vmmov %vm8731_vm0 }
 0x539   : > { %v4828_v28 = vpop.f32.mrb[10].mxu1  ;;  %v3294_v6 = vsel %vm8755_vm15, %v3279_v1, -inf  ;;  %vm8769_vm15 = vmmov %vm8731_vm0 }
 0x53a   : > { %3295 = vmax.xlane.f32.xlu1 %v3294_v6  ;;  %v3282_v49 = vpop.f32.mrb[11].mxu1  ;;  %v3303_v9 = vsel %vm8757_vm11, %v4828_v28, -inf  ;;  %vm8771_vm11 = vmmov %vm8731_vm0 }
 0x53b   : > { %v3297_v13 = vsel %vm8756_vm13, %v3282_v49, -inf  ;;  %vm8770_vm13 = vmmov %vm8731_vm0 }
 0x53c   : > { %3298 = vmax.xlane.f32.xlu0 %v3297_v13 }
 0x53e   : > { %3304 = vmax.xlane.f32.xlu1 %v3303_v9 }
 0x540   : > { %3301 = vmax.xlane.f32.xlu0 %v3300_v53 }
 0x5c7   : > { %v3296_v27 = vpop.xlane.xlu1 %3295 }
 0x5c8   : > { %v3306_v22 = vsub.f32 %v3279_v1, %v3296_v27 }
 0x5c9   : > { %v3299_v4 = vpop.xlane.xlu0 %3298 }
 0x5ca   : > { %v3307_v61 = vsub.f32 %v3282_v49, %v3299_v4  ;;  %v3310_v55 = vmul.f32 1.442695, %v3306_v22 }
 0x5cb   : > { %v3305_v31 = vpop.xlane.xlu1 %3304 }
 0x5cc   : > { %v3312_v19 = vmul.f32 1.442695, %v3307_v61  ;;  %v3309_v47 = vsub.f32 %v4828_v28, %v3305_v31 }
 0x5cd   : > { %v3302_v39 = vpop.xlane.xlu0 %3301 }
 0x5ce   : > { %5168 = vpow2.f32 %v3312_v19  ;;  %v3316_v40 = vmul.f32 1.442695, %v3309_v47  ;;  %v3308_v63 = vsub.f32 %v4827_v26, %v3302_v39 }
 0x5d0   : > { %5170 = vpow2.f32 %v3316_v40  ;;  %v3314_v32 = vmul.f32 1.442695, %v3308_v63 }
 0x5d2   : > { %5172 = vpow2.f32 %v3314_v32 }
 0x5d3   : > { %5174 = vpow2.f32 %v3310_v55 }
 0x5d8   : > { %v5169_v42 = vpop.eup %5168 }
 0x5d9   : > { %v3321_v44 = vsel %vm8759_vm4, %v5169_v42, 0.0  ;;  %vm8773_vm4 = vmmov %vm8731_vm0 }
 0x5da   : > { %v5171_v58 = vpop.eup %5170  ;;  %3322 = vadd.xlane.f32.xlu1 %v3321_v44 }
 0x5db   : > { %v3327_v29 = vsel %vm8760_vm1, %v5171_v58, 0.0  ;;  %vm8774_vm1 = vmmov %vm8731_vm0 }
 0x5dc   : > { %v5173_v50 = vpop.eup %5172 }
 0x5dd   : > { %v3324_v59 = vsel %vm8761_vm10, %v5173_v50, 0.0  ;;  %v5175_v57 = vpop.eup %5174  ;;  %vm8775_vm10 = vmmov %vm8731_vm0 }
 0x5de   : > { %3328 = vadd.xlane.f32.xlu1 %v3327_v29  ;;  %3325 = vadd.xlane.f32.xlu0 %v3324_v59  ;;  %v3318_v54 = vsel %vm8762_vm2, %v5175_v57, 0.0  ;;  %vm8776_vm2 = vmmov %vm8731_vm0 }
 0x5e2   : > { %3319 = vadd.xlane.f32.xlu0 %v3318_v54 }
 0x5ef   : > { %3411 = vrot.lane.b32.xlu1 %v7600_v18, %s5467_s8 }
 0x5f3   : > { %3405 = vrot.lane.b32.xlu1 %v7607_v24, %s5468_s30 }
 0x5f7   : > { %3407 = vrot.lane.b32.xlu1 %v7604_v52, %s5468_s30 }
 0x5f8   : > { %3409 = vrot.lane.b32.xlu0 %v7602_v23, %s5467_s8 }
 0x667   : > { %v3323_v8 = vpop.xlane.xlu1 %3322 }
 0x668   : > { %5176 = vrcp.f32 %v3323_v8 }
 0x66b   : > { %v3329_v60 = vpop.xlane.xlu1 %3328  ;;  %v3326_v45 = vpop.xlane.xlu0 %3325 }
 0x66c   : > { %5178 = vrcp.f32 %v3329_v60 }
 0x66d   : > { %5180 = vrcp.f32 %v3326_v45 }
 0x66f   : > { %v3320_v14 = vpop.xlane.xlu0 %3319  ;;  %v3412_v38 = vpop.permute.xlu1 %3411 }
 0x670   : > { %5182 = vrcp.f32 %v3320_v14  ;;  %v3423_v11 = vsel %vm3232_vm14, %v3412_v38, 0 }
 0x672   : > { %v5177_v56 = vpop.eup %5176 }
 0x673   : > { %v3410_v46 = vpop.permute.xlu0 %3409  ;;  %v3335_v48 = vmul.f32 %v5177_v56, %v5169_v42  ;;  %v3406_v37 = vpop.permute.xlu1 %3405 }
 0x674   : > { %4999 = vmatprep.subr.msk.bf16.mxu1 %vm3232_vm14, %v3410_v46  ;;  %v3420_v25 = vsel %vm3232_vm14, %v3410_v46, 0 }
 0x675   : > { %3339 = vst.msk [vmem:[%s7638_s15 + $0x8] sm:$0xff] %vm8763_vm6, %v3335_v48  ;;  %vm8777_vm6 = vmmov %vm8731_vm0 }
 0x676   : > { %v5179_v51 = vpop.eup %5178 }
 0x677   : > { %v5181_v30 = vpop.eup %5180  ;;  %v3337_v17 = vmul.f32 %v5179_v51, %v5171_v58  ;;  %v3408_v0 = vpop.permute.xlu1 %3407 }
 0x678   : > { %v3336_v36 = vmul.f32 %v5181_v30, %v5173_v50 }
 0x679   : > { %3341 = vst.msk [vmem:[%s7638_s15 + $0x18] sm:$0xff] %vm8731_vm0, %v3337_v17 }
 0x67a   : > { %v5183_v5 = vpop.eup %5182  ;;  %3340 = vst.msk [vmem:[%s7638_s15 + $0x10] sm:$0xff] %vm8764_vm8, %v3336_v36  ;;  %v3343_v20 = vpack.c.bf16 %v3337_v17, %v3336_v36  ;;  %vm8778_vm8 = vmmov %vm8731_vm0 }
 0x67b   : > { %v3334_v62 = vmul.f32 %v5183_v5, %v5175_v57 }
 0x67d   : > { %3338 = vst.msk [vmem:[%s7638_s15] sm:$0xff] %vm8765_vm9, %v3334_v62  ;;  %v3342_v15 = vpack.c.bf16 %v3335_v48, %v3334_v62  ;;  %vm8779_vm9 = vmmov %vm8731_vm0 }
 0x67f   : > { %4833 = vmatprep.mubr.msk.bf16.mxu1 %vm8766_vm5, %v3342_v15  ;;  %vm8780_vm5 = vmmov %vm8731_vm0 }
 0x680   : > { %4834 = vmatmul.mubr.msk.bf16.vlgmr.msra.gmra.mrb[12].mxu1 %vm8767_vm7, %v3343_v20  ;;  %vm8781_vm7 = vmmov %vm8731_vm0 }
 0x681   : > { %4838 = vmatpush3.bf16.xpose.msra.mxu1 %v3420_v25  ;;  %4841 = vmatprep.mubr.msk.bf16.mxu1 %vm3232_vm14, %v3406_v37 }
 0x682   : > { %5000 = vmatprep.subr.msk.bf16.mxu1 %vm3232_vm14, %v3412_v38 }
 0x689   : > { %4840 = vmatpush3.bf16.xpose.msra.mxu1 %v3423_v11 }
 0x690   : > { %4842 = vmatmul.mubr.msk.bf16.vlgmr.msra.gmra.mrb[16].mxu1 %vm3232_vm14, %v3408_v0 }
 0x753   : > { %v4835_v10 = vpop.f32.mrb[12].mxu1 }
 0x754   : > { %3401 = vst.msk [vmem:[#allocation2 + $0x10] sm:$0xff] %vm3232_vm14, %v4835_v10  ;;  %v3384_v41 = vpop.f32.mrb[13].mxu1 }
 0x755   : > { %3399 = vst.msk [vmem:[#allocation2] sm:$0xff] %vm3232_vm14, %v3384_v41  ;;  %v4836_v12 = vpop.f32.mrb[14].mxu1 }
 0x756   : > { %3402 = vst.msk [vmem:[#allocation2 + $0x18] sm:$0xff] %vm3232_vm14, %v4836_v12  ;;  %v3387_v7 = vpop.f32.mrb[15].mxu1 }
 0x757   : > { %3400 = vst.msk [vmem:[#allocation2 + $0x8] sm:$0xff] %vm3232_vm14, %v3387_v7 }
 0x763   : > { %v4843_v33 = vpop.f32.mrb[16].mxu1 }
 0x764   : > { %v3459_v16 = vpop.f32.mrb[17].mxu1  ;;  %v3480_v26 = vsel %vm8770_vm13, %v4843_v33, -inf  ;;  %vm8784_vm13 = vmmov %vm8731_vm0 }
 0x765   : > { %v4844_v2 = vpop.f32.mrb[18].mxu1  ;;  %v3474_v35 = vsel %vm8768_vm12, %v3459_v16, -inf  ;;  %vm8782_vm12 = vmmov %vm8731_vm0 }
 0x766   : > { %3475 = vmax.xlane.f32.xlu0 %v3474_v35  ;;  %v3462_v43 = vpop.f32.mrb[19].mxu1  ;;  %v3483_v1 = vsel %vm8771_vm11, %v4844_v2, -inf  ;;  %vm8785_vm11 = vmmov %vm8731_vm0 }
 0x767   : > { %v3477_v3 = vsel %vm8769_vm15, %v3462_v43, -inf  ;;  %vm8783_vm15 = vmmov %vm8731_vm0 }
 0x768   : > { %3478 = vmax.xlane.f32.xlu1 %v3477_v3 }
 0x76a   : > { %3481 = vmax.xlane.f32.xlu0 %v3480_v26 }
 0x76e   : > { %3484 = vmax.xlane.f32.xlu0 %v3483_v1 }
 0x779   : > { %3529 = vrot.lane.b32.xlu1 %v7596_v34, %s5468_s30 }
 0x7f3   : > { %v3476_v28 = vpop.xlane.xlu0 %3475 }
 0x7f4   : > { %v3486_v6 = vsub.f32 %v3459_v16, %v3476_v28 }
 0x7f5   : > { %v3479_v49 = vpop.xlane.xlu1 %3478 }
 0x7f6   : > { %v3490_v53 = vmul.f32 1.442695, %v3486_v6  ;;  %v3487_v27 = vsub.f32 %v3462_v43, %v3479_v49 }
 0x7f7   : > { %v3482_v13 = vpop.xlane.xlu0 %3481 }
 0x7f8   : > { %v3488_v9 = vsub.f32 %v4843_v33, %v3482_v13  ;;  %v3492_v22 = vmul.f32 1.442695, %v3487_v27 }
 0x7f9   : > { %v3530_v58 = vpop.permute.xlu1 %3529 }
 0x7fa   : > { %v3494_v4 = vmul.f32 1.442695, %v3488_v9 }
 0x7fb   : > { %v3485_v61 = vpop.xlane.xlu0 %3484 }
 0x7fc   : > { %5184 = vpow2.f32 %v3494_v4  ;;  %v3489_v31 = vsub.f32 %v4844_v2, %v3485_v61 }
 0x7fd   : > { %5186 = vpow2.f32 %v3490_v53 }
 0x7fe   : > { %v3496_v19 = vmul.f32 1.442695, %v3489_v31 }
 0x800   : > { %5188 = vpow2.f32 %v3496_v19 }
 0x801   : > { %5190 = vpow2.f32 %v3492_v22 }
 0x806   : > { %v5185_v47 = vpop.eup %5184 }
 0x807   : > { %v3504_v39 = vsel %vm8772_vm3, %v5185_v47, 0.0  ;;  %v5187_v40 = vpop.eup %5186  ;;  %vm8786_vm3 = vmmov %vm8731_vm0 }
 0x808   : > { %3505 = vadd.xlane.f32.xlu0 %v3504_v39  ;;  %v3498_v55 = vsel %vm8773_vm4, %v5187_v40, 0.0  ;;  %vm8787_vm4 = vmmov %vm8731_vm0 }
 0x80a   : > { %v5189_v63 = vpop.eup %5188 }
 0x80b   : > { %v3507_v32 = vsel %vm8774_vm1, %v5189_v63, 0.0  ;;  %v5191_v42 = vpop.eup %5190  ;;  %vm8788_vm1 = vmmov %vm8731_vm0 }
 0x80c   : > { %3499 = vadd.xlane.f32.xlu0 %v3498_v55  ;;  %3508 = vadd.xlane.f32.xlu1 %v3507_v32  ;;  %v3501_v44 = vsel %vm8775_vm10, %v5191_v42, 0.0  ;;  %vm8789_vm10 = vmmov %vm8731_vm0 }
 0x810   : > { %3502 = vadd.xlane.f32.xlu1 %v3501_v44 }
 0x821   : > { %3613 = vrot.lane.b32.xlu1 %v7602_v23, %s5469_s17 }
 0x822   : > { %3527 = vrot.lane.b32.xlu0 %v7598_v21, %s5468_s30 }
 0x825   : > { %3615 = vrot.lane.b32.xlu1 %v7600_v18, %s5469_s17  ;;  %s4140_s17 = sshll.u32 %s7638_s15, 4  ;;  %s7782_s17 = int_to_ptr.vmem [resolvable:$true] %s4140_s17 }
 0x826   : > { %3609 = vrot.lane.b32.xlu0 %v7607_v24, %s5470_s21 }
 0x829   : > { %3611 = vrot.lane.b32.xlu1 %v7604_v52, %s5470_s21 }
 0x895   : > { %v3506_v50 = vpop.xlane.xlu0 %3505 }
 0x896   : > { %5192 = vrcp.f32 %v3506_v50 }
 0x899   : > { %v3500_v29 = vpop.xlane.xlu0 %3499  ;;  %v3509_v59 = vpop.xlane.xlu1 %3508 }
 0x89a   : > { %5194 = vrcp.f32 %v3500_v29 }
 0x89b   : > { %5196 = vrcp.f32 %v3509_v59 }
 0x89d   : > { %v3528_v57 = vpop.permute.xlu0 %3527  ;;  %v3503_v54 = vpop.xlane.xlu1 %3502 }
 0x89e   : > { %5198 = vrcp.f32 %v3503_v54  ;;  %4845 = vmatprep.subr.bf16.mxu1 %v3528_v57 }
 0x89f   : > { %4846 = vmatpush3.bf16.msra.mxu1 %v3528_v57 }
 0x8a0   : > { %v5193_v8 = vpop.eup %5192  ;;  %4847 = vmatprep.subr.bf16.mxu1 %v3530_v58 }
 0x8a1   : > { %v3516_v60 = vmul.f32 %v5193_v8, %v5185_v47  ;;  %v3614_v45 = vpop.permute.xlu1 %3613  ;;  %v3610_v5 = vpop.permute.xlu0 %3609 }
 0x8a2   : > { %v3624_v38 = vsel %vm3232_vm14, %v3614_v45, 0 }
 0x8a3   : > { %4413 = vst.msk [vmem:[%s7638_s15 + $0x30] sm:$0xff] %vm8776_vm2, %v3516_v60  ;;  %4848 = vmatpush3.bf16.msra.mxu1 %v3530_v58  ;;  %vm8790_vm2 = vmmov %vm8731_vm0 }
 0x8a4   : > { %v5195_v14 = vpop.eup %5194  ;;  %5001 = vmatprep.subr.msk.bf16.mxu1 %vm3232_vm14, %v3614_v45 }
 0x8a5   : > { %v5197_v56 = vpop.eup %5196  ;;  %v3514_v46 = vmul.f32 %v5195_v14, %v5187_v40  ;;  %v3616_v62 = vpop.permute.xlu1 %3615 }
 0x8a6   : > { %v3517_v48 = vmul.f32 %v5197_v56, %v5189_v63  ;;  %v3627_v15 = vsel %vm3232_vm14, %v3616_v62, 0 }
 0x8a7   : > { %4411 = vst.msk [vmem:[%s7638_s15 + $0x20] sm:$0xff] %vm8777_vm6, %v3514_v46  ;;  %vm8791_vm6 = vmmov %vm8731_vm0 }
 0x8a8   : > { %v5199_v51 = vpop.eup %5198  ;;  %4414 = vst.msk [vmem:[%s7638_s15 + $0x38] sm:$0xff] %vm8731_vm0, %v3517_v48  ;;  %v3524_v36 = vpack.c.bf16 %v3517_v48, %v3516_v60 }
 0x8a9   : > { %v3515_v30 = vmul.f32 %v5199_v51, %v5191_v42  ;;  %v3612_v20 = vpop.permute.xlu1 %3611 }
 0x8ab   : > { %4412 = vst.msk [vmem:[%s7638_s15 + $0x28] sm:$0xff] %vm8778_vm8, %v3515_v30  ;;  %v3523_v17 = vpack.c.bf16 %v3515_v30, %v3514_v46  ;;  %vm8792_vm8 = vmmov %vm8731_vm0 }
 0x8ad   : > { %4849 = vmatprep.mubr.msk.bf16.mxu1 %vm8779_vm9, %v3523_v17  ;;  %vm8793_vm9 = vmmov %vm8731_vm0 }
 0x8ae   : > { %4850 = vmatmul.mubr.msk.bf16.vlgmr.msra.gmra.mrb[20].mxu1 %vm8780_vm5, %v3524_v36  ;;  %vm8794_vm5 = vmmov %vm8731_vm0 }
 0x8af   : > { %4854 = vmatpush3.bf16.xpose.msra.mxu1 %v3624_v38  ;;  %4857 = vmatprep.mubr.msk.bf16.mxu1 %vm3232_vm14, %v3610_v5 }
 0x8b0   : > { %5002 = vmatprep.subr.msk.bf16.mxu1 %vm3232_vm14, %v3616_v62 }
 0x8b7   : > { %4856 = vmatpush3.bf16.xpose.msra.mxu1 %v3627_v15 }
 0x8be   : > { %4858 = vmatmul.mubr.msk.bf16.vlgmr.msra.gmra.mrb[24].mxu1 %vm3232_vm14, %v3612_v20 }
 0x981   : > { %v7693_v37 = vpop.f32.mrb[20].mxu1 }
 0x982   : > { %v7695_v25 = vpop.f32.mrb[21].mxu1 }
 0x983   : > { %v7697_v11 = vpop.f32.mrb[22].mxu1 }
 0x984   : > { %v7699_v0 = vpop.f32.mrb[23].mxu1 }
 0x991   : > { %v4859_v10 = vpop.f32.mrb[24].mxu1 }
 0x992   : > { %v3663_v41 = vpop.f32.mrb[25].mxu1  ;;  %v3684_v2 = vsel %vm8783_vm15, %v4859_v10, -inf  ;;  %vm8797_vm15 = vmmov %vm8731_vm0 }
 0x993   : > { %v4860_v12 = vpop.f32.mrb[26].mxu1  ;;  %v3678_v7 = vsel %vm8781_vm7, %v3663_v41, -inf  ;;  %vm8795_vm7 = vmmov %vm8731_vm0 }
 0x994   : > { %3679 = vmax.xlane.f32.xlu0 %v3678_v7  ;;  %v3666_v33 = vpop.f32.mrb[27].mxu1  ;;  %v3687_v35 = vsel %vm8784_vm13, %v4860_v12, -inf  ;;  %vm8799_vm13 = vmmov %vm8731_vm0 }
 0x995   : > { %v3681_v16 = vsel %vm8782_vm12, %v3666_v33, -inf  ;;  %vm8796_vm12 = vmmov %vm8731_vm0 }
 0x996   : > { %3682 = vmax.xlane.f32.xlu1 %v3681_v16 }
 0x998   : > { %3685 = vmax.xlane.f32.xlu0 %v3684_v2 }
 0x99c   : > { %3688 = vmax.xlane.f32.xlu0 %v3687_v35 }
 0x9a7   : > { %3731 = vrot.lane.b32.xlu1 %v7596_v34, %s5470_s21 }
 0xa21   : > { %v3680_v43 = vpop.xlane.xlu0 %3679 }
 0xa22   : > { %v3690_v3 = vsub.f32 %v3663_v41, %v3680_v43 }
 0xa23   : > { %v3683_v26 = vpop.xlane.xlu1 %3682 }
 0xa24   : > { %v3694_v6 = vmul.f32 1.442695, %v3690_v3  ;;  %v3691_v49 = vsub.f32 %v3666_v33, %v3683_v26 }
 0xa25   : > { %v3686_v1 = vpop.xlane.xlu0 %3685 }
 0xa26   : > { %v3692_v28 = vsub.f32 %v4859_v10, %v3686_v1  ;;  %v3696_v27 = vmul.f32 1.442695, %v3691_v49 }
 0xa27   : > { %v3732_v55 = vpop.permute.xlu1 %3731 }
 0xa28   : > { %v3698_v13 = vmul.f32 1.442695, %v3692_v28 }
 0xa29   : > { %v3689_v9 = vpop.xlane.xlu0 %3688 }
 0xa2a   : > { %5200 = vpow2.f32 %v3698_v13  ;;  %v3693_v53 = vsub.f32 %v4860_v12, %v3689_v9 }
 0xa2b   : > { %5202 = vpow2.f32 %v3694_v6 }
 0xa2c   : > { %v3700_v4 = vmul.f32 1.442695, %v3693_v53 }
 0xa2e   : > { %5204 = vpow2.f32 %v3700_v4 }
 0xa2f   : > { %5206 = vpow2.f32 %v3696_v27 }
 0xa34   : > { %v5201_v61 = vpop.eup %5200 }
 0xa35   : > { %v3708_v31 = vsel %vm8785_vm11, %v5201_v61, 0.0  ;;  %v5203_v22 = vpop.eup %5202  ;;  %vm8800_vm11 = vmmov %vm8731_vm0 }
 0xa36   : > { %3709 = vadd.xlane.f32.xlu0 %v3708_v31  ;;  %v3702_v47 = vsel %vm8786_vm3, %v5203_v22, 0.0  ;;  %vm8801_vm3 = vmmov %vm8731_vm0 }
 0xa38   : > { %v5205_v19 = vpop.eup %5204 }
 0xa39   : > { %v3711_v39 = vsel %vm8787_vm4, %v5205_v19, 0.0  ;;  %v5207_v40 = vpop.eup %5206  ;;  %vm3604_vm4 = vcmask 130112  }
 0xa3a   : > { %3703 = vadd.xlane.f32.xlu0 %v3702_v47  ;;  %3712 = vadd.xlane.f32.xlu1 %v3711_v39  ;;  %v3705_v63 = vsel %vm8788_vm1, %v5207_v40, 0.0  ;;  %vm8802_vm1 = vmmov %vm8731_vm0 }
 0xa3e   : > { %3706 = vadd.xlane.f32.xlu1 %v3705_v63 }
 0xa4f   : > { %3815 = vrot.lane.b32.xlu1 %v7602_v23, %s5471_s19 }
 0xa50   : > { %3729 = vrot.lane.b32.xlu0 %v7598_v21, %s5470_s21  ;;  %s4111_s21 = scalar_lea.sflag [#allocation13], %s5729_s18 }
 0xa53   : > { %3817 = vrot.lane.b32.xlu1 %v7600_v18, %s5471_s19  ;;  %s5350_s19 = scalar_lea.vmem %s7782_s17, 2048 }
 0xa54   : > { %3811 = vrot.lane.b32.xlu0 %v7607_v24, %s5472_s16  ;;  %p5351_p10 = scmp.ne.s32.totalorder %s7782_s17, %s5350_s19 }
 0xa56   : > { %p5352_p3 = pnand %p5351_p10, %p5681_p5 }
 0xa57   : > { %3813 = vrot.lane.b32.xlu1 %v7604_v52, %s5472_s16 }
 0xa58   : > { %p5353_p7 = pneg %p5352_p3 }
 0xac3   : > { %v3710_v32 = vpop.xlane.xlu0 %3709 }
 0xac4   : > { %5208 = vrcp.f32 %v3710_v32 }
 0xac7   : > { %v3704_v42 = vpop.xlane.xlu0 %3703  ;;  %v3713_v44 = vpop.xlane.xlu1 %3712 }
 0xac8   : > { %5210 = vrcp.f32 %v3704_v42 }
 0xac9   : > { %5212 = vrcp.f32 %v3713_v44 }
 0xacb   : > { %v3730_v23 = vpop.permute.xlu0 %3729  ;;  %v3707_v58 = vpop.xlane.xlu1 %3706 }
 0xacc   : > { %5214 = vrcp.f32 %v3707_v58  ;;  %4861 = vmatprep.subr.bf16.mxu1 %v3730_v23 }
 0xacd   : > { %4862 = vmatpush3.bf16.msra.mxu1 %v3730_v23 }
 0xace   : > { %v5209_v18 = vpop.eup %5208  ;;  %4863 = vmatprep.subr.bf16.mxu1 %v3732_v55 }
 0xacf   : > { %v3720_v24 = vmul.f32 %v5209_v18, %v5201_v61  ;;  %v3816_v52 = vpop.permute.xlu1 %3815  ;;  %v3812_v14 = vpop.permute.xlu0 %3811 }
 0xad0   : > { %v3826_v56 = vsel %vm3232_vm14, %v3816_v52, 0 }
 0xad1   : > { %4421 = vst.msk [vmem:[%s7638_s15 + $0x50] sm:$0xff] %vm8789_vm10, %v3720_v24  ;;  %4864 = vmatpush3.bf16.msra.mxu1 %v3732_v55  ;;  %vm3806_vm10 = vcmask 195712  }
 0xad2   : > { %v5211_v50 = vpop.eup %5210  ;;  %5003 = vmatprep.subr.msk.bf16.mxu1 %vm3232_vm14, %v3816_v52 }
 0xad3   : > { %v5213_v29 = vpop.eup %5212  ;;  %v3718_v59 = vmul.f32 %v5211_v50, %v5203_v22  ;;  %v3818_v46 = vpop.permute.xlu1 %3817 }
 0xad4   : > { %v3721_v57 = vmul.f32 %v5213_v29, %v5205_v19  ;;  %v3829_v48 = vsel %vm3232_vm14, %v3818_v46, 0 }
 0xad5   : > { %4419 = vst.msk [vmem:[%s7638_s15 + $0x40] sm:$0xff] %vm8790_vm2, %v3718_v59  ;;  %vm8803_vm2 = vmmov %vm8731_vm0 }
 0xad6   : > { %v5215_v54 = vpop.eup %5214  ;;  %4422 = vst.msk [vmem:[%s7638_s15 + $0x58] sm:$0xff] %vm8791_vm6, %v3721_v57  ;;  %v3728_v45 = vpack.c.bf16 %v3721_v57, %v3720_v24  ;;  %vm8804_vm6 = vmmov %vm8731_vm0 }
 0xad7   : > { %v3719_v8 = vmul.f32 %v5215_v54, %v5207_v40  ;;  %v3814_v51 = vpop.permute.xlu1 %3813 }
 0xad9   : > { %4420 = vst.msk [vmem:[%s7638_s15 + $0x48] sm:$0xff] %vm8731_vm0, %v3719_v8  ;;  %v3727_v60 = vpack.c.bf16 %v3719_v8, %v3718_v59  ;;  %v5158_v8 = vld [vmem:[#allocation9] sm:$0xff]  }
 0xadb   : > { %4865 = vmatprep.mubr.msk.bf16.mxu1 %vm8792_vm8, %v3727_v60  ;;  %vm8805_vm8 = vmmov %vm8731_vm0  ;;  %v5159_v60 = vld [vmem:[#allocation9 + $0x8] sm:$0xff]  }
 0xadc   : > { %4866 = vmatmul.mubr.msk.bf16.vlgmr.msra.gmra.mrb[28].mxu1 %vm8793_vm9, %v3728_v45  ;;  %vm8806_vm9 = vmmov %vm8731_vm0 }
 0xadd   : > { %4870 = vmatpush3.bf16.xpose.msra.mxu1 %v3826_v56  ;;  %4873 = vmatprep.mubr.msk.bf16.mxu1 %vm3232_vm14, %v3812_v14 }
 0xade   : > { %5004 = vmatprep.subr.msk.bf16.mxu1 %vm3232_vm14, %v3818_v46 }
 0xae5   : > { %4872 = vmatpush3.bf16.xpose.msra.mxu1 %v3829_v48 }
 0xaec   : > { %4874 = vmatmul.mubr.msk.bf16.vlgmr.msra.gmra.mrb[32].mxu1 %vm3232_vm14, %v3814_v51  ;;  %vm8798_vm14 = vmmov %vm8731_vm0 }
 0xbaf   : > { %v4867_v30 = vpop.f32.mrb[28].mxu1 }
 0xbb0   : > { %v3775_v17 = vpop.f32.mrb[29].mxu1 }
 0xbb1   : > { %v4868_v36 = vpop.f32.mrb[30].mxu1 }
 0xbb2   : > { %v3778_v5 = vpop.f32.mrb[31].mxu1 }
 0xbbf   : > { %v4875_v38 = vpop.f32.mrb[32].mxu1 }
 0xbc0   : > { %v3865_v62 = vpop.f32.mrb[33].mxu1  ;;  %v3886_v12 = vsel %vm8796_vm12, %v4875_v38, -inf  ;;  %vm8808_vm12 = vmmov %vm8731_vm0 }
 0xbc1   : > { %v4876_v15 = vpop.f32.mrb[34].mxu1  ;;  %v3880_v20 = vsel %vm8794_vm5, %v3865_v62, -inf  ;;  %vm4008_vm5 = vcmask 261312  }
 0xbc2   : > { %3881 = vmax.xlane.f32.xlu0 %v3880_v20  ;;  %v3868_v10 = vpop.f32.mrb[35].mxu1  ;;  %v3889_v7 = vsel %vm8797_vm15, %v4876_v15, -inf }
 0xbc3   : > { %v3883_v41 = vsel %vm8795_vm7, %v3868_v10, -inf  ;;  %vm8807_vm7 = vmmov %vm8731_vm0 }
 0xbc4   : > { %3884 = vmax.xlane.f32.xlu1 %v3883_v41 }
 0xbc6   : > { %3887 = vmax.xlane.f32.xlu0 %v3886_v12 }
 0xbca   : > { %3890 = vmax.xlane.f32.xlu0 %v3889_v7 }
 0xc4f   : > { %v3882_v33 = vpop.xlane.xlu0 %3881 }
 0xc50   : > { %v3892_v16 = vsub.f32 %v3865_v62, %v3882_v33 }
 0xc51   : > { %v3885_v2 = vpop.xlane.xlu1 %3884 }
 0xc52   : > { %v3896_v3 = vmul.f32 1.442695, %v3892_v16  ;;  %v3893_v26 = vsub.f32 %v3868_v10, %v3885_v2 }
 0xc53   : > { %v3888_v35 = vpop.xlane.xlu0 %3887 }
 0xc54   : > { %v3894_v43 = vsub.f32 %v4875_v38, %v3888_v35  ;;  %v3898_v49 = vmul.f32 1.442695, %v3893_v26 }
 0xc56   : > { %v3900_v1 = vmul.f32 1.442695, %v3894_v43 }
 0xc57   : > { %v3891_v28 = vpop.xlane.xlu0 %3890 }
 0xc58   : > { %5216 = vpow2.f32 %v3900_v1  ;;  %v3895_v6 = vsub.f32 %v4876_v15, %v3891_v28 }
 0xc59   : > { %5218 = vpow2.f32 %v3896_v3 }
 0xc5a   : > { %v3902_v13 = vmul.f32 1.442695, %v3895_v6 }
 0xc5c   : > { %5220 = vpow2.f32 %v3902_v13 }
 0xc5d   : > { %5222 = vpow2.f32 %v3898_v49 }
 0xc62   : > { %v5217_v9 = vpop.eup %5216 }
 0xc63   : > { %v3910_v53 = vsel %vm8798_vm14, %v5217_v9, 0.0  ;;  %v5219_v27 = vpop.eup %5218 }
 0xc64   : > { %3911 = vadd.xlane.f32.xlu0 %v3910_v53  ;;  %v3904_v61 = vsel %vm8799_vm13, %v5219_v27, 0.0 }
 0xc66   : > { %v5221_v4 = vpop.eup %5220 }
 0xc67   : > { %v3913_v31 = vsel %vm8800_vm11, %v5221_v4, 0.0  ;;  %v5223_v22 = vpop.eup %5222 }
 0xc68   : > { %3905 = vadd.xlane.f32.xlu0 %v3904_v61  ;;  %3914 = vadd.xlane.f32.xlu1 %v3913_v31  ;;  %v3907_v19 = vsel %vm8801_vm3, %v5223_v22, 0.0 }
 0xc6c   : > { %3908 = vadd.xlane.f32.xlu1 %v3907_v19 }
 0xc7d   : > { %3933 = vrot.lane.b32.xlu1 %v7596_v34, %s5472_s16 }
 0xc7e   : > { %3931 = vrot.lane.b32.xlu0 %v7598_v21, %s5472_s16  ;;  %s5476_s16 = smov [#allocation12]  }
 0xc81   : > { %3592 = vrot.lane.b32.xlu1 %v7695_v25, %s5473_s22 }
 0xc82   : > { %3596 = vrot.lane.b32.xlu0 %v7693_v37, %s5473_s22 }
 0xc85   : > { %3594 = vrot.lane.b32.xlu1 %v7699_v0, %s5473_s22 }
 0xc86   : > { %3794 = vrot.lane.b32.xlu0 %v3775_v17, %s5474_s26 }
 0xc89   : > { %3598 = vrot.lane.b32.xlu1 %v7697_v11, %s5473_s22 }
 0xc8a   : > { %3798 = vrot.lane.b32.xlu0 %v4867_v30, %s5474_s26 }
 0xc8d   : > { %3796 = vrot.lane.b32.xlu1 %v3778_v5, %s5474_s26 }
 0xc91   : > { %3800 = vrot.lane.b32.xlu1 %v4868_v36, %s5474_s26  ;;  %s5354_s26 = sshll.u32 %s5476_s16, 4  ;;  %s5355_s26 = int_to_ptr.vmem [resolvable:$false] %s5354_s26 }
 0xc92   : > { %p5357_p12 = scmp.lt.s32.totalorder %s7782_s17, %s5355_s26 }
 0xcf1   : > { %v3912_v34 = vpop.xlane.xlu0 %3911 }
 0xcf2   : > { %5224 = vrcp.f32 %v3912_v34 }
 0xcf5   : > { %v3906_v21 = vpop.xlane.xlu0 %3905  ;;  %v3915_v47 = vpop.xlane.xlu1 %3914 }
 0xcf6   : > { %5226 = vrcp.f32 %v3906_v21 }
 0xcf7   : > { %5228 = vrcp.f32 %v3915_v47 }
 0xcf9   : > { %v3932_v25 = vpop.permute.xlu0 %3931  ;;  %v3909_v37 = vpop.xlane.xlu1 %3908 }
 0xcfa   : > { %5230 = vrcp.f32 %v3909_v37  ;;  %4877 = vmatprep.subr.bf16.mxu1 %v3932_v25 }
 0xcfb   : > { %4878 = vmatpush3.bf16.msra.mxu1 %v3932_v25 }
 0xcfc   : > { %v5225_v0 = vpop.eup %5224 }
 0xcfd   : > { %v3922_v39 = vmul.f32 %v5225_v0, %v5217_v9  ;;  %v3597_v11 = vpop.permute.xlu0 %3596  ;;  %v3934_v40 = vpop.permute.xlu1 %3933 }
 0xcfe   : > { %3607 = vst.msk [vmem:[#allocation2 + $0x10] sm:$0xff] %vm3604_vm4, %v3597_v11  ;;  %4879 = vmatprep.subr.bf16.mxu1 %v3934_v40 }
 0xcff   : > { %4429 = vst.msk [vmem:[%s7638_s15 + $0x70] sm:$0xff] %vm8802_vm1, %v3922_v39  ;;  %4880 = vmatpush3.bf16.msra.mxu1 %v3934_v40 }
 0xd00   : > { %v5227_v63 = vpop.eup %5226  ;;  %4885 = vmatprep.subr.bf16.mxu1 %v5158_v8 }
 0xd01   : > { %v5229_v55 = vpop.eup %5228  ;;  %v3795_v32 = vpop.permute.xlu0 %3794  ;;  %v3920_v44 = vmul.f32 %v5227_v63, %v5219_v27 }
 0xd02   : > { %v3593_v42 = vpop.permute.xlu1 %3592  ;;  %v3923_v23 = vmul.f32 %v5229_v55, %v5221_v4 }
 0xd03   : > { %3605 = vst.msk [vmem:[#allocation2] sm:$0xff] %vm3604_vm4, %v3593_v42 }
 0xd04   : > { %3807 = vst.msk [vmem:[#allocation2] sm:$0xff] %vm3806_vm10, %v3795_v32  ;;  %v5231_v58 = vpop.eup %5230  ;;  %v3930_v29 = vpack.c.bf16 %v3923_v23, %v3922_v39 }
 0xd05   : > { %4427 = vst.msk [vmem:[%s7638_s15 + $0x60] sm:$0xff] %vm8803_vm2, %v3920_v44  ;;  %v3799_v18 = vpop.permute.xlu0 %3798  ;;  %v3921_v52 = vmul.f32 %v5231_v58, %v5223_v22 }
 0xd06   : > { %4430 = vst.msk [vmem:[%s7638_s15 + $0x78] sm:$0xff] %vm8804_vm6, %v3923_v23  ;;  %v3595_v24 = vpop.permute.xlu1 %3594 }
 0xd07   : > { %3809 = vst.msk [vmem:[#allocation2 + $0x10] sm:$0xff] %vm3806_vm10, %v3799_v18  ;;  %v3929_v50 = vpack.c.bf16 %v3921_v52, %v3920_v44 }
 0xd08   : > { %3606 = vst.msk [vmem:[#allocation2 + $0x8] sm:$0xff] %vm3604_vm4, %v3595_v24 }
 0xd09   : > { %4428 = vst.msk [vmem:[%s7638_s15 + $0x68] sm:$0xff] %vm8731_vm0, %v3921_v52  ;;  %4881 = vmatprep.mubr.msk.bf16.mxu1 %vm8805_vm8, %v3929_v50 }
 0xd0a   : > { %v3599_v59 = vpop.permute.xlu1 %3598  ;;  %4882 = vmatmul.mubr.msk.bf16.vlgmr.msra.gmra.mrb[36].mxu1 %vm8806_vm9, %v3930_v29 }
 0xd0b   : > { %3608 = vst.msk [vmem:[#allocation2 + $0x18] sm:$0xff] %vm3604_vm4, %v3599_v59  ;;  %4886 = vmatpush3.bf16.msra.mxu1 %v5158_v8 }
 0xd0c   : > { %4887 = vmatprep.subr.bf16.mxu1 %v5159_v60 }
 0xd0e   : > { %v3797_v57 = vpop.permute.xlu1 %3796 }
 0xd0f   : > { %3808 = vst.msk [vmem:[#allocation2 + $0x8] sm:$0xff] %vm3806_vm10, %v3797_v57  ;;  %4888 = vmatpush3.bf16.msra.mxu1 %v5159_v60 }
 0xd12   : > { %v3801_v54 = vpop.permute.xlu1 %3800 }
 0xd13   : > { %3810 = vst.msk [vmem:[#allocation2 + $0x18] sm:$0xff] %vm3806_vm10, %v3801_v54 }
 0xddd   : > { %v4883_v45 = vpop.f32.mrb[36].mxu1 }
 0xdde   : > { %v3977_v14 = vpop.f32.mrb[37].mxu1 }
 0xddf   : > { %3996 = vrot.lane.b32.xlu0 %v3977_v14, %s5475_s23  ;;  %v4884_v56 = vpop.f32.mrb[38].mxu1 }
 0xde0   : > { %v3980_v46 = vpop.f32.mrb[39].mxu1 }
 0xde1   : > { %3998 = vrot.lane.b32.xlu1 %v3980_v46, %s5475_s23 }
 0xde3   : > { %4000 = vrot.lane.b32.xlu0 %v4883_v45, %s5475_s23 }
 0xde5   : > { %4002 = vrot.lane.b32.xlu1 %v4884_v56, %s5475_s23  ;;  %s5356_s23 = scalar_lea.vmem %s5355_s26, 4096 }
 0xde6   : > { %p5358_p1 = scmp.lt.s32.totalorder %s5356_s23, %s5350_s19 }
 0xde8   : > { %p5359_p2 = por %p5358_p1, %p5357_p12 }
 0xdea   : > { %p5360_p4 = pnand %p5359_p2, %p5353_p7 }
 0xe51   : > { %v3997_v48 = vpop.permute.xlu0 %3996 }
 0xe52   : > { %4009 = vst.msk [vmem:[#allocation2] sm:$0xff] %vm4008_vm5, %v3997_v48 }
 0xe53   : > { %v3999_v51 = vpop.permute.xlu1 %3998 }
 0xe54   : > { %4010 = vst.msk [vmem:[#allocation2 + $0x8] sm:$0xff] %vm4008_vm5, %v3999_v51 }
 0xe55   : > { %v4001_v30 = vpop.permute.xlu0 %4000 }
 0xe56   : > { %4011 = vst.msk [vmem:[#allocation2 + $0x10] sm:$0xff] %vm4008_vm5, %v4001_v30 }
 0xe57   : > { %v4003_v17 = vpop.permute.xlu1 %4002 }
 0xe58   : > { %4012 = vst.msk [vmem:[#allocation2 + $0x18] sm:$0xff] %vm4008_vm5, %v4003_v17 }
 0xe59   : > { %v4013_v36 = vld [vmem:[#allocation2] sm:$0xff] }
 0xe5b   : > { %v4014_v5 = vld [vmem:[#allocation2 + $0x8] sm:$0xff] }
 0xe5c   : > { %v4017_v38 = vpack.c.bf16 %v4014_v5, %v4013_v36 }
 0xe5d   : > { %v4015_v62 = vld [vmem:[#allocation2 + $0x10] sm:$0xff] }
 0xe5e   : > { %4889 = vmatprep.mubr.msk.bf16.mxu1 %vm8807_vm7, %v4017_v38 }
 0xe5f   : > { %v4016_v15 = vld [vmem:[#allocation2 + $0x18] sm:$0xff] }
 0xe60   : > { %v4018_v20 = vpack.c.bf16 %v4016_v15, %v4015_v62 }
 0xe62   : > { %4890 = vmatmul.mubr.msk.bf16.vlgmr.msra.gmra.mrb[40].mxu1 %vm8808_vm12, %v4018_v20 }
 0xe63   : > { %5363 = shalt.err (!%p5360_p4)
}
 0xe64   : > { %s5364_s15 = scalar_lea.hbm %s7779_s25, 2048  ;;  %s5368_s30 = scalar_lea.hbm %s7886_s9, 4096 }
 0xe65   : > { %p5365_p9 = scmp.ne.s32.totalorder %s7779_s25, %s5364_s15  ;;  %p5369_p8 = scmp.lt.u32.totalorder %s7779_s25, %s7886_s9 }
 0xe66   : > { %p5370_p13 = scmp.lt.u32.totalorder %s5368_s30, %s5364_s15  ;;  %p5372_p10 = scmp.lt.u32.totalorder %s5364_s15, %s7779_s25 }
 0xe67   : > { %p5366_p0 = pnand %p5365_p9, %p5681_p5 }
 0xe68   : > { %p5371_p6 = por %p5370_p13, %p5369_p8 }
 0xe69   : > { %p5367_p11 = pneg %p5366_p0 }
 0xe6a   : > { %p5373_p3 = por %p5372_p10, %p5371_p6 }
 0xe6c   : > { %p5374_p7 = pnand %p5373_p3, %p5367_p11 }
 0xe6e   : > { %5377 = shalt.err (!%p5374_p7)
}
 0xe6f   : > { %s5477_s19 = smov 128   ;;  %v4433_v10 = vld [vmem:[%s7884_s7] ss:$0 sm:$0xff]  ;;  %s396_s20 = scalar_lea.vmem [#allocation11], %s4284_s24  ;;  %v5232_v2 = vld [vmem:[%s5735_s29 + $0x10] sm:$0xff]  ;;  %vm8809_vm15 = vmmov %vm8731_vm0 }
 0xe70   : > { %5020 = dma.vmem_to_hbm [thread:$0]  (%p5681_p5), %s7782_s17, 2048, %s7779_s25, %s4111_s21, %s5477_s19, %s5477_s19, %s5473_s22   ;;  %vm8810_vm14 = vmmov %vm8731_vm0 }
 0xe71   : > { %s4124_s8 = sshll.u32 %s396_s20, 4  ;;  %s4447_s25 = sshll.u32 %s5550_s13, 9  ;;  %v5233_v26 = vld [vmem:[%s5735_s29] sm:$0xff]  ;;  %v5234_v6 = vld [vmem:[%s5735_s29 + $0x18] sm:$0xff]  ;;  %v5235_v13 = vld [vmem:[%s5735_s29 + $0x8] sm:$0xff]  ;;  %s7820_s8 = int_to_ptr.vmem [resolvable:$true] %s4124_s8 }
 0xe72   : > { %s8811_s13 = sld [smem:[#allocation73_spill]]  ;;  %vm8812_vm13 = vmmov %vm8731_vm0  ;;  %s4106_s30 = scalar_lea.sflag [#allocation5], %s5729_s18 }
 0xe73   : > { %vm8813_vm11 = vmmov %vm8731_vm0  ;;  %s5378_s16 = scalar_lea.vmem %s7820_s8, 512  ;;  %s5478_s26 = smov [#allocation11]  }
 0xe74   : > { %p5379_p12 = scmp.ne.s32.totalorder %s7820_s8, %s5378_s16  ;;  %s5382_s23 = sshll.u32 %s5478_s26, 4  ;;  %s5383_s23 = int_to_ptr.vmem [resolvable:$false] %s5382_s23 }
 0xe75   : > { %s5384_s29 = scalar_lea.vmem %s5383_s23, 1024  ;;  %p5385_p4 = scmp.lt.s32.totalorder %s7820_s8, %s5383_s23 }
 0xe76   : > { %p5380_p1 = pnand %p5379_p12, %p5681_p5  ;;  %p5386_p9 = scmp.lt.s32.totalorder %s5384_s29, %s5378_s16 }
 0xe78   : > { %s7828_s21 = scalar_lea.hbm %s8811_s13, %s4447_s25  ;;  %p5381_p2 = pneg %p5380_p1 }
 0xe79   : > { %p5387_p0 = por %p5386_p9, %p5385_p4 }
 0xe7b   : > { %p5388_p11 = pnand %p5387_p0, %p5381_p2 }
 0xf35   : > { %v4891_v41 = vpop.f32.mrb[40].mxu1 }
 0xf36   : > { %v4091_v12 = vadd.f32 %v4891_v41, %v4433_v10  ;;  %v4082_v7 = vpop.f32.mrb[41].mxu1 }
 0xf37   : > { %v4083_v33 = vadd.f32 %v4433_v10, %v4082_v7  ;;  %v4892_v16 = vpop.f32.mrb[42].mxu1 }
 0xf38   : > { %v4099_v35 = vadd.f32 %v5232_v2, %v4091_v12  ;;  %v4094_v43 = vadd.f32 %v4892_v16, %v4433_v10  ;;  %v4085_v3 = vpop.f32.mrb[43].mxu1 }
 0xf39   : > { %v4097_v1 = vadd.f32 %v5233_v26, %v4083_v33  ;;  %v4086_v28 = vadd.f32 %v4433_v10, %v4085_v3 }
 0xf3a   : > { %4103 = vst.msk [vmem:[%s396_s20 + $0x10] sm:$0xff] %vm8809_vm15, %v4099_v35  ;;  %v4100_v49 = vadd.f32 %v5234_v6, %v4094_v43 }
 0xf3b   : > { %4101 = vst.msk [vmem:[%s396_s20] sm:$0xff] %vm8810_vm14, %v4097_v1  ;;  %v4098_v9 = vadd.f32 %v5235_v13, %v4086_v28 }
 0xf3c   : > { %4104 = vst.msk [vmem:[%s396_s20 + $0x18] sm:$0xff] %vm8812_vm13, %v4100_v49 }
 0xf3d   : > { %4102 = vst.msk [vmem:[%s396_s20 + $0x8] sm:$0xff] %vm8813_vm11, %v4098_v9 }
 0xf3e   : > { %5391 = shalt.err (!%p5388_p11)
}
 0xf3f   : > { %s5392_s15 = scalar_lea.hbm %s7828_s21, 512  ;;  %s5396_s24 = scalar_lea.hbm %s8811_s13, 1024 }
 0xf40   : > { %p5393_p8 = scmp.ne.s32.totalorder %s7828_s21, %s5392_s15  ;;  %p5397_p10 = scmp.lt.u32.totalorder %s7828_s21, %s8811_s13 }
 0xf41   : > { %p5398_p3 = scmp.lt.u32.totalorder %s5396_s24, %s5392_s15  ;;  %p5400_p12 = scmp.lt.u32.totalorder %s5392_s15, %s7828_s21 }
 0xf42   : > { %p5394_p13 = pnand %p5393_p8, %p5681_p5 }
 0xf43   : > { %p5399_p7 = por %p5398_p3, %p5397_p10 }
 0xf44   : > { %p5395_p6 = pneg %p5394_p13 }
 0xf45   : > { %p5401_p1 = por %p5400_p12, %p5399_p7 }
 0xf47   : > { %p5402_p2 = pnand %p5401_p1, %p5395_p6 }
 0xf49   : > { %5405 = shalt.err (!%p5402_p2)
}
 0xf4a   : > { %5019 = dma.vmem_to_hbm [thread:$0]  (%p5681_p5), %s7820_s8, 512, %s7828_s21, %s4106_s30, %s5477_s19, %s5477_s19, %s5473_s22  }
 0xf4b PF: > { %s8814_s16 = sld [smem:[#allocation19_spill]]  ;;  %s8815_s23 = sld [smem:[#allocation20_spill]] }
 0xf4c   : > { %p8817_p9 = scmp.ge.s32.totalorder %s5456_s12, 2 }
 0xf51   : > { %s4155_s29 = sand.u32 1, %s8814_s16   ;;  %p8816_p4 = scmp.ne.s32.totalorder %s8815_s23, 0 }
 0xf52   : > { %s4156_s15 = scalar_lea.sflag [#allocation5], %s4155_s29 }
 0xf53   : > { %p5038_p0 = pnand %p8817_p9, %p8816_p4 }
 0xf55   : > { %5435 = dma.done.wait (!%p5038_p0), %s4156_s15, 512  }
 0xf56   : > { %5437 = vsyncadd (!%p5038_p0), %s4156_s15, 4294966784  ;;  %s4165_s28 = scalar_lea.sflag [#allocation13], %s4155_s29 }
 0xf57   : > { %5439 = dma.done.wait (!%p5038_p0), %s4165_s28, 2048  }
 0xf58   : > { %5441 = vsyncadd (!%p5038_p0), %s4165_s28, 4294965248  ;;  %p28_p5 = scmp.ge.s32.totalorder %s5667_s14, 4   ;;  %s8818_s30 = smov %s5448_s10 }
 0xf59   : > { %s8819_s10 = smov %s5452_s11  ;;  %s8820_s11 = smov %s5677_s27 }
 0xf5a   : > { %s8821_s12 = smov %s5667_s14  ;;  %30 = sbr.rel (!%p28_p5) target bundleno = 11 (0xb), region = 155 }
 0xf61   :  { %4170 = vsyncpa [#allocation4], 1 }
 0xf62   :  { %4172 = vsyncpa [#allocation4 + $0x1], 1 }
 0xf63   :  { %4173 = vsyncpa [#allocation7], 1 }
 0xf64   :  { %4174 = vsyncpa [#allocation10], 1 }
 0xf65   :  { %4175 = vsyncpa [#allocation5], 1 }
 0xf66   :  { %4177 = vsyncpa [#allocation5 + $0x1], 1 }
 0xf67   :  { %4178 = vsyncpa [#allocation13], 1 }
 0xf68   :  { %4180 = vsyncpa [#allocation13 + $0x1], 1 }

</bundles_post_ra>
